<compile_context>
chip_gen: v7x
topology: tpu7x:2x2x1
jax: 0.10.0
libtpu: 0.0.40
codegen_flags: <defaults>
</compile_context>

<pallas_src>
import functools

import jax
import jax.numpy as jnp
import numpy as np
from jax import lax
from jax.experimental import pallas as pl
from jax.experimental.pallas import tpu as pltpu


# ----------------------------------------------------------------------------
# Pass 1: conv1 (9 tap matmuls over the canvas) + BN batch-statistic partials
# ----------------------------------------------------------------------------
def conv1_stats_kernel(x_ref, w1_ref, mask_ref, y1_ref, psum_ref, psq_ref,
                       *, HWp, PAD, offs):
    """Per-image Conv3x3 #1 + BN-stats partials.

    x_ref    : (1, L, Cin)    bf16  zero-padded input canvas (halo + pad cols)
    w1_ref   : (9, Cin, Cout) bf16  conv1 weights, tap-major
    mask_ref : (HWp, 1)       f32   1 on real pixels, 0 on the pad columns
    y1_ref   : (1, L, Cout)   bf16  conv1 output canvas (halos zero-filled here)
    psum_ref : (1, 1, Cout)   f32   per-image per-channel sum
    psq_ref  : (1, 1, Cout)   f32   per-image per-channel sum of squares
    """
    acc = None
    for t, off in enumerate(offs):
        tap = x_ref[0, PAD + off:PAD + off + HWp, :]            # (HWp, Cin) bf16
        d = jnp.dot(tap, w1_ref[t], preferred_element_type=jnp.float32)
        acc = d if acc is None else acc + d
    # Zero the pad-column rows: keeps BN stats exact over real pixels and makes
    # these rows valid "zero padding" for conv2's horizontal taps in pass 2.
    acc = acc * mask_ref[...]

    # Conv1 bias is intentionally omitted: it cancels exactly under
    # training-mode BatchNorm (mean shift / variance invariance).
    psum_ref[0] = jnp.sum(acc, axis=0, keepdims=True)
    psq_ref[0] = jnp.sum(acc * acc, axis=0, keepdims=True)

    zeros = jnp.zeros((PAD, acc.shape[1]), y1_ref.dtype)
    y1_ref[0, :PAD, :] = zeros                                   # top halo
    y1_ref[0, PAD:PAD + HWp, :] = acc.astype(y1_ref.dtype)       # body (bf16)
    y1_ref[0, PAD + HWp:, :] = zeros                             # bottom halo


# ----------------------------------------------------------------------------
# Pass 2: conv2 (9 tap matmuls; BN scale folded into weights) + bias table + tanh
# ----------------------------------------------------------------------------
def bn_conv2_tanh_kernel(y1_ref, w2_ref, bias_ref, out_ref, *, HWp, PAD, offs):
    """Per-image (BN affine folded) Conv3x3 #2 + Tanh.

    y1_ref  : (1, L, Cout)  bf16  conv1 canvas (pre-BN; zero halos / pad cols)
    w2_ref  : (9, Cout, 64) bf16  conv2 weights with the BN scale folded in
    bias_ref: (HWp, 64)     f32   b2 + boundary-aware per-pixel BN-shift term
    out_ref : (1, HWp, 64)  f32   pre-pixel-shuffle output canvas
    """
    acc = bias_ref[...]                                          # (HWp, 64) f32
    for t, off in enumerate(offs):
        tap = y1_ref[0, PAD + off:PAD + off + HWp, :]            # (HWp, Cout) bf16
        acc = acc + jnp.dot(tap, w2_ref[t], preferred_element_type=jnp.float32)
    out_ref[0] = jnp.tanh(acc)


# ----------------------------------------------------------------------------
# Wrapper: canvas layout glue + the two pallas_calls + tiny XLA stats/fold glue
# ----------------------------------------------------------------------------
def location_head_forward(x_nchw, w1, b1, gamma, beta, w2, b2, eps=1e-5):
    """x_nchw: (N, Cin, H, W).  w1: (3,3,Cin,Cout) HWIO, w2: (3,3,Cout,64) HWIO."""
    del b1  # cancels exactly under training-mode BatchNorm (see kernel comment)

    x = jnp.transpose(x_nchw, (0, 2, 3, 1))                      # -> NHWC
    N, H, W, Cin = x.shape
    Cout = w1.shape[-1]
    C2 = w2.shape[-1]

    Wp = W + 2                                   # padded row width (canvas)
    HWp = H * Wp                                 # canvas body length
    PAD = ((W + 3 + 15) // 16) * 16              # halo rows: >= Wp+1, 16-aligned
    L = HWp + 2 * PAD
    offs = tuple(dy * Wp + dx for dy in (-1, 0, 1) for dx in (-1, 0, 1))

    # ---- layout glue (NO 9x im2col): pad columns + flatten rows + halo rows.
    xp = jnp.pad(x, ((0, 0), (0, 0), (1, 1), (0, 0)))            # (N, H, Wp, Cin)
    x_slab = jnp.pad(xp.reshape(N, HWp, Cin),
                     ((0, 0), (PAD, PAD), (0, 0))).astype(jnp.bfloat16)
    w1t = w1.reshape(9, Cin, Cout).astype(jnp.bfloat16)

    # Trace-time constant: 1 on real pixels, 0 on the two pad columns per row.
    colmask_np = np.ones((H, Wp, 1), np.float32)
    colmask_np[:, 0, :] = 0.0
    colmask_np[:, -1, :] = 0.0
    colmask = jnp.asarray(colmask_np.reshape(HWp, 1))

    flops1 = 2 * N * HWp * 9 * Cin * Cout
    bytes1 = (x_slab.size * 2 + w1t.size * 2 + colmask.size * 4
              + N * L * Cout * 2 + 2 * N * Cout * 4)

    y1_slab, psum, psq = pl.pallas_call(
        functools.partial(conv1_stats_kernel, HWp=HWp, PAD=PAD, offs=offs),
        grid=(N,),
        in_specs=[
            pl.BlockSpec((1, L, Cin), lambda n: (n, 0, 0)),
            pl.BlockSpec((9, Cin, Cout), lambda n: (0, 0, 0)),
            pl.BlockSpec((HWp, 1), lambda n: (0, 0)),
        ],
        out_specs=[
            pl.BlockSpec((1, L, Cout), lambda n: (n, 0, 0)),
            pl.BlockSpec((1, 1, Cout), lambda n: (n, 0, 0)),
            pl.BlockSpec((1, 1, Cout), lambda n: (n, 0, 0)),
        ],
        out_shape=[
            jax.ShapeDtypeStruct((N, L, Cout), jnp.bfloat16),
            jax.ShapeDtypeStruct((N, 1, Cout), jnp.float32),
            jax.ShapeDtypeStruct((N, 1, Cout), jnp.float32),
        ],
        compiler_params=pltpu.CompilerParams(
            dimension_semantics=("parallel",)),
        cost_estimate=pl.CostEstimate(flops=flops1, transcendentals=0,
                                      bytes_accessed=bytes1),
    )(x_slab, w1t, colmask)

    # ---- glue: GLOBAL training-mode batch statistics -> folded BN params.
    cnt = jnp.float32(N * H * W)
    mean = jnp.sum(psum, axis=(0, 1)) / cnt
    # E[x^2]-E[x]^2 in f32 (clamped): acceptable here; see header for caveats.
    var = jnp.maximum(jnp.sum(psq, axis=(0, 1)) / cnt - mean * mean, 0.0)
    scale = gamma.astype(jnp.float32) * lax.rsqrt(var + eps)
    shift = beta.astype(jnp.float32) - mean * scale

    w2t = w2.reshape(9, Cout, C2).astype(jnp.float32)            # tap-major
    w2s = (w2t * scale[None, :, None]).astype(jnp.bfloat16)      # fold BN scale

    # Per-pixel bias table: b2 + sum over *in-bounds* taps of (shift @ w2[t]).
    # (Out-of-bounds taps read exact zeros from the slab, so only the shift
    # term needs the boundary accounting.)  The validity table is a trace-time
    # numpy constant; only the tiny (9, C2) data-dependent factor is traced.
    dyx = np.array([(dy, dx) for dy in (-1, 0, 1) for dx in (-1, 0, 1)])
    ii = np.arange(H)[:, None, None]
    jj = np.arange(W)[None, :, None]
    ok = ((ii + dyx[:, 0] >= 0) & (ii + dyx[:, 0] < H) &
          (jj + dyx[:, 1] >= 0) & (jj + dyx[:, 1] < W))          # (H, W, 9)
    valid_np = np.zeros((H, Wp, 9), np.float32)
    valid_np[:, 1:W + 1, :] = ok.astype(np.float32)
    valid = jnp.asarray(valid_np.reshape(HWp, 9))
    shift_w2 = jnp.einsum('c,tcf->tf', shift, w2t)               # (9, C2) f32
    bias_tab = valid @ shift_w2 + b2.astype(jnp.float32)[None, :]  # (HWp, C2)

    flops2 = 2 * N * HWp * 9 * Cout * C2
    bytes2 = (N * L * Cout * 2 + w2s.size * 2 + bias_tab.size * 4
              + N * HWp * C2 * 4)

    out = pl.pallas_call(
        functools.partial(bn_conv2_tanh_kernel, HWp=HWp, PAD=PAD, offs=offs),
        grid=(N,),
        in_specs=[
            pl.BlockSpec((1, L, Cout), lambda n: (n, 0, 0)),
            pl.BlockSpec((9, Cout, C2), lambda n: (0, 0, 0)),
            pl.BlockSpec((HWp, C2), lambda n: (0, 0)),
        ],
        out_specs=pl.BlockSpec((1, HWp, C2), lambda n: (n, 0, 0)),
        out_shape=jax.ShapeDtypeStruct((N, HWp, C2), jnp.float32),
        compiler_params=pltpu.CompilerParams(
            dimension_semantics=("parallel",)),
        cost_estimate=pl.CostEstimate(flops=flops2,
                                      transcendentals=N * HWp * C2,
                                      bytes_accessed=bytes2),
    )(y1_slab, w2s, bias_tab)

    # ---- layout glue: drop pad columns, PixelShuffle(8), back to NCHW -------
    r = 8
    t = out.reshape(N, H, Wp, C2)[:, :, 1:W + 1, :]              # (N, H, W, 64)
    y = t.reshape(N, H, W, r, r).transpose(0, 1, 3, 2, 4)
    return y.reshape(N, 1, r * H, r * W)


# ----------------------------------------------------------------------------
# Pure-JAX reference mirroring the PyTorch forward (training-mode BN, f32)
# ----------------------------------------------------------------------------
def ref_forward(x_nchw, w1, b1, gamma, beta, w2, b2, eps=1e-5):
    x = jnp.transpose(x_nchw, (0, 2, 3, 1))
    dn = ('NHWC', 'HWIO', 'NHWC')
    y = lax.conv_general_dilated(x, w1, (1, 1), 'SAME', dimension_numbers=dn) + b1
    mean = y.mean(axis=(0, 1, 2))
    var = ((y - mean) ** 2).mean(axis=(0, 1, 2))
    y = (y - mean) * lax.rsqrt(var + eps) * gamma + beta
    y = lax.conv_general_dilated(y, w2, (1, 1), 'SAME', dimension_numbers=dn) + b2
    y = jnp.tanh(y)
    N, H, W, _ = y.shape
    y = y.reshape(N, H, W, 8, 8).transpose(0, 1, 3, 2, 4)
    return y.reshape(N, 1, 8 * H, 8 * W)


if __name__ == "__main__":
    N, Cin, Cout, H, W = 2, 4, 8, 16, 16
    C2 = 64

    key = jax.random.PRNGKey(0)
    ks = jax.random.split(key, 7)
    x = jax.random.normal(ks[0], (N, Cin, H, W), jnp.float32)            # NCHW
    w1 = 0.1 * jax.random.normal(ks[1], (3, 3, Cin, Cout), jnp.float32)  # HWIO
    b1 = 0.1 * jax.random.normal(ks[2], (Cout,), jnp.float32)
    gamma = 1.0 + 0.1 * jax.random.normal(ks[3], (Cout,), jnp.float32)
    beta = 0.1 * jax.random.normal(ks[4], (Cout,), jnp.float32)
    w2 = 0.1 * jax.random.normal(ks[5], (3, 3, Cout, C2), jnp.float32)   # HWIO
    b2 = 0.1 * jax.random.normal(ks[6], (C2,), jnp.float32)

    fwd = jax.jit(location_head_forward)
    y = jax.block_until_ready(fwd(x, w1, b1, gamma, beta, w2, b2))
    assert y.shape == (N, 1, 8 * H, 8 * W)

    y_ref = ref_forward(x, w1, b1, gamma, beta, w2, b2)
    # Tolerance sized for bf16 MXU operands + bf16 intermediate slab (all
    # accumulation and the BN shift/bias path stay in f32); observed
    # worst-element error is ~1e-2 at these magnitudes.
    np.testing.assert_allclose(np.asarray(y), np.asarray(y_ref),
                               rtol=2.5e-2, atol=2.5e-2)

    print("KERNEL_OK")
</pallas_src>

<mosaic_0001>
module attributes {stable_mosaic.version = 11 : i64} {
  func.func @conv1_stats_kernel(%arg0: i32, %arg1: memref<1x352x4xbf16, #tpu.memory_space<vmem>>, %arg2: memref<9x4x8xbf16, #tpu.memory_space<vmem>>, %arg3: memref<288x1xf32, #tpu.memory_space<vmem>>, %arg4: memref<1x352x8xbf16, #tpu.memory_space<vmem>>, %arg5: memref<1x1x8xf32, #tpu.memory_space<vmem>>, %arg6: memref<1x1x8xf32, #tpu.memory_space<vmem>>) attributes {dimension_semantics = [#tpu.dimension_semantics<parallel>], iteration_bounds = array<i64: 2>, scalar_prefetch = 0 : i64, scratch_operands = 0 : i64, tpu.core_type = #tpu.core_type<tc>, window_params = [{transform_indices = @transform_0, window_bounds = array<i64: 1, 352, 4>}, {pipeline_mode = #tpu.pipeline_mode<synchronous>, transform_indices = @transform_1, window_bounds = array<i64: 9, 4, 8>}, {pipeline_mode = #tpu.pipeline_mode<synchronous>, transform_indices = @transform_2, window_bounds = array<i64: 288, 1>}, {transform_indices = @transform_3, window_bounds = array<i64: 1, 352, 8>}, {transform_indices = @transform_4, window_bounds = array<i64: 1, 1, 8>}, {transform_indices = @transform_5, window_bounds = array<i64: 1, 1, 8>}]} {
    %c0 = arith.constant 0 : index
    %c13 = arith.constant 13 : index
    %c0_0 = arith.constant 0 : index
    %0 = vector.load %arg1[%c0, %c13, %c0_0] : memref<1x352x4xbf16, #tpu.memory_space<vmem>>, vector<1x288x4xbf16>
    %1 = vector.shape_cast %0 : vector<1x288x4xbf16> to vector<288x4xbf16>
    %c0_1 = arith.constant 0 : index
    %c0_2 = arith.constant 0 : index
    %c0_3 = arith.constant 0 : index
    %2 = vector.load %arg2[%c0_1, %c0_2, %c0_3] : memref<9x4x8xbf16, #tpu.memory_space<vmem>>, vector<1x4x8xbf16>
    %3 = vector.shape_cast %2 : vector<1x4x8xbf16> to vector<4x8xbf16>
    %cst = arith.constant dense<0.000000e+00> : vector<288x8xf32>
    %4 = tpu.matmul %1, %3, %cst {dimension_numbers = #tpu.dot_dimension_numbers<[1], [0], [0], [1], [0, 0, 1, 1], [], []>} : vector<288x4xbf16>, vector<4x8xbf16>, vector<288x8xf32> -> vector<288x8xf32>
    %c0_4 = arith.constant 0 : index
    %c14 = arith.constant 14 : index
    %c0_5 = arith.constant 0 : index
    %5 = vector.load %arg1[%c0_4, %c14, %c0_5] : memref<1x352x4xbf16, #tpu.memory_space<vmem>>, vector<1x288x4xbf16>
    %6 = vector.shape_cast %5 : vector<1x288x4xbf16> to vector<288x4xbf16>
    %c1 = arith.constant 1 : index
    %c0_6 = arith.constant 0 : index
    %c0_7 = arith.constant 0 : index
    %7 = vector.load %arg2[%c1, %c0_6, %c0_7] : memref<9x4x8xbf16, #tpu.memory_space<vmem>>, vector<1x4x8xbf16>
    %8 = vector.shape_cast %7 : vector<1x4x8xbf16> to vector<4x8xbf16>
    %cst_8 = arith.constant dense<0.000000e+00> : vector<288x8xf32>
    %9 = tpu.matmul %6, %8, %cst_8 {dimension_numbers = #tpu.dot_dimension_numbers<[1], [0], [0], [1], [0, 0, 1, 1], [], []>} : vector<288x4xbf16>, vector<4x8xbf16>, vector<288x8xf32> -> vector<288x8xf32>
    %10 = arith.addf %4, %9 : vector<288x8xf32>
    %c0_9 = arith.constant 0 : index
    %c15 = arith.constant 15 : index
    %c0_10 = arith.constant 0 : index
    %11 = vector.load %arg1[%c0_9, %c15, %c0_10] : memref<1x352x4xbf16, #tpu.memory_space<vmem>>, vector<1x288x4xbf16>
    %12 = vector.shape_cast %11 : vector<1x288x4xbf16> to vector<288x4xbf16>
    %c2 = arith.constant 2 : index
    %c0_11 = arith.constant 0 : index
    %c0_12 = arith.constant 0 : index
    %13 = vector.load %arg2[%c2, %c0_11, %c0_12] : memref<9x4x8xbf16, #tpu.memory_space<vmem>>, vector<1x4x8xbf16>
    %14 = vector.shape_cast %13 : vector<1x4x8xbf16> to vector<4x8xbf16>
    %cst_13 = arith.constant dense<0.000000e+00> : vector<288x8xf32>
    %15 = tpu.matmul %12, %14, %cst_13 {dimension_numbers = #tpu.dot_dimension_numbers<[1], [0], [0], [1], [0, 0, 1, 1], [], []>} : vector<288x4xbf16>, vector<4x8xbf16>, vector<288x8xf32> -> vector<288x8xf32>
    %16 = arith.addf %10, %15 : vector<288x8xf32>
    %c0_14 = arith.constant 0 : index
    %c31 = arith.constant 31 : index
    %c0_15 = arith.constant 0 : index
    %17 = vector.load %arg1[%c0_14, %c31, %c0_15] : memref<1x352x4xbf16, #tpu.memory_space<vmem>>, vector<1x288x4xbf16>
    %18 = vector.shape_cast %17 : vector<1x288x4xbf16> to vector<288x4xbf16>
    %c3 = arith.constant 3 : index
    %c0_16 = arith.constant 0 : index
    %c0_17 = arith.constant 0 : index
    %19 = vector.load %arg2[%c3, %c0_16, %c0_17] : memref<9x4x8xbf16, #tpu.memory_space<vmem>>, vector<1x4x8xbf16>
    %20 = vector.shape_cast %19 : vector<1x4x8xbf16> to vector<4x8xbf16>
    %cst_18 = arith.constant dense<0.000000e+00> : vector<288x8xf32>
    %21 = tpu.matmul %18, %20, %cst_18 {dimension_numbers = #tpu.dot_dimension_numbers<[1], [0], [0], [1], [0, 0, 1, 1], [], []>} : vector<288x4xbf16>, vector<4x8xbf16>, vector<288x8xf32> -> vector<288x8xf32>
    %22 = arith.addf %16, %21 : vector<288x8xf32>
    %c0_19 = arith.constant 0 : index
    %c32 = arith.constant 32 : index
    %c0_20 = arith.constant 0 : index
    %23 = vector.load %arg1[%c0_19, %c32, %c0_20] : memref<1x352x4xbf16, #tpu.memory_space<vmem>>, vector<1x288x4xbf16>
    %24 = vector.shape_cast %23 : vector<1x288x4xbf16> to vector<288x4xbf16>
    %c4 = arith.constant 4 : index
    %c0_21 = arith.constant 0 : index
    %c0_22 = arith.constant 0 : index
    %25 = vector.load %arg2[%c4, %c0_21, %c0_22] : memref<9x4x8xbf16, #tpu.memory_space<vmem>>, vector<1x4x8xbf16>
    %26 = vector.shape_cast %25 : vector<1x4x8xbf16> to vector<4x8xbf16>
    %cst_23 = arith.constant dense<0.000000e+00> : vector<288x8xf32>
    %27 = tpu.matmul %24, %26, %cst_23 {dimension_numbers = #tpu.dot_dimension_numbers<[1], [0], [0], [1], [0, 0, 1, 1], [], []>} : vector<288x4xbf16>, vector<4x8xbf16>, vector<288x8xf32> -> vector<288x8xf32>
    %28 = arith.addf %22, %27 : vector<288x8xf32>
    %c0_24 = arith.constant 0 : index
    %c33 = arith.constant 33 : index
    %c0_25 = arith.constant 0 : index
    %29 = vector.load %arg1[%c0_24, %c33, %c0_25] : memref<1x352x4xbf16, #tpu.memory_space<vmem>>, vector<1x288x4xbf16>
    %30 = vector.shape_cast %29 : vector<1x288x4xbf16> to vector<288x4xbf16>
    %c5 = arith.constant 5 : index
    %c0_26 = arith.constant 0 : index
    %c0_27 = arith.constant 0 : index
    %31 = vector.load %arg2[%c5, %c0_26, %c0_27] : memref<9x4x8xbf16, #tpu.memory_space<vmem>>, vector<1x4x8xbf16>
    %32 = vector.shape_cast %31 : vector<1x4x8xbf16> to vector<4x8xbf16>
    %cst_28 = arith.constant dense<0.000000e+00> : vector<288x8xf32>
    %33 = tpu.matmul %30, %32, %cst_28 {dimension_numbers = #tpu.dot_dimension_numbers<[1], [0], [0], [1], [0, 0, 1, 1], [], []>} : vector<288x4xbf16>, vector<4x8xbf16>, vector<288x8xf32> -> vector<288x8xf32>
    %34 = arith.addf %28, %33 : vector<288x8xf32>
    %c0_29 = arith.constant 0 : index
    %c49 = arith.constant 49 : index
    %c0_30 = arith.constant 0 : index
    %35 = vector.load %arg1[%c0_29, %c49, %c0_30] : memref<1x352x4xbf16, #tpu.memory_space<vmem>>, vector<1x288x4xbf16>
    %36 = vector.shape_cast %35 : vector<1x288x4xbf16> to vector<288x4xbf16>
    %c6 = arith.constant 6 : index
    %c0_31 = arith.constant 0 : index
    %c0_32 = arith.constant 0 : index
    %37 = vector.load %arg2[%c6, %c0_31, %c0_32] : memref<9x4x8xbf16, #tpu.memory_space<vmem>>, vector<1x4x8xbf16>
    %38 = vector.shape_cast %37 : vector<1x4x8xbf16> to vector<4x8xbf16>
    %cst_33 = arith.constant dense<0.000000e+00> : vector<288x8xf32>
    %39 = tpu.matmul %36, %38, %cst_33 {dimension_numbers = #tpu.dot_dimension_numbers<[1], [0], [0], [1], [0, 0, 1, 1], [], []>} : vector<288x4xbf16>, vector<4x8xbf16>, vector<288x8xf32> -> vector<288x8xf32>
    %40 = arith.addf %34, %39 : vector<288x8xf32>
    %c0_34 = arith.constant 0 : index
    %c50 = arith.constant 50 : index
    %c0_35 = arith.constant 0 : index
    %41 = vector.load %arg1[%c0_34, %c50, %c0_35] : memref<1x352x4xbf16, #tpu.memory_space<vmem>>, vector<1x288x4xbf16>
    %42 = vector.shape_cast %41 : vector<1x288x4xbf16> to vector<288x4xbf16>
    %c7 = arith.constant 7 : index
    %c0_36 = arith.constant 0 : index
    %c0_37 = arith.constant 0 : index
    %43 = vector.load %arg2[%c7, %c0_36, %c0_37] : memref<9x4x8xbf16, #tpu.memory_space<vmem>>, vector<1x4x8xbf16>
    %44 = vector.shape_cast %43 : vector<1x4x8xbf16> to vector<4x8xbf16>
    %cst_38 = arith.constant dense<0.000000e+00> : vector<288x8xf32>
    %45 = tpu.matmul %42, %44, %cst_38 {dimension_numbers = #tpu.dot_dimension_numbers<[1], [0], [0], [1], [0, 0, 1, 1], [], []>} : vector<288x4xbf16>, vector<4x8xbf16>, vector<288x8xf32> -> vector<288x8xf32>
    %46 = arith.addf %40, %45 : vector<288x8xf32>
    %c0_39 = arith.constant 0 : index
    %c51 = arith.constant 51 : index
    %c0_40 = arith.constant 0 : index
    %47 = vector.load %arg1[%c0_39, %c51, %c0_40] : memref<1x352x4xbf16, #tpu.memory_space<vmem>>, vector<1x288x4xbf16>
    %48 = vector.shape_cast %47 : vector<1x288x4xbf16> to vector<288x4xbf16>
    %c8 = arith.constant 8 : index
    %c0_41 = arith.constant 0 : index
    %c0_42 = arith.constant 0 : index
    %49 = vector.load %arg2[%c8, %c0_41, %c0_42] : memref<9x4x8xbf16, #tpu.memory_space<vmem>>, vector<1x4x8xbf16>
    %50 = vector.shape_cast %49 : vector<1x4x8xbf16> to vector<4x8xbf16>
    %cst_43 = arith.constant dense<0.000000e+00> : vector<288x8xf32>
    %51 = tpu.matmul %48, %50, %cst_43 {dimension_numbers = #tpu.dot_dimension_numbers<[1], [0], [0], [1], [0, 0, 1, 1], [], []>} : vector<288x4xbf16>, vector<4x8xbf16>, vector<288x8xf32> -> vector<288x8xf32>
    %52 = arith.addf %46, %51 : vector<288x8xf32>
    %c0_44 = arith.constant 0 : index
    %c0_45 = arith.constant 0 : index
    %53 = vector.load %arg3[%c0_44, %c0_45] : memref<288x1xf32, #tpu.memory_space<vmem>>, vector<288x1xf32>
    %54 = vector.broadcast %53 : vector<288x1xf32> to vector<288x8xf32>
    %55 = arith.mulf %52, %54 : vector<288x8xf32>
    %cst_46 = arith.constant dense<0.000000e+00> : vector<8xf32>
    %56 = vector.multi_reduction <add>, %55, %cst_46 [0] : vector<288x8xf32> to vector<8xf32>
    %57 = vector.shape_cast %56 : vector<8xf32> to vector<1x8xf32>
    %c0_47 = arith.constant 0 : index
    %c0_48 = arith.constant 0 : index
    %c0_49 = arith.constant 0 : index
    %58 = vector.load %arg5[%c0_47, %c0_48, %c0_49] : memref<1x1x8xf32, #tpu.memory_space<vmem>>, vector<1x1x8xf32>
    %59 = vector.shape_cast %58 : vector<1x1x8xf32> to vector<1x8xf32>
    %60 = vector.shape_cast %57 : vector<1x8xf32> to vector<1x1x8xf32>
    tpu.vector_store %arg5[%c0_47, %c0_48, %c0_49], %60 {strides = array<i32>} : memref<1x1x8xf32, #tpu.memory_space<vmem>>, vector<1x1x8xf32>,
    %61 = arith.mulf %55, %55 : vector<288x8xf32>
    %cst_50 = arith.constant dense<0.000000e+00> : vector<8xf32>
    %62 = vector.multi_reduction <add>, %61, %cst_50 [0] : vector<288x8xf32> to vector<8xf32>
    %63 = vector.shape_cast %62 : vector<8xf32> to vector<1x8xf32>
    %c0_51 = arith.constant 0 : index
    %c0_52 = arith.constant 0 : index
    %c0_53 = arith.constant 0 : index
    %64 = vector.load %arg6[%c0_51, %c0_52, %c0_53] : memref<1x1x8xf32, #tpu.memory_space<vmem>>, vector<1x1x8xf32>
    %65 = vector.shape_cast %64 : vector<1x1x8xf32> to vector<1x8xf32>
    %66 = vector.shape_cast %63 : vector<1x8xf32> to vector<1x1x8xf32>
    tpu.vector_store %arg6[%c0_51, %c0_52, %c0_53], %66 {strides = array<i32>} : memref<1x1x8xf32, #tpu.memory_space<vmem>>, vector<1x1x8xf32>,
    %cst_54 = arith.constant 0.000000e+00 : bf16
    %67 = vector.broadcast %cst_54 : bf16 to vector<32x8xbf16>
    %c0_55 = arith.constant 0 : index
    %c0_56 = arith.constant 0 : index
    %c0_57 = arith.constant 0 : index
    %68 = vector.load %arg4[%c0_55, %c0_56, %c0_57] : memref<1x352x8xbf16, #tpu.memory_space<vmem>>, vector<1x32x8xbf16>
    %69 = vector.shape_cast %68 : vector<1x32x8xbf16> to vector<32x8xbf16>
    %70 = vector.shape_cast %67 : vector<32x8xbf16> to vector<1x32x8xbf16>
    tpu.vector_store %arg4[%c0_55, %c0_56, %c0_57], %70 {strides = array<i32>} : memref<1x352x8xbf16, #tpu.memory_space<vmem>>, vector<1x32x8xbf16>,
    %71 = arith.truncf %55 : vector<288x8xf32> to vector<288x8xbf16>
    %c0_58 = arith.constant 0 : index
    %c32_59 = arith.constant 32 : index
    %c0_60 = arith.constant 0 : index
    %72 = vector.load %arg4[%c0_58, %c32_59, %c0_60] : memref<1x352x8xbf16, #tpu.memory_space<vmem>>, vector<1x288x8xbf16>
    %73 = vector.shape_cast %72 : vector<1x288x8xbf16> to vector<288x8xbf16>
    %74 = vector.shape_cast %71 : vector<288x8xbf16> to vector<1x288x8xbf16>
    tpu.vector_store %arg4[%c0_58, %c32_59, %c0_60], %74 {strides = array<i32>} : memref<1x352x8xbf16, #tpu.memory_space<vmem>>, vector<1x288x8xbf16>,
    %c0_61 = arith.constant 0 : index
    %c320 = arith.constant 320 : index
    %c0_62 = arith.constant 0 : index
    %75 = vector.load %arg4[%c0_61, %c320, %c0_62] : memref<1x352x8xbf16, #tpu.memory_space<vmem>>, vector<1x32x8xbf16>
    %76 = vector.shape_cast %75 : vector<1x32x8xbf16> to vector<32x8xbf16>
    %77 = vector.shape_cast %67 : vector<32x8xbf16> to vector<1x32x8xbf16>
    tpu.vector_store %arg4[%c0_61, %c320, %c0_62], %77 {strides = array<i32>} : memref<1x352x8xbf16, #tpu.memory_space<vmem>>, vector<1x32x8xbf16>,
    return
  }
  func.func @transform_0(%arg0: i32) -> (i32, i32, i32) {
    %c0_i32 = arith.constant 0 : i32
    %c0_i32_0 = arith.constant 0 : i32
    %c0_i32_1 = arith.constant 0 : i32
    return %arg0, %c0_i32, %c0_i32_0 : i32, i32, i32
  }
  func.func @transform_1(%arg0: i32) -> (i32, i32, i32) {
    %c0_i32 = arith.constant 0 : i32
    %c0_i32_0 = arith.constant 0 : i32
    %c0_i32_1 = arith.constant 0 : i32
    %c0_i32_2 = arith.constant 0 : i32
    return %c0_i32, %c0_i32_0, %c0_i32_1 : i32, i32, i32
  }
  func.func @transform_2(%arg0: i32) -> (i32, i32) {
    %c0_i32 = arith.constant 0 : i32
    %c0_i32_0 = arith.constant 0 : i32
    %c0_i32_1 = arith.constant 0 : i32
    return %c0_i32, %c0_i32_0 : i32, i32
  }
  func.func @transform_3(%arg0: i32) -> (i32, i32, i32) {
    %c0_i32 = arith.constant 0 : i32
    %c0_i32_0 = arith.constant 0 : i32
    %c0_i32_1 = arith.constant 0 : i32
    return %arg0, %c0_i32, %c0_i32_0 : i32, i32, i32
  }
  func.func @transform_4(%arg0: i32) -> (i32, i32, i32) {
    %c0_i32 = arith.constant 0 : i32
    %c0_i32_0 = arith.constant 0 : i32
    %c0_i32_1 = arith.constant 0 : i32
    return %arg0, %c0_i32, %c0_i32_0 : i32, i32, i32
  }
  func.func @transform_5(%arg0: i32) -> (i32, i32, i32) {
    %c0_i32 = arith.constant 0 : i32
    %c0_i32_0 = arith.constant 0 : i32
    %c0_i32_1 = arith.constant 0 : i32
    return %arg0, %c0_i32, %c0_i32_0 : i32, i32, i32
  }
}

module attributes {stable_mosaic.version = 11 : i64} {
  func.func @bn_conv2_tanh_kernel(%arg0: i32, %arg1: memref<1x352x8xbf16, #tpu.memory_space<vmem>>, %arg2: memref<9x8x64xbf16, #tpu.memory_space<vmem>>, %arg3: memref<288x64xf32, #tpu.memory_space<vmem>>, %arg4: memref<1x288x64xf32, #tpu.memory_space<vmem>>) attributes {dimension_semantics = [#tpu.dimension_semantics<parallel>], iteration_bounds = array<i64: 2>, scalar_prefetch = 0 : i64, scratch_operands = 0 : i64, tpu.core_type = #tpu.core_type<tc>, window_params = [{transform_indices = @transform_0, window_bounds = array<i64: 1, 352, 8>}, {pipeline_mode = #tpu.pipeline_mode<synchronous>, transform_indices = @transform_1, window_bounds = array<i64: 9, 8, 64>}, {pipeline_mode = #tpu.pipeline_mode<synchronous>, transform_indices = @transform_2, window_bounds = array<i64: 288, 64>}, {transform_indices = @transform_3, window_bounds = array<i64: 1, 288, 64>}]} {
    %c0 = arith.constant 0 : index
    %c0_0 = arith.constant 0 : index
    %0 = vector.load %arg3[%c0, %c0_0] : memref<288x64xf32, #tpu.memory_space<vmem>>, vector<288x64xf32>
    %c0_1 = arith.constant 0 : index
    %c13 = arith.constant 13 : index
    %c0_2 = arith.constant 0 : index
    %1 = vector.load %arg1[%c0_1, %c13, %c0_2] : memref<1x352x8xbf16, #tpu.memory_space<vmem>>, vector<1x288x8xbf16>
    %2 = vector.shape_cast %1 : vector<1x288x8xbf16> to vector<288x8xbf16>
    %c0_3 = arith.constant 0 : index
    %c0_4 = arith.constant 0 : index
    %c0_5 = arith.constant 0 : index
    %3 = vector.load %arg2[%c0_3, %c0_4, %c0_5] : memref<9x8x64xbf16, #tpu.memory_space<vmem>>, vector<1x8x64xbf16>
    %4 = vector.shape_cast %3 : vector<1x8x64xbf16> to vector<8x64xbf16>
    %cst = arith.constant dense<0.000000e+00> : vector<288x64xf32>
    %5 = tpu.matmul %2, %4, %cst {dimension_numbers = #tpu.dot_dimension_numbers<[1], [0], [0], [1], [0, 0, 1, 1], [], []>} : vector<288x8xbf16>, vector<8x64xbf16>, vector<288x64xf32> -> vector<288x64xf32>
    %6 = arith.addf %0, %5 : vector<288x64xf32>
    %c0_6 = arith.constant 0 : index
    %c14 = arith.constant 14 : index
    %c0_7 = arith.constant 0 : index
    %7 = vector.load %arg1[%c0_6, %c14, %c0_7] : memref<1x352x8xbf16, #tpu.memory_space<vmem>>, vector<1x288x8xbf16>
    %8 = vector.shape_cast %7 : vector<1x288x8xbf16> to vector<288x8xbf16>
    %c1 = arith.constant 1 : index
    %c0_8 = arith.constant 0 : index
    %c0_9 = arith.constant 0 : index
    %9 = vector.load %arg2[%c1, %c0_8, %c0_9] : memref<9x8x64xbf16, #tpu.memory_space<vmem>>, vector<1x8x64xbf16>
    %10 = vector.shape_cast %9 : vector<1x8x64xbf16> to vector<8x64xbf16>
    %cst_10 = arith.constant dense<0.000000e+00> : vector<288x64xf32>
    %11 = tpu.matmul %8, %10, %cst_10 {dimension_numbers = #tpu.dot_dimension_numbers<[1], [0], [0], [1], [0, 0, 1, 1], [], []>} : vector<288x8xbf16>, vector<8x64xbf16>, vector<288x64xf32> -> vector<288x64xf32>
    %12 = arith.addf %6, %11 : vector<288x64xf32>
    %c0_11 = arith.constant 0 : index
    %c15 = arith.constant 15 : index
    %c0_12 = arith.constant 0 : index
    %13 = vector.load %arg1[%c0_11, %c15, %c0_12] : memref<1x352x8xbf16, #tpu.memory_space<vmem>>, vector<1x288x8xbf16>
    %14 = vector.shape_cast %13 : vector<1x288x8xbf16> to vector<288x8xbf16>
    %c2 = arith.constant 2 : index
    %c0_13 = arith.constant 0 : index
    %c0_14 = arith.constant 0 : index
    %15 = vector.load %arg2[%c2, %c0_13, %c0_14] : memref<9x8x64xbf16, #tpu.memory_space<vmem>>, vector<1x8x64xbf16>
    %16 = vector.shape_cast %15 : vector<1x8x64xbf16> to vector<8x64xbf16>
    %cst_15 = arith.constant dense<0.000000e+00> : vector<288x64xf32>
    %17 = tpu.matmul %14, %16, %cst_15 {dimension_numbers = #tpu.dot_dimension_numbers<[1], [0], [0], [1], [0, 0, 1, 1], [], []>} : vector<288x8xbf16>, vector<8x64xbf16>, vector<288x64xf32> -> vector<288x64xf32>
    %18 = arith.addf %12, %17 : vector<288x64xf32>
    %c0_16 = arith.constant 0 : index
    %c31 = arith.constant 31 : index
    %c0_17 = arith.constant 0 : index
    %19 = vector.load %arg1[%c0_16, %c31, %c0_17] : memref<1x352x8xbf16, #tpu.memory_space<vmem>>, vector<1x288x8xbf16>
    %20 = vector.shape_cast %19 : vector<1x288x8xbf16> to vector<288x8xbf16>
    %c3 = arith.constant 3 : index
    %c0_18 = arith.constant 0 : index
    %c0_19 = arith.constant 0 : index
    %21 = vector.load %arg2[%c3, %c0_18, %c0_19] : memref<9x8x64xbf16, #tpu.memory_space<vmem>>, vector<1x8x64xbf16>
    %22 = vector.shape_cast %21 : vector<1x8x64xbf16> to vector<8x64xbf16>
    %cst_20 = arith.constant dense<0.000000e+00> : vector<288x64xf32>
    %23 = tpu.matmul %20, %22, %cst_20 {dimension_numbers = #tpu.dot_dimension_numbers<[1], [0], [0], [1], [0, 0, 1, 1], [], []>} : vector<288x8xbf16>, vector<8x64xbf16>, vector<288x64xf32> -> vector<288x64xf32>
    %24 = arith.addf %18, %23 : vector<288x64xf32>
    %c0_21 = arith.constant 0 : index
    %c32 = arith.constant 32 : index
    %c0_22 = arith.constant 0 : index
    %25 = vector.load %arg1[%c0_21, %c32, %c0_22] : memref<1x352x8xbf16, #tpu.memory_space<vmem>>, vector<1x288x8xbf16>
    %26 = vector.shape_cast %25 : vector<1x288x8xbf16> to vector<288x8xbf16>
    %c4 = arith.constant 4 : index
    %c0_23 = arith.constant 0 : index
    %c0_24 = arith.constant 0 : index
    %27 = vector.load %arg2[%c4, %c0_23, %c0_24] : memref<9x8x64xbf16, #tpu.memory_space<vmem>>, vector<1x8x64xbf16>
    %28 = vector.shape_cast %27 : vector<1x8x64xbf16> to vector<8x64xbf16>
    %cst_25 = arith.constant dense<0.000000e+00> : vector<288x64xf32>
    %29 = tpu.matmul %26, %28, %cst_25 {dimension_numbers = #tpu.dot_dimension_numbers<[1], [0], [0], [1], [0, 0, 1, 1], [], []>} : vector<288x8xbf16>, vector<8x64xbf16>, vector<288x64xf32> -> vector<288x64xf32>
    %30 = arith.addf %24, %29 : vector<288x64xf32>
    %c0_26 = arith.constant 0 : index
    %c33 = arith.constant 33 : index
    %c0_27 = arith.constant 0 : index
    %31 = vector.load %arg1[%c0_26, %c33, %c0_27] : memref<1x352x8xbf16, #tpu.memory_space<vmem>>, vector<1x288x8xbf16>
    %32 = vector.shape_cast %31 : vector<1x288x8xbf16> to vector<288x8xbf16>
    %c5 = arith.constant 5 : index
    %c0_28 = arith.constant 0 : index
    %c0_29 = arith.constant 0 : index
    %33 = vector.load %arg2[%c5, %c0_28, %c0_29] : memref<9x8x64xbf16, #tpu.memory_space<vmem>>, vector<1x8x64xbf16>
    %34 = vector.shape_cast %33 : vector<1x8x64xbf16> to vector<8x64xbf16>
    %cst_30 = arith.constant dense<0.000000e+00> : vector<288x64xf32>
    %35 = tpu.matmul %32, %34, %cst_30 {dimension_numbers = #tpu.dot_dimension_numbers<[1], [0], [0], [1], [0, 0, 1, 1], [], []>} : vector<288x8xbf16>, vector<8x64xbf16>, vector<288x64xf32> -> vector<288x64xf32>
    %36 = arith.addf %30, %35 : vector<288x64xf32>
    %c0_31 = arith.constant 0 : index
    %c49 = arith.constant 49 : index
    %c0_32 = arith.constant 0 : index
    %37 = vector.load %arg1[%c0_31, %c49, %c0_32] : memref<1x352x8xbf16, #tpu.memory_space<vmem>>, vector<1x288x8xbf16>
    %38 = vector.shape_cast %37 : vector<1x288x8xbf16> to vector<288x8xbf16>
    %c6 = arith.constant 6 : index
    %c0_33 = arith.constant 0 : index
    %c0_34 = arith.constant 0 : index
    %39 = vector.load %arg2[%c6, %c0_33, %c0_34] : memref<9x8x64xbf16, #tpu.memory_space<vmem>>, vector<1x8x64xbf16>
    %40 = vector.shape_cast %39 : vector<1x8x64xbf16> to vector<8x64xbf16>
    %cst_35 = arith.constant dense<0.000000e+00> : vector<288x64xf32>
    %41 = tpu.matmul %38, %40, %cst_35 {dimension_numbers = #tpu.dot_dimension_numbers<[1], [0], [0], [1], [0, 0, 1, 1], [], []>} : vector<288x8xbf16>, vector<8x64xbf16>, vector<288x64xf32> -> vector<288x64xf32>
    %42 = arith.addf %36, %41 : vector<288x64xf32>
    %c0_36 = arith.constant 0 : index
    %c50 = arith.constant 50 : index
    %c0_37 = arith.constant 0 : index
    %43 = vector.load %arg1[%c0_36, %c50, %c0_37] : memref<1x352x8xbf16, #tpu.memory_space<vmem>>, vector<1x288x8xbf16>
    %44 = vector.shape_cast %43 : vector<1x288x8xbf16> to vector<288x8xbf16>
    %c7 = arith.constant 7 : index
    %c0_38 = arith.constant 0 : index
    %c0_39 = arith.constant 0 : index
    %45 = vector.load %arg2[%c7, %c0_38, %c0_39] : memref<9x8x64xbf16, #tpu.memory_space<vmem>>, vector<1x8x64xbf16>
    %46 = vector.shape_cast %45 : vector<1x8x64xbf16> to vector<8x64xbf16>
    %cst_40 = arith.constant dense<0.000000e+00> : vector<288x64xf32>
    %47 = tpu.matmul %44, %46, %cst_40 {dimension_numbers = #tpu.dot_dimension_numbers<[1], [0], [0], [1], [0, 0, 1, 1], [], []>} : vector<288x8xbf16>, vector<8x64xbf16>, vector<288x64xf32> -> vector<288x64xf32>
    %48 = arith.addf %42, %47 : vector<288x64xf32>
    %c0_41 = arith.constant 0 : index
    %c51 = arith.constant 51 : index
    %c0_42 = arith.constant 0 : index
    %49 = vector.load %arg1[%c0_41, %c51, %c0_42] : memref<1x352x8xbf16, #tpu.memory_space<vmem>>, vector<1x288x8xbf16>
    %50 = vector.shape_cast %49 : vector<1x288x8xbf16> to vector<288x8xbf16>
    %c8 = arith.constant 8 : index
    %c0_43 = arith.constant 0 : index
    %c0_44 = arith.constant 0 : index
    %51 = vector.load %arg2[%c8, %c0_43, %c0_44] : memref<9x8x64xbf16, #tpu.memory_space<vmem>>, vector<1x8x64xbf16>
    %52 = vector.shape_cast %51 : vector<1x8x64xbf16> to vector<8x64xbf16>
    %cst_45 = arith.constant dense<0.000000e+00> : vector<288x64xf32>
    %53 = tpu.matmul %50, %52, %cst_45 {dimension_numbers = #tpu.dot_dimension_numbers<[1], [0], [0], [1], [0, 0, 1, 1], [], []>} : vector<288x8xbf16>, vector<8x64xbf16>, vector<288x64xf32> -> vector<288x64xf32>
    %54 = arith.addf %48, %53 : vector<288x64xf32>
    %55 = math.tanh %54 : vector<288x64xf32>
    %c0_46 = arith.constant 0 : index
    %c0_47 = arith.constant 0 : index
    %c0_48 = arith.constant 0 : index
    %56 = vector.load %arg4[%c0_46, %c0_47, %c0_48] : memref<1x288x64xf32, #tpu.memory_space<vmem>>, vector<1x288x64xf32>
    %57 = vector.shape_cast %56 : vector<1x288x64xf32> to vector<288x64xf32>
    %58 = vector.shape_cast %55 : vector<288x64xf32> to vector<1x288x64xf32>
    tpu.vector_store %arg4[%c0_46, %c0_47, %c0_48], %58 {strides = array<i32>} : memref<1x288x64xf32, #tpu.memory_space<vmem>>, vector<1x288x64xf32>,
    return
  }
  func.func @transform_0(%arg0: i32) -> (i32, i32, i32) {
    %c0_i32 = arith.constant 0 : i32
    %c0_i32_0 = arith.constant 0 : i32
    %c0_i32_1 = arith.constant 0 : i32
    return %arg0, %c0_i32, %c0_i32_0 : i32, i32, i32
  }
  func.func @transform_1(%arg0: i32) -> (i32, i32, i32) {
    %c0_i32 = arith.constant 0 : i32
    %c0_i32_0 = arith.constant 0 : i32
    %c0_i32_1 = arith.constant 0 : i32
    %c0_i32_2 = arith.constant 0 : i32
    return %c0_i32, %c0_i32_0, %c0_i32_1 : i32, i32, i32
  }
  func.func @transform_2(%arg0: i32) -> (i32, i32) {
    %c0_i32 = arith.constant 0 : i32
    %c0_i32_0 = arith.constant 0 : i32
    %c0_i32_1 = arith.constant 0 : i32
    return %c0_i32, %c0_i32_0 : i32, i32
  }
  func.func @transform_3(%arg0: i32) -> (i32, i32, i32) {
    %c0_i32 = arith.constant 0 : i32
    %c0_i32_0 = arith.constant 0 : i32
    %c0_i32_1 = arith.constant 0 : i32
    return %arg0, %c0_i32, %c0_i32_0 : i32, i32, i32
  }
}

</mosaic_0001>

<bundles_post_ra>
// kernel: location_head_forward.3
= control target key start
LH: loop header
LB: loop body
LE: loop exit
PB: predicated region body
PF: predicated region fallthrough
CT: control target
= control target key end

     0   :  { %s5560_s12 = smov 0   ;;  %s7047_s0 = inlined_call_operand.vmem [shape: bf16[2,352,8], index: 0, kind: input, shape index: {}]   ;;  %s7048_s1 = inlined_call_operand.vmem [shape: bf16[9,8,64], index: 1, kind: input, shape index: {}]   ;;  %s7049_s2 = inlined_call_operand.vmem [shape: f32[288,64], index: 2, kind: input, shape index: {}]   ;;  %s7050_s3 = inlined_call_operand.vmem [shape: f32[2,288,64], index: 3, kind: output, shape index: {}]  }
   0x1 LB: > { %s4225_s13 = sadd.s32 4294967295, %s5538_s12   ;;  %p4229_p0 = scmp.ge.s32.totalorder %s5538_s12, 1  ;;  %s5538_s12 = sphi %s5560_s12, %s13_s12  }
   0x2   : > { %p137_p1 = scmp.lt.s32.totalorder %s5538_s12, 3 }
   0x4   : > { %p138_p2 = pnand %p4229_p0, %p137_p1 }
   0x6   : > { %141 = sbr.rel (%p138_p2) target bundleno = 577 (0x241), region = 32 }
   0xd   : > { %vm565_vm0 = vcmask 1043456   ;;  %v4347_v0 = vld [vmem:[%s7048_s1 + $0x10] sm:$0xf]  ;;  %p161_p3 = scmp.lt.s32.totalorder %s4225_s13, 1  ;;  %v4384_v2 = vld [vmem:[%s7048_s1 + $0x14] sm:$0xf] }
   0xe   : > { %5345 = vmatprep.subr.msk.bf16.mxu0 %vm565_vm0, %v4347_v0  ;;  %v5573_v1 = vsel %vm565_vm0, %v4347_v0, 0  ;;  %v245_v3 = vld [vmem:[%s7048_s1] sm:$0xf]  ;;  %v4269_v5 = vld [vmem:[%s7048_s1 + $0x4] sm:$0xf]  ;;  %vm510_vm1 = vcmask 64512  }
   0xf   : > { %7125 = vst [vmem:[#allocation2_spill] sm:$0xff] %v5573_v1  ;;  %4826 = vmatpush3.bf16.msra.mxu0 %v5573_v1  ;;  %s7257_s13 = smov (!%p161_p3, %s4225_s13), 1  ;;  %5341 = vmatprep.subr.msk.bf16.mxu1 %vm565_vm0, %v245_v3  ;;  %v567_v4 = vsel %vm565_vm0, %v245_v3, 0  ;;  %v2656_v8 = vsel %vm565_vm0, %v4384_v2, 0  ;;  %v5622_v20 = vld [vmem:[%s7048_s1 + $0x18] sm:$0xf] }
  0x10   : > { %5347 = vmatprep.subr.msk.bf16.mxu0 %vm565_vm0, %v4384_v2  ;;  %4674 = vmatpush3.bf16.msra.mxu1 %v567_v4  ;;  %s5351_s22 = smul.u32 176, %s7257_s13  ;;  %vm339_vm2 = vsmask.f32 5376  ;;  %v881_v39 = vsel %vm565_vm0, %v4269_v5, 0  ;;  %v5664_v52 = vld [vmem:[%s7048_s1 + $0x8] sm:$0xf] }
  0x11   : > { %5342 = vmatprep.subr.msk.bf16.mxu1 %vm565_vm0, %v4269_v5  ;;  %vm2452_vm3 = vsmask.f32 7424  ;;  %vm788_vm4 = vcmask 1044480   ;;  %vm3427_vm5 = vcmask 1046528   ;;  %vm1102_vm6 = vsmask.f32 4352 }
  0x12   : > { %s5595_s25 = scalar_lea.vmem %s7047_s0, %s5351_s22  ;;  %vm3741_vm7 = vsmask.f32 6400  ;;  %s5352_s29 = smul.u32 288, %s7257_s13  ;;  %vm4133_vm8 = vcmask 523264  }
  0x13   : > { %v5598_v6 = vld [vmem:[%s5595_s25 + $0x10] sm:$0xf]  ;;  %v1460_v7 = vld [vmem:[%s5595_s25 + $0x14] sm:$0xf]  ;;  %v1461_v9 = vld [vmem:[%s5595_s25 + $0x18] sm:$0xf] }
  0x14   : > { %v1462_v10 = vld [vmem:[%s5595_s25 + $0x1c] sm:$0xf]  ;;  %v1463_v11 = vld [vmem:[%s5595_s25 + $0x20] sm:$0xf]  ;;  %v4348_v12 = vcombine.low %v5598_v6, %v1460_v7  ;;  %v5606_v13 = vcombine.low %v1460_v7, %v1461_v9  ;;  %v208_v16 = vld [vmem:[%s5595_s25 + $0x4] sm:$0xc]  ;;  %s6875_s5 = scalar_lea.vmem %s7050_s3, %s5352_s29 }
  0x15   : > { %v5608_v14 = vcombine.low %v1462_v10, %v1463_v11  ;;  %v4349_v15 = vcombine.low %v1461_v9, %v1462_v10  ;;  %v5612_v17 = vld [vmem:[%s5595_s25 + $0x8] sm:$0xf]  ;;  %v5617_v19 = vld [vmem:[%s5595_s25 + $0xc] sm:$0xff]   ;;  %v5626_v21 = vld [vmem:[%s5595_s25 + $0x14] sm:$0xff]  }
  0x16   : > { %4827 = vmatprep.mubr.msk.bf16.mxu0 %vm510_vm1, %v4348_v12  ;;  %v4232_v18 = vcombine.low %v208_v16, %v5612_v17  ;;  %v7082_v26 = vshrl.u32 %v5617_v19, 16  ;;  %v7080_v27 = vshll.u32 %v5617_v19, 16  ;;  %v1464_v28 = vld [vmem:[%s5595_s25 + $0x24] sm:$0xf]  ;;  %v358_v29 = vshrl.u32 %v5626_v21, 16  ;;  %v5645_v40 = vld [vmem:[%s5595_s25 + $0x1c] sm:$0xff]  }
  0x17   : > { %4828 = vmatmul.mubr.msk.bf16.vlgmr.msra.gmra.mrb[0].mxu0 %vm510_vm1, %v4349_v15  ;;  %v361_v30 = vshll.u32 %v5626_v21, 16  ;;  %v1465_v31 = vld [vmem:[%s5595_s25 + $0x28] sm:$0xf]  ;;  %v1466_v32 = vld [vmem:[%s5595_s25 + $0x2c] sm:$0xf]  ;;  %v4350_v36 = vcombine.low %v1463_v11, %v1464_v28  ;;  %v7079_v47 = vshrl.u32 %v5645_v40, 16 }
  0x18   : > { %4864 = vmatpush3.bf16.msra.mxu0 %v2656_v8  ;;  %v341_v22 = vshrl.u32 %v4232_v18, 16  ;;  %v344_v23 = vshll.u32 %v4232_v18, 16  ;;  %v351_v34 = vrot.slane %v7082_v26, 2  ;;  %v354_v35 = vrot.slane %v7080_v27, 3  ;;  %v5648_v41 = vld [vmem:[%s5595_s25 + $0x24] sm:$0xff]   ;;  %v5659_v51 = vld [vmem:[%s5595_s25 + $0x2c] sm:$0xff]  }
  0x19   : > { %5348 = vmatprep.subr.msk.bf16.mxu0 %vm565_vm0, %v5622_v20  ;;  %v360_v37 = vrot.slane %v358_v29, 2  ;;  %v363_v38 = vrot.slane %v361_v30, 3  ;;  %4831 = vmatprep.mubr.msk.bf16.mxu0 %vm510_vm1, %v4350_v36  ;;  %v5651_v43 = vcombine.low %v1464_v28, %v1465_v31  ;;  %v4351_v44 = vcombine.low %v1465_v31, %v1466_v32  ;;  %v1467_v45 = vld [vmem:[%s5595_s25 + $0x30] sm:$0xf]  ;;  %v1468_v50 = vld [vmem:[%s5595_s25 + $0x34] sm:$0xf] }
  0x1a   : > { %v343_v24 = vrot.slane %v341_v22, 2  ;;  %v346_v25 = vrot.slane %v344_v23, 3  ;;  %v355_v42 = vor.u32 %v354_v35, %v351_v34  ;;  %v7076_v48 = vshll.u32 %v5645_v40, 16  ;;  %v1469_v57 = vld [vmem:[%s5595_s25 + $0x38] sm:$0xf]  ;;  %v5685_v0 = vld [vmem:[%s5595_s25 + $0x3c] sm:$0xff]  }
  0x1b   : > { %v364_v46 = vor.u32 %v363_v38, %v360_v37  ;;  %v7073_v49 = vshrl.u32 %v5648_v41, 16  ;;  %v7071_v54 = vshll.u32 %v5648_v41, 16  ;;  %v5669_v55 = vcombine.low %v1466_v32, %v1467_v45  ;;  %v1470_v58 = vld [vmem:[%s5595_s25 + $0x3c] sm:$0xf]  ;;  %v5674_v59 = vld [vmem:[%s5595_s25 + $0x34] sm:$0xff]   ;;  %7126 = vst [vmem:[#allocation3_spill] sm:$0xff] %v5685_v0 }
  0x1c   : > { %v347_v33 = vor.u32 %v346_v25, %v343_v24  ;;  %v4352_v56 = vcombine.low %v1467_v45, %v1468_v50  ;;  %v369_v61 = vrot.slane %v7079_v47, 2  ;;  %v372_v62 = vrot.slane %v7076_v48, 3  ;;  %v1471_v15 = vld [vmem:[%s5595_s25 + $0x40] sm:$0xf]  ;;  %v1472_v16 = vld [vmem:[%s5595_s25 + $0x44] sm:$0xf] }
  0x1d   : > { %v365_v60 = vsel %vm339_vm2, %v355_v42, %v364_v46  ;;  %v378_v63 = vrot.slane %v7073_v49, 2  ;;  %v381_v2 = vrot.slane %v7071_v54, 3  ;;  %v5691_v3 = vcombine.low %v1468_v50, %v1469_v57  ;;  %v1473_v28 = vld [vmem:[%s5595_s25 + $0x48] sm:$0xf]  ;;  %v5724_v38 = vld [vmem:[%s5595_s25 + $0x4c] sm:$0xff]   ;;  %v5411_v49 = vld [vmem:[%s5595_s25 + $0x58] sm:$0xff]  }
  0x1e   : > { %v356_v53 = vsel %vm339_vm2, %v347_v33, %v355_v42  ;;  %v7070_v4 = vshrl.u32 %v5659_v51, 16  ;;  %v373_v5 = vor.u32 %v372_v62, %v369_v61  ;;  %v7067_v7 = vshll.u32 %v5659_v51, 16  ;;  %v5711_v31 = vld [vmem:[%s5595_s25 + $0x44] sm:$0xff]   ;;  %v1475_v45 = vld [vmem:[%s5595_s25 + $0x50] sm:$0xf] }
  0x1f   : > { %4832 = vmatmul.mubr.msk.bf16.gmra.mrb[4].mxu0 %vm510_vm1, %v4351_v44  ;;  %4675 = vmatprep.mubr.msk.bf16.mxu1 %vm510_vm1, %v356_v53  ;;  %v7063_v8 = vshrl.u32 %v5674_v59, 16  ;;  %v7061_v9 = vshll.u32 %v5674_v59, 16  ;;  %v382_v10 = vor.u32 %v381_v2, %v378_v63  ;;  %v4353_v11 = vcombine.low %v1469_v57, %v1470_v58  ;;  %v5394_v61 = vld [vmem:[%s5595_s25 + $0x10] sm:$0xff]   ;;  %v5395_v2 = vld [vmem:[%s5595_s25 + $0x18] sm:$0xff]   ;;  %v5413_v27 = vld [vmem:[%s5595_s25 + $0x68] sm:$0xff]  }
  0x20   : > { %4676 = vmatmul.mubr.msk.bf16.vlgmr.msra.gmra.mrb[0].mxu1 %vm510_vm1, %v365_v60  ;;  %4835 = vmatprep.mubr.msk.bf16.mxu0 %vm510_vm1, %v4352_v56  ;;  %v387_v12 = vrot.slane %v7070_v4, 2  ;;  %v7060_v18 = vshrl.u32 %v5685_v0, 16  ;;  %v1115_v22 = vrot.slane %v358_v29, 3  ;;  %v374_v23 = vsel %vm339_vm2, %v364_v46, %v373_v5  ;;  %v1477_v60 = vld [vmem:[%s5595_s25 + $0x58] sm:$0xf] }
  0x21   : > { %4712 = vmatpush3.bf16.msra.mxu1 %v881_v39  ;;  %v390_v24 = vrot.slane %v7067_v7, 3  ;;  %v396_v25 = vrot.slane %v7063_v8, 2  ;;  %4679 = vmatprep.mubr.msk.bf16.mxu1 %vm510_vm1, %v374_v23  ;;  %v399_v32 = vrot.slane %v7061_v9, 3  ;;  %v5716_v33 = vcombine.low %v1470_v58, %v1471_v15  ;;  %v1474_v39 = vld [vmem:[%s5595_s25 + $0x4c] sm:$0xf]  ;;  %v5404_v9 = vld [vmem:[%s5595_s25 + $0x40] sm:$0xff]  }
  0x22   : > { %5343 = vmatprep.subr.msk.bf16.mxu1 %vm565_vm0, %v5664_v52  ;;  %v4354_v29 = vcombine.low %v1471_v15, %v1472_v16  ;;  %v5718_v34 = vcombine.low %v1472_v16, %v1473_v28  ;;  %v1116_v35 = vrot.slane %v361_v30, 4  ;;  %v383_v36 = vsel %vm339_vm2, %v373_v5, %v382_v10  ;;  %v1476_v58 = vld [vmem:[%s5595_s25 + $0x54] sm:$0xf]  ;;  %v5838_v8 = vld [vmem:[%s5595_s25 + $0x7c] sm:$0xff]  }
  0x23   : > { %v391_v37 = vor.u32 %v390_v24, %v387_v12  ;;  %v405_v42 = vrot.slane %v7060_v18, 2  ;;  %v7059_v44 = vshll.u32 %v5685_v0, 16  ;;  %v7054_v46 = vshrl.u32 %v5711_v31, 16  ;;  %v5751_v15 = vld [vmem:[%s5595_s25 + $0x54] sm:$0xff]   ;;  %7130 = vst [vmem:[#allocation7_spill] sm:$0xff] %v5838_v8 }
  0x24   : > { %v7053_v50 = vshll.u32 %v5711_v31, 16  ;;  %v5736_v53 = vcombine.low %v1474_v39, %v1475_v45  ;;  %v400_v56 = vor.u32 %v399_v32, %v396_v25  ;;  %v5745_v62 = vcombine.low %v1476_v58, %v1477_v60 }
  0x25   : > { %v392_v30 = vsel %vm339_vm2, %v382_v10, %v391_v37  ;;  %v408_v57 = vrot.slane %v7059_v44, 3  ;;  %v7052_v63 = vshrl.u32 %v5724_v38, 16  ;;  %v4355_v5 = vcombine.low %v1473_v28, %v1474_v39  ;;  %v5761_v28 = vld [vmem:[%s5595_s25 + $0x5c] sm:$0xf] }
  0x26   : > { %v4356_v12 = vcombine.low %v1475_v45, %v1476_v58  ;;  %v5753_v16 = vor.u32 %v1116_v35, %v1115_v22  ;;  %v401_v23 = vsel %vm339_vm2, %v391_v37, %v400_v56  ;;  %v414_v24 = vrot.slane %v7054_v46, 2  ;;  %v5396_v37 = vld [vmem:[%s5595_s25 + $0x20] sm:$0xff]   ;;  %v5399_v58 = vld [vmem:[%s5595_s25 + $0x28] sm:$0xff]  }
  0x27   : > { %4836 = vmatmul.mubr.msk.bf16.gmra.mrb[8].mxu0 %vm510_vm1, %v4353_v11  ;;  %v409_v10 = vor.u32 %v408_v57, %v405_v42  ;;  %v7051_v11 = vshll.u32 %v5724_v38, 16  ;;  %v417_v25 = vrot.slane %v7053_v50, 3  ;;  %v423_v32 = vrot.slane %v7052_v63, 2 }
  0x28   : > { %4839 = vmatprep.mubr.msk.bf16.mxu0 %vm510_vm1, %v4354_v29  ;;  %4680 = vmatmul.mubr.msk.bf16.gmra.mrb[4].mxu1 %vm510_vm1, %v383_v36  ;;  %v2454_v29 = vshrl.u32 %v5394_v61, 16  ;;  %v2456_v36 = vshll.u32 %v5394_v61, 16  ;;  %v2461_v39 = vshll.u32 %v5395_v2, 16  ;;  %v7055_v42 = vshrl.u32 %v5751_v15, 16 }
  0x29   : > { %4683 = vmatprep.mubr.msk.bf16.mxu1 %vm510_vm1, %v392_v30  ;;  %v410_v22 = vsel %vm339_vm2, %v400_v56, %v409_v10  ;;  %v426_v35 = vrot.slane %v7051_v11, 3  ;;  %v5773_v30 = vld [vmem:[%s5595_s25 + $0x5c] sm:$0xff]   ;;  %v418_v61 = vor.u32 %v417_v25, %v414_v24  ;;  %v7056_v56 = vshll.u32 %v5751_v15, 16 }
  0x2a   : > { %v2458_v45 = vrot.slane %v2456_v36, 1  ;;  %v2463_v57 = vrot.slane %v2461_v39, 1  ;;  %v2469_v11 = vshll.u32 %v5396_v37, 16  ;;  %v7057_v36 = vshrl.u32 %v5773_v30, 16 }
  0x2b   : > { %v427_v63 = vor.u32 %v426_v35, %v423_v32  ;;  %v7058_v50 = vshll.u32 %v5773_v30, 16  ;;  %v2465_v46 = vshrl.u32 %v5395_v2, 16  ;;  %v432_v39 = vrot.slane %v7055_v42, 2  ;;  %v5400_v35 = vld [vmem:[%s5595_s25 + $0x30] sm:$0xff]  }
  0x2c   : > { %v2473_v25 = vshrl.u32 %v5396_v37, 16  ;;  %v2471_v32 = vrot.slane %v2469_v11, 1  ;;  %v441_v42 = vrot.slane %v7057_v36, 2  ;;  %v2485_v44 = vshll.u32 %v5400_v35, 16 }
  0x2d   : > { %v428_v2 = vsel %vm339_vm2, %v418_v61, %v427_v63  ;;  %v444_v37 = vrot.slane %v7058_v50, 3  ;;  %v790_v4 = vrot.slane %v5617_v19, 3  ;;  %v792_v54 = vrot.slane %v5626_v21, 3 }
  0x2e   : > { %v2475_v11 = vor.u32 %v2473_v25, %v2471_v32  ;;  %v3206_v25 = vsel %vm565_vm0, %v5622_v20, 0  ;;  %v800_v47 = vrot.slane %v5674_v59, 3  ;;  %v2541_v26 = vshll.u32 %v5413_v27, 16 }
  0x2f   : > { %4840 = vmatmul.mubr.msk.bf16.gmra.mrb[12].mxu0 %vm510_vm1, %v4355_v5  ;;  %v2459_v5 = vor.u32 %v2458_v45, %v2454_v29  ;;  %v419_v29 = vsel %vm339_vm2, %v409_v10, %v418_v61  ;;  %v5793_v45 = vld [vmem:[%s5595_s25 + $0x6c] sm:$0xff]  }
  0x30   : > { %4843 = vmatprep.mubr.msk.bf16.mxu0 %vm510_vm1, %v4356_v12  ;;  %4684 = vmatmul.mubr.msk.bf16.gmra.mrb[8].mxu1 %vm510_vm1, %v401_v23  ;;  %v4357_v12 = vcombine.low %v1477_v60, %v5761_v28  ;;  %v5783_v23 = vld [vmem:[%s5595_s25 + $0x64] sm:$0xff]   ;;  %v435_v60 = vrot.slane %v7056_v56, 3  ;;  %7128 = vst [vmem:[#allocation5_spill] sm:$0xff] %v5793_v45  ;;  %v7064_v50 = vshrl.u32 %v5793_v45, 16 }
  0x31   : > { %4687 = vmatprep.mubr.msk.bf16.mxu1 %vm510_vm1, %v410_v22  ;;  %7127 = vst [vmem:[#allocation4_spill] sm:$0xff] %v5783_v23  ;;  %v2464_v24 = vsel %vm2452_vm3, %v2459_v5, %v2463_v57  ;;  %v2477_v22 = vshll.u32 %v5399_v58, 16  ;;  %v2467_v5 = vor.u32 %v2465_v46, %v2463_v57  ;;  %v7062_v10 = vshrl.u32 %v5783_v23, 16 }
  0x32   : > { %v436_v61 = vor.u32 %v435_v60, %v432_v39  ;;  %v7065_v36 = vshll.u32 %v5783_v23, 16  ;;  %v7066_v46 = vshll.u32 %v5793_v45, 16  ;;  %v445_v57 = vor.u32 %v444_v37, %v441_v42  ;;  %v5820_v39 = vld [vmem:[%s7048_s1 + $0x1c] sm:$0xf]  ;;  %v782_v60 = vld [vmem:[%s5595_s25 + $0x4] sm:$0x8] }
  0x33   : > { %v2479_v56 = vrot.slane %v2477_v22, 1  ;;  %v5815_v22 = vld [vmem:[%s5595_s25 + $0x74] sm:$0xff]   ;;  %v450_v42 = vrot.slane %v7062_v10, 2  ;;  %v2487_v10 = vrot.slane %v2485_v44, 1  ;;  %v5853_v44 = vcombine.low %v782_v60, %v5612_v17 }
  0x34   : > { %7129 = vst [vmem:[#allocation6_spill] sm:$0xff] %v5815_v22  ;;  %v437_v20 = vsel %vm339_vm2, %v427_v63, %v436_v61  ;;  %v453_v37 = vrot.slane %v7065_v36, 3  ;;  %v462_v18 = vrot.slane %v7066_v46, 3  ;;  %v7069_v63 = vshrl.u32 %v5815_v22, 16  ;;  %v5844_v36 = vld [vmem:[%s5595_s25 + $0x84] sm:$0xff]  }
  0x35   : > { %7131 = vst [vmem:[#allocation8_spill] sm:$0xff] %v5844_v36 }
  0x37   : > { %4844 = vmatmul.mubr.msk.bf16.gmra.mrb[16].mxu0 %vm510_vm1, %v4357_v12  ;;  %v5805_v12 = vld [vmem:[%s5595_s25 + $0x38] sm:$0xff]  }
  0x38   : > { %4865 = vmatprep.mubr.msk.bf16.mxu0 %vm510_vm1, %v2464_v24  ;;  %4688 = vmatmul.mubr.msk.bf16.gmra.mrb[12].mxu1 %vm510_vm1, %v419_v29  ;;  %v2481_v24 = vshrl.u32 %v5399_v58, 16  ;;  %v2472_v29 = vsel %vm2452_vm3, %v2467_v5, %v2471_v32  ;;  %v2480_v58 = vsel %vm2452_vm3, %v2475_v11, %v2479_v56  ;;  %v2493_v32 = vshll.u32 %v5805_v12, 16 }
  0x39   : > { %4691 = vmatprep.mubr.msk.bf16.mxu1 %vm510_vm1, %v428_v2  ;;  %v2489_v2 = vshrl.u32 %v5400_v35, 16  ;;  %v459_v5 = vrot.slane %v7064_v50, 2  ;;  %v446_v35 = vsel %vm339_vm2, %v436_v61, %v445_v57  ;;  %v7068_v50 = vshll.u32 %v5815_v22, 16 }
  0x3a   : > { %v2483_v11 = vor.u32 %v2481_v24, %v2479_v56  ;;  %v2495_v7 = vrot.slane %v2493_v32, 1  ;;  %v454_v56 = vor.u32 %v453_v37, %v450_v42  ;;  %v2501_v24 = vshll.u32 %v5404_v9, 16 }
  0x3b   : > { %v2491_v46 = vor.u32 %v2489_v2, %v2487_v10  ;;  %v463_v61 = vor.u32 %v462_v18, %v459_v5  ;;  %v7074_v2 = vshll.u32 %v5838_v8, 16  ;;  %v468_v32 = vrot.slane %v7069_v63, 2 }
  0x3c   : > { %v471_v17 = vrot.slane %v7068_v50, 3  ;;  %v2497_v60 = vshrl.u32 %v5805_v12, 16  ;;  %v2505_v18 = vshrl.u32 %v5404_v9, 16  ;;  %v789_v50 = vrot.slane %v5853_v44, 3 }
  0x3d   : > { %v2496_v42 = vsel %vm2452_vm3, %v2491_v46, %v2495_v7  ;;  %v464_v5 = vsel %vm339_vm2, %v454_v56, %v463_v61  ;;  %v2503_v12 = vrot.slane %v2501_v24, 1  ;;  %v480_v9 = vrot.slane %v7074_v2, 3 }
  0x3e   : > { %v472_v24 = vor.u32 %v471_v17, %v468_v32 }
  0x3f   : > { %4866 = vmatmul.mubr.msk.bf16.vlgmr.msra.gmra.mrb[0].mxu0 %vm510_vm1, %v2472_v29  ;;  %v5848_v29 = vld [vmem:[%s5595_s25 + $0x48] sm:$0xff]  }
  0x40   : > { %4902 = vmatpush3.bf16.msra.mxu0 %v3206_v25  ;;  %4869 = vmatprep.mubr.msk.bf16.mxu0 %vm510_vm1, %v2480_v58  ;;  %v2488_v25 = vsel %vm2452_vm3, %v2483_v11, %v2487_v10  ;;  %v7072_v58 = vshrl.u32 %v5838_v8, 16  ;;  %v2509_v37 = vshll.u32 %v5848_v29, 16  ;;  %v455_v10 = vsel %vm339_vm2, %v445_v57, %v454_v56  ;;  %v5871_v11 = vld [vmem:[%s5595_s25 + $0x8c] sm:$0xff]  }
  0x41   : > { %4692 = vmatmul.mubr.msk.bf16.gmra.mrb[16].mxu1 %vm510_vm1, %v437_v20  ;;  %5349 = vmatprep.subr.msk.bf16.mxu0 %vm565_vm0, %v5820_v39  ;;  %v7075_v20 = vshrl.u32 %v5844_v36, 16  ;;  %7132 = vst [vmem:[#allocation9_spill] sm:$0xff] %v5871_v11  ;;  %v7077_v57 = vshll.u32 %v5844_v36, 16  ;;  %v2499_v56 = vor.u32 %v2497_v60, %v2495_v7  ;;  %v5890_v7 = vsel %vm788_vm4, %v789_v50, %v790_v4 }
  0x42   : > { %4695 = vmatprep.mubr.msk.bf16.mxu1 %vm510_vm1, %v446_v35  ;;  %v5408_v35 = vld [vmem:[%s5595_s25 + $0x50] sm:$0xff]   ;;  %v477_v46 = vrot.slane %v7072_v58, 2  ;;  %v2511_v58 = vrot.slane %v2509_v37, 1  ;;  %v5893_v60 = vsel %vm788_vm4, %v790_v4, %v792_v54  ;;  %v7081_v32 = vshll.u32 %v5871_v11, 16 }
  0x43   : > { %v486_v63 = vrot.slane %v7075_v20, 2  ;;  %v2517_v2 = vshll.u32 %v5408_v35, 16  ;;  %v2504_v17 = vsel %vm2452_vm3, %v2499_v56, %v2503_v12  ;;  %v5901_v37 = vld [vmem:[%s5595_s25 + $0x94] ss:$0 sps:$4 sm:$0x77]   ;;  %v796_v50 = vrot.slane %v5648_v41, 3 }
  0x44   : > { %v481_v21 = vor.u32 %v480_v9, %v477_v46  ;;  %v473_v20 = vsel %vm339_vm2, %v463_v61, %v472_v24  ;;  %v2521_v46 = vshrl.u32 %v5408_v35, 16  ;;  %v2525_v9 = vshll.u32 %v5411_v49, 16 }
  0x45   : > { %v2519_v48 = vrot.slane %v2517_v2, 1  ;;  %v498_v35 = vrot.slane %v7081_v32, 3  ;;  %v798_v2 = vrot.slane %v5659_v51, 3 }
  0x46   : > { %v482_v61 = vsel %vm339_vm2, %v472_v24, %v481_v21  ;;  %v502_v24 = vshrl.u32 %v5901_v37, 16 }
  0x47   : > { %4870 = vmatmul.mubr.msk.bf16.gmra.mrb[4].mxu0 %vm510_vm1, %v2488_v25  ;;  %v2507_v25 = vor.u32 %v2505_v18, %v2503_v12  ;;  %v2513_v18 = vshrl.u32 %v5848_v29, 16  ;;  %v5412_v12 = vld [vmem:[%s5595_s25 + $0x60] sm:$0xff]  }
  0x48   : > { %4873 = vmatprep.mubr.msk.bf16.mxu0 %vm510_vm1, %v2496_v42  ;;  %v7078_v42 = vshrl.u32 %v5871_v11, 16  ;;  %v2537_v32 = vshrl.u32 %v5412_v12, 16 }
  0x49   : > { %4696 = vmatmul.mubr.msk.bf16.gmra.mrb[20].mxu1 %vm510_vm1, %v455_v10  ;;  %v489_v10 = vrot.slane %v7077_v57, 3  ;;  %v2512_v4 = vsel %vm2452_vm3, %v2507_v25, %v2511_v58 }
  0x4a   : > { %4699 = vmatprep.mubr.msk.bf16.mxu1 %vm510_vm1, %v464_v5  ;;  %v794_v5 = vrot.slane %v5645_v40, 3  ;;  %v495_v57 = vrot.slane %v7078_v42, 2  ;;  %v2515_v42 = vor.u32 %v2513_v18, %v2511_v58  ;;  %v2533_v18 = vshll.u32 %v5412_v12, 16 }
  0x4b   : > { %v490_v25 = vor.u32 %v489_v10, %v486_v63  ;;  %v505_v63 = vshll.u32 %v5901_v37, 16  ;;  %v5932_v10 = vsel %vm788_vm4, %v798_v2, %v800_v47 }
  0x4c   : > { %v5911_v29 = vsel %vm788_vm4, %v792_v54, %v794_v5  ;;  %v5914_v56 = vsel %vm788_vm4, %v794_v5, %v796_v50  ;;  %v2523_v54 = vor.u32 %v2521_v46, %v2519_v48  ;;  %v2527_v5 = vrot.slane %v2525_v9, 1 }
  0x4d   : > { %v499_v58 = vor.u32 %v498_v35, %v495_v57  ;;  %v2520_v46 = vsel %vm2452_vm3, %v2515_v42, %v2519_v48  ;;  %v804_v9 = vrot.slane %v5711_v31, 3  ;;  %v507_v57 = vrot.slane %v505_v63, 3  ;;  %v5414_v35 = vld [vmem:[%s5595_s25 + $0x70] sm:$0xff]   ;;  %v5415_v63 = vld [vmem:[%s5595_s25 + $0x78] sm:$0xff]  }
  0x4e   : > { %v808_v42 = vrot.slane %v5751_v15, 3 }
  0x4f   : > { %4874 = vmatmul.mubr.msk.bf16.gmra.mrb[8].mxu0 %vm510_vm1, %v2504_v17  ;;  %v5926_v17 = vsel %vm788_vm4, %v796_v50, %v798_v2  ;;  %v2529_v50 = vshrl.u32 %v5411_v49, 16  ;;  %v504_v2 = vrot.slane %v502_v24, 2  ;;  %v500_v48 = vsel %vm339_vm2, %v490_v25, %v499_v58 }
  0x50   : > { %4877 = vmatprep.mubr.msk.bf16.mxu0 %vm510_vm1, %v2512_v4  ;;  %v491_v4 = vsel %vm339_vm2, %v481_v21, %v490_v25  ;;  %v806_v21 = vrot.slane %v5724_v38, 3  ;;  %v2535_v49 = vrot.slane %v2533_v18, 1  ;;  %v2543_v24 = vrot.slane %v2541_v26, 1 }
  0x51   : > { %4700 = vmatmul.mubr.msk.bf16.gmra.mrb[24].mxu1 %vm510_vm1, %v473_v20  ;;  %v802_v20 = vrot.slane %v5685_v0, 3  ;;  %v508_v25 = vor.u32 %v507_v57, %v504_v2  ;;  %v2549_v18 = vshll.u32 %v5414_v35, 16 }
  0x52   : > { %4703 = vmatprep.mubr.msk.bf16.mxu1 %vm510_vm1, %v482_v61  ;;  %v2528_v61 = vsel %vm2452_vm3, %v2523_v54, %v2527_v5  ;;  %v5952_v12 = vsel %vm788_vm4, %v804_v9, %v806_v21  ;;  %v2539_v54 = vor.u32 %v2537_v32, %v2535_v49  ;;  %v2557_v32 = vshll.u32 %v5415_v63, 16 }
  0x53   : > { %v5940_v1 = vsel %vm788_vm4, %v800_v47, %v802_v20  ;;  %v5944_v0 = vsel %vm788_vm4, %v802_v20, %v804_v9  ;;  %v2531_v47 = vor.u32 %v2529_v50, %v2527_v5  ;;  %v5957_v20 = vsel %vm788_vm4, %v806_v21, %v808_v42 }
  0x54   : > { %v812_v5 = vrot.slane %v5783_v23, 3  ;;  %v2545_v9 = vshrl.u32 %v5413_v27, 16  ;;  %v2544_v26 = vsel %vm2452_vm3, %v2539_v54, %v2543_v24  ;;  %v509_v2 = vsel %vm339_vm2, %v499_v58, %v508_v25  ;;  %v5417_v54 = vld [vmem:[%s5595_s25 + $0x88] sm:$0xff]  }
  0x55   : > { %v2536_v50 = vsel %vm2452_vm3, %v2531_v47, %v2535_v49  ;;  %v2551_v57 = vrot.slane %v2549_v18, 1  ;;  %v814_v49 = vrot.slane %v5793_v45, 3  ;;  %v816_v27 = vrot.slane %v5815_v22, 3 }
  0x56   : > { %v2559_v47 = vrot.slane %v2557_v32, 1  ;;  %v818_v25 = vrot.slane %v5838_v8, 3  ;;  %v2573_v32 = vshll.u32 %v5417_v54, 16 }
  0x57   : > { %4878 = vmatmul.mubr.msk.bf16.gmra.mrb[12].mxu0 %vm510_vm1, %v2520_v46  ;;  %v810_v46 = vrot.slane %v5773_v30, 3  ;;  %v5982_v58 = vsel %vm788_vm4, %v814_v49, %v816_v27 }
  0x58   : > { %4881 = vmatprep.mubr.msk.bf16.mxu0 %vm510_vm1, %v2528_v61  ;;  %v2553_v61 = vshrl.u32 %v5414_v35, 16  ;;  %v2547_v35 = vor.u32 %v2545_v9, %v2543_v24  ;;  %v820_v24 = vrot.slane %v5844_v36, 3  ;;  %v2561_v9 = vshrl.u32 %v5415_v63, 16  ;;  %v6033_v36 = vld [vmem:[%s5595_s25 + $0x20] sm:$0xff]  }
  0x59   : > { %4704 = vmatmul.mubr.msk.bf16.gmra.mrb[28].mxu1 %vm510_vm1, %v491_v4  ;;  %v5965_v4 = vsel %vm788_vm4, %v808_v42, %v810_v46  ;;  %v5968_v21 = vsel %vm788_vm4, %v810_v46, %v812_v5  ;;  %v5979_v46 = vsel %vm788_vm4, %v812_v5, %v814_v49  ;;  %v822_v49 = vrot.slane %v5871_v11, 3  ;;  %v5420_v11 = vld [vmem:[%s5595_s25 + $0xa0] ss:$0 sps:$4 sm:$0x11]   ;;  %7133 = vst [vmem:[#allocation10_spill] sm:$0xff] %v6033_v36 }
  0x5a   : > { %4707 = vmatprep.mubr.msk.bf16.mxu1 %vm510_vm1, %v500_v48  ;;  %v5416_v48 = vld [vmem:[%s5595_s25 + $0x80] sm:$0xff]   ;;  %v2555_v42 = vor.u32 %v2553_v61, %v2551_v57  ;;  %v5990_v61 = vsel %vm788_vm4, %v816_v27, %v818_v25  ;;  %v5418_v27 = vld [vmem:[%s5595_s25 + $0x90] sm:$0xff]  }
  0x5b   : > { %v2565_v18 = vshll.u32 %v5416_v48, 16 }
  0x5c   : > { %v2560_v5 = vsel %vm2452_vm3, %v2555_v42, %v2559_v47 }
  0x5d   : > { %v2567_v63 = vrot.slane %v2565_v18, 1  ;;  %v5419_v18 = vld [vmem:[%s5595_s25 + $0x98] sm:$0xff]  }
  0x5f   : > { %4882 = vmatmul.mubr.msk.bf16.gmra.mrb[16].mxu0 %vm510_vm1, %v2536_v50  ;;  %v2552_v50 = vsel %vm2452_vm3, %v2547_v35, %v2551_v57  ;;  %v824_v57 = vrot.slane %v5901_v37, 3  ;;  %v6004_v35 = vsel %vm788_vm4, %v820_v24, %v822_v49 }
  0x60   : > { %4885 = vmatprep.mubr.msk.bf16.mxu0 %vm510_vm1, %v2544_v26  ;;  %v2569_v26 = vshrl.u32 %v5416_v48, 16  ;;  %v2563_v48 = vor.u32 %v2561_v9, %v2559_v47  ;;  %v2871_v47 = vld [vmem:[%s5595_s25 + $0x18] sm:$0xf] }
  0x61   : > { %4708 = vmatmul.mubr.msk.bf16.gmra.mrb[32].mxu1 %vm510_vm1, %v509_v2  ;;  %v5994_v2 = vsel %vm788_vm4, %v818_v25, %v820_v24  ;;  %v6007_v42 = vsel %vm788_vm4, %v822_v49, %v824_v57  ;;  %v2575_v25 = vrot.slane %v2573_v32, 1  ;;  %v6021_v24 = vld [vmem:[%s5595_s25 + $0x1c] sm:$0xf]  ;;  %v2589_v32 = vshll.u32 %v5419_v18, 16  ;;  %v1458_v49 = vld [vmem:[%s5595_s25 + $0xc] sm:$0x8] }
  0x62   : > { %4713 = vmatprep.mubr.msk.bf16.mxu1 %vm510_vm1, %v5890_v7  ;;  %v1243_v7 = vsel %vm565_vm0, %v5664_v52, 0  ;;  %v6012_v52 = vld [vmem:[%s7048_s1 + $0xc] sm:$0xf]  ;;  %v2571_v37 = vor.u32 %v2569_v26, %v2567_v63  ;;  %v2568_v9 = vsel %vm2452_vm3, %v2563_v48, %v2567_v63  ;;  %v2585_v26 = vshrl.u32 %v5418_v27, 16 }
  0x63   : > { %v2591_v63 = vrot.slane %v2589_v32, 1  ;;  %v4310_v48 = vcombine.low %v1458_v49, %v5598_v6  ;;  %v1608_v49 = vshrl.u32 %v5608_v14, 16 }
  0x65   : > { %v1591_v32 = vshrl.u32 %v4310_v48, 16  ;;  %v1594_v8 = vshll.u32 %v4310_v48, 16 }
  0x67   : > { %4886 = vmatmul.mubr.msk.bf16.gmra.mrb[20].mxu0 %vm510_vm1, %v2552_v50  ;;  %v2581_v50 = vshll.u32 %v5418_v27, 16 }
  0x68   : > { %4889 = vmatprep.mubr.msk.bf16.mxu0 %vm510_vm1, %v2560_v5  ;;  %v2576_v5 = vsel %vm2452_vm3, %v2571_v37, %v2575_v25  ;;  %v2593_v37 = vshrl.u32 %v5419_v18, 16 }
  0x69   : > { %4714 = vmatmul.mubr.msk.bf16.vlgmr.msra.gmra.mrb[0].mxu1 %vm510_vm1, %v5893_v60  ;;  %v2577_v60 = vshrl.u32 %v5417_v54, 16 }
  0x6a   : > { %4750 = vmatpush3.bf16.msra.mxu1 %v1243_v7  ;;  %4717 = vmatprep.mubr.msk.bf16.mxu1 %vm510_vm1, %v5911_v29  ;;  %v4423_v7 = vcombine.low %v2871_v47, %v6021_v24  ;;  %v2583_v29 = vrot.slane %v2581_v50, 1  ;;  %v2597_v50 = vshll.u32 %v5420_v11, 16  ;;  %v2595_v6 = vor.u32 %v2593_v37, %v2591_v63  ;;  %v6091_v37 = vld [vmem:[%s5595_s25 + $0x50] sm:$0xff]  }
  0x6b   : > { %5344 = vmatprep.subr.msk.bf16.mxu1 %vm565_vm0, %v6012_v52  ;;  %v2579_v57 = vor.u32 %v2577_v60, %v2575_v25  ;;  %v7092_v25 = vshll.u32 %v6033_v36, 16  ;;  %7139 = vst [vmem:[#allocation16_spill] sm:$0xff] %v6091_v37 }
  0x6c   : > { %v2587_v54 = vor.u32 %v2585_v26, %v2583_v29  ;;  %v3006_v27 = vshll.u32 %v4423_v7, 16  ;;  %v6047_v26 = vld [vmem:[%s5595_s25 + $0x30] sm:$0xff]   ;;  %v2599_v11 = vrot.slane %v2597_v50, 1  ;;  %v6076_v50 = vrot.slane %v1594_v8, 4 }
  0x6d   : > { %v2584_v47 = vsel %vm2452_vm3, %v2579_v57, %v2583_v29  ;;  %7135 = vst [vmem:[#allocation12_spill] sm:$0xff] %v6047_v26  ;;  %v3013_v18 = vrot.slane %v7092_v25, 1 }
  0x6e   : > { %v2592_v60 = vsel %vm2452_vm3, %v2587_v54, %v2591_v63  ;;  %v6060_v54 = vld [vmem:[%s5595_s25 + $0x40] sm:$0xff]  }
  0x6f   : > { %4890 = vmatmul.mubr.msk.bf16.gmra.mrb[24].mxu0 %vm510_vm1, %v2568_v9  ;;  %v6043_v9 = vld [vmem:[%s5595_s25 + $0x28] sm:$0xff]   ;;  %7136 = vst [vmem:[#allocation13_spill] sm:$0xff] %v6060_v54  ;;  %v7097_v48 = vshll.u32 %v6060_v54, 16  ;;  %v3437_v23 = vrot.slane %v6060_v54, 1 }
  0x70   : > { %4893 = vmatprep.mubr.msk.bf16.mxu0 %vm510_vm1, %v2576_v5  ;;  %7134 = vst [vmem:[#allocation11_spill] sm:$0xff] %v6043_v9  ;;  %v3004_v5 = vshrl.u32 %v4423_v7, 16  ;;  %v7095_v7 = vshrl.u32 %v6033_v36, 16  ;;  %v7096_v29 = vshll.u32 %v6043_v9, 16 }
  0x71   : > { %4718 = vmatmul.mubr.msk.bf16.gmra.mrb[4].mxu1 %vm510_vm1, %v5914_v56  ;;  %v3008_v56 = vrot.slane %v3006_v27, 1  ;;  %v6067_v27 = vsel %vm565_vm0, %v5820_v39, 0  ;;  %v2600_v39 = vsel %vm2452_vm3, %v2595_v6, %v2599_v11  ;;  %v7141_v6 = vshll.u32 %v6047_v26, 16 }
  0x72   : > { %4721 = vmatprep.mubr.msk.bf16.mxu1 %vm510_vm1, %v5926_v17  ;;  %v1599_v17 = vshrl.u32 %v5606_v13, 16  ;;  %v3017_v25 = vor.u32 %v7095_v7, %v3013_v18  ;;  %v3021_v63 = vrot.slane %v7096_v29, 1  ;;  %v6112_v7 = vld [vmem:[%s5595_s25 + $0x58] sm:$0xff]  }
  0x73   : > { %v3009_v57 = vor.u32 %v3008_v56, %v3004_v5  ;;  %v6080_v5 = vld [vmem:[%s5595_s25 + $0x48] sm:$0xff]   ;;  %v3421_v56 = vld [vmem:[%s5595_s25 + $0x18] sm:$0xe]  ;;  %v3029_v11 = vrot.slane %v7141_v6, 1  ;;  %7143 = vst [vmem:[#allocation18_spill] sm:$0xff] %v6112_v7  ;;  %v6129_v6 = vld [vmem:[%s5595_s25 + $0x60] sm:$0xff]  }
  0x74   : > { %7138 = vst [vmem:[#allocation15_spill] sm:$0xff] %v6080_v5  ;;  %v6102_v29 = vcombine.low %v3421_v56, %v6021_v24  ;;  %v3433_v56 = vrot.slane %v6047_v26, 1 }
  0x75   : > { %v3014_v8 = vsel %vm2452_vm3, %v3009_v57, %v3013_v18  ;;  %v3431_v57 = vrot.slane %v6043_v9, 1 }
  0x76   : > { %7142 = vst [vmem:[#allocation17_spill] sm:$0xff] %v6102_v29  ;;  %v3428_v24 = vrot.slane %v6102_v29, 1  ;;  %v6143_v29 = vld [vmem:[%s5595_s25 + $0x60] sm:$0xf] }
  0x77   : > { %4894 = vmatmul.mubr.msk.bf16.gmra.mrb[28].mxu0 %vm510_vm1, %v2584_v47  ;;  %v6072_v47 = vld [vmem:[%s5595_s25 + $0x38] sm:$0xff]   ;;  %7149 = vst [vmem:[#allocation21_spill] sm:$0xff] %v6143_v29 }
  0x78   : > { %4897 = vmatprep.mubr.msk.bf16.mxu0 %vm510_vm1, %v2592_v60  ;;  %7137 = vst [vmem:[#allocation14_spill] sm:$0xff] %v6072_v47  ;;  %v1611_v60 = vshll.u32 %v5608_v14, 16  ;;  %v7147_v18 = vshll.u32 %v6072_v47, 16 }
  0x79   : > { %4722 = vmatmul.mubr.msk.bf16.gmra.mrb[8].mxu1 %vm510_vm1, %v5932_v10  ;;  %v6074_v10 = vrot.slane %v1591_v32, 3  ;;  %v1610_v32 = vrot.slane %v1608_v49, 3  ;;  %v3429_v49 = vrot.slane %v6033_v36, 1  ;;  %v7148_v36 = vshll.u32 %v6080_v5, 16 }
  0x7a   : > { %4725 = vmatprep.mubr.msk.bf16.mxu1 %vm510_vm1, %v5940_v1  ;;  %v6083_v1 = vrot.slane %v1599_v17, 3  ;;  %v7140_v17 = vshrl.u32 %v6043_v9, 16  ;;  %v1613_v14 = vrot.slane %v1611_v60, 4  ;;  %v3037_v9 = vrot.slane %v7147_v18, 1 }
  0x7c   : > { %v3025_v22 = vor.u32 %v7140_v17, %v3021_v63  ;;  %v3022_v17 = vsel %vm2452_vm3, %v3017_v25, %v3021_v63  ;;  %v7150_v63 = vshll.u32 %v6091_v37, 16 }
  0x7e   : > { %v3030_v25 = vsel %vm2452_vm3, %v3025_v22, %v3029_v11  ;;  %v3435_v22 = vrot.slane %v6072_v47, 1  ;;  %v3061_v45 = vrot.slane %v7150_v63, 1  ;;  %v7153_v63 = vshrl.u32 %v6080_v5, 16 }
  0x7f   : > { %4898 = vmatmul.mubr.msk.bf16.gmra.mrb[32].mxu0 %vm510_vm1, %v2600_v39  ;;  %v3045_v39 = vrot.slane %v7097_v48, 1  ;;  %v7146_v48 = vshrl.u32 %v6047_v26, 16 }
  0x80   : > { %4903 = vmatprep.mubr.msk.bf16.mxu0 %vm510_vm1, %v3014_v8  ;;  %v6122_v8 = vsel %vm3427_vm5, %v3429_v49, %v3431_v57 }
  0x81   : > { %4726 = vmatmul.mubr.msk.bf16.gmra.mrb[12].mxu1 %vm510_vm1, %v5944_v0  ;;  %7144 = vst [vmem:[#allocation19_spill] sm:$0xff] %v6122_v8  ;;  %v6132_v0 = vsel %vm3427_vm5, %v3428_v24, %v3429_v49  ;;  %v3033_v60 = vor.u32 %v7146_v48, %v3029_v11  ;;  %v6150_v48 = vsel %vm3427_vm5, %v3431_v57, %v3433_v56  ;;  %v7151_v11 = vshrl.u32 %v6072_v47, 16  ;;  %v6167_v57 = vld [vmem:[%s7048_s1 + $0x20] sm:$0xf] }
  0x82   : > { %4729 = vmatprep.mubr.msk.bf16.mxu1 %vm510_vm1, %v5952_v12  ;;  %7145 = vst [vmem:[#allocation20_spill] sm:$0xff] %v6132_v0  ;;  %v3053_v12 = vrot.slane %v7148_v36, 1  ;;  %v7152_v36 = vshrl.u32 %v6060_v54, 16  ;;  %v6157_v8 = vsel %vm3427_vm5, %v3433_v56, %v3435_v22  ;;  %v7114_v0 = vshrl.u32 %v6112_v7, 16 }
  0x83   : > { %v3041_v18 = vor.u32 %v7151_v11, %v3037_v9  ;;  %v3439_v11 = vrot.slane %v6080_v5, 1  ;;  %v6172_v47 = vor.u32 %v1613_v14, %v1610_v32  ;;  %v6176_v54 = vcombine.low %v5761_v28, %v6143_v29  ;;  %v6287_v5 = vld [vmem:[%s5595_s25 + $0x90] sm:$0xff]  }
  0x84   : > { %v3049_v26 = vor.u32 %v7152_v36, %v3045_v39  ;;  %v3057_v49 = vor.u32 %v7153_v63, %v3053_v12  ;;  %v7154_v36 = vshll.u32 %v5606_v13, 16  ;;  %v6180_v63 = vld [vmem:[%s5595_s25 + $0x68] sm:$0xff]   ;;  %v6183_v24 = vsel %vm3427_vm5, %v3435_v22, %v3437_v23 }
  0x85   : > { %v7155_v13 = vshrl.u32 %v6091_v37, 16  ;;  %v7156_v32 = vshll.u32 %v6112_v7, 16  ;;  %v6192_v28 = vsel %vm3427_vm5, %v3437_v23, %v3439_v11  ;;  %v3038_v22 = vsel %vm2452_vm3, %v3033_v60, %v3037_v9 }
  0x86   : > { %v1604_v56 = vrot.slane %v7154_v36, 4  ;;  %v3443_v23 = vrot.slane %v6112_v7, 1  ;;  %v7157_v9 = vshll.u32 %v6129_v6, 16  ;;  %v1597_v60 = vor.u32 %v6076_v50, %v6074_v10 }
  0x87   : > { %4904 = vmatmul.mubr.msk.bf16.vlgmr.msra.gmra.mrb[0].mxu0 %vm510_vm1, %v3022_v17  ;;  %v3065_v36 = vor.u32 %v7155_v13, %v3061_v45  ;;  %v3069_v14 = vrot.slane %v7156_v32, 1  ;;  %v3441_v17 = vrot.slane %v6091_v37, 1  ;;  %v6208_v13 = vsel %vm2452_vm3, %v3057_v49, %v3061_v45  ;;  %v6230_v32 = vld [vmem:[%s5595_s25 + $0x70] sm:$0xff]  }
  0x88   : > { %4940 = vmatpush3.bf16.msra.mxu0 %v6067_v27  ;;  %4907 = vmatprep.mubr.msk.bf16.mxu0 %vm510_vm1, %v3030_v25  ;;  %v3046_v27 = vsel %vm2452_vm3, %v3041_v18, %v3045_v39  ;;  %v6200_v25 = vsel %vm2452_vm3, %v3049_v26, %v3053_v12  ;;  %v6214_v39 = vrot.slane %v7157_v9, 1  ;;  %v3445_v45 = vrot.slane %v6129_v6, 1 }
  0x89   : > { %4730 = vmatmul.mubr.msk.bf16.gmra.mrb[16].mxu1 %vm510_vm1, %v5957_v20  ;;  %5350 = vmatprep.subr.msk.bf16.mxu0 %vm565_vm0, %v6167_v57  ;;  %v3073_v20 = vor.u32 %v7114_v0, %v3069_v14  ;;  %v6217_v26 = vsel %vm3427_vm5, %v3439_v11, %v3441_v17  ;;  %v6222_v18 = vsel %vm3427_vm5, %v3441_v17, %v3443_v23  ;;  %v6233_v11 = vld [vmem:[%s5595_s25 + $0x78] sm:$0xff]   ;;  %v3447_v9 = vrot.slane %v6180_v63, 1 }
  0x8a   : > { %4733 = vmatprep.mubr.msk.bf16.mxu1 %vm510_vm1, %v5965_v4  ;;  %v6226_v4 = vsel %vm2452_vm3, %v3065_v36, %v3069_v14  ;;  %v6238_v17 = vsel %vm3427_vm5, %v3443_v23, %v3445_v45  ;;  %v1605_v36 = vor.u32 %v1604_v56, %v6083_v1  ;;  %v3449_v12 = vrot.slane %v6230_v32, 1  ;;  %v6254_v23 = vld [vmem:[%s5595_s25 + $0x80] sm:$0xff]  }
  0x8b   : > { %v6245_v14 = vsel %vm2452_vm3, %v3073_v20, %v6214_v39  ;;  %v6248_v49 = vsel %vm3427_vm5, %v3445_v45, %v3447_v9  ;;  %v3451_v0 = vrot.slane %v6233_v11, 1  ;;  %v1617_v50 = vshrl.u32 %v5651_v43, 16  ;;  %v6268_v20 = vld [vmem:[%s5595_s25 + $0x88] sm:$0xff]  }
  0x8c   : > { %v6257_v29 = vsel %vm1102_vm6, %v1597_v60, %v1605_v36  ;;  %v6261_v10 = vsel %vm1102_vm6, %v1605_v36, %v6172_v47  ;;  %v1620_v1 = vshll.u32 %v5651_v43, 16  ;;  %v1626_v45 = vshrl.u32 %v5669_v55, 16 }
  0x8d   : > { %7158 = vst [vmem:[#allocation22_spill] sm:$0xff] %v6257_v29  ;;  %7159 = vst [vmem:[#allocation23_spill] sm:$0xff] %v6261_v10  ;;  %v6274_v60 = vsel %vm3427_vm5, %v3449_v12, %v3451_v0  ;;  %v1619_v43 = vrot.slane %v1617_v50, 3  ;;  %v3453_v56 = vrot.slane %v6254_v23, 1  ;;  %v3455_v7 = vrot.slane %v6268_v20, 1 }
  0x8e   : > { %7161 = vst [vmem:[#allocation25_spill] sm:$0xff] %v6274_v60  ;;  %v1622_v36 = vrot.slane %v1620_v1, 4  ;;  %v1638_v37 = vshll.u32 %v5691_v3, 16  ;;  %v6294_v1 = vld [vmem:[%s5595_s25 + $0x98] sm:$0xff]   ;;  %v1647_v29 = vshll.u32 %v5716_v33, 16 }
  0x8f   : > { %4908 = vmatmul.mubr.msk.bf16.gmra.mrb[4].mxu0 %vm510_vm1, %v3038_v22  ;;  %v6271_v22 = vsel %vm3427_vm5, %v3447_v9, %v3449_v12  ;;  %v1628_v9 = vrot.slane %v1626_v45, 3  ;;  %v1635_v12 = vshrl.u32 %v5691_v3, 16  ;;  %v6290_v50 = vsel %vm3427_vm5, %v3451_v0, %v3453_v56 }
  0x90   : > { %4911 = vmatprep.mubr.msk.bf16.mxu0 %vm510_vm1, %v3046_v27  ;;  %7160 = vst [vmem:[#allocation24_spill] sm:$0xff] %v6271_v22  ;;  %v1629_v27 = vshll.u32 %v5669_v55, 16  ;;  %v1623_v10 = vor.u32 %v1622_v36, %v1619_v43  ;;  %7162 = vst [vmem:[#allocation26_spill] sm:$0xff] %v6290_v50  ;;  %v1644_v55 = vshrl.u32 %v5716_v33, 16  ;;  %v1640_v60 = vrot.slane %v1638_v37, 4  ;;  %v6310_v37 = vld [vmem:[%s5595_s25 + $0xa0] sm:$0xff]  }
  0x91   : > { %4734 = vmatmul.mubr.msk.bf16.gmra.mrb[20].mxu1 %vm510_vm1, %v5968_v21  ;;  %v1637_v45 = vrot.slane %v1635_v12, 3  ;;  %v3457_v36 = vrot.slane %v6287_v5, 1  ;;  %v1649_v50 = vrot.slane %v1647_v29, 4  ;;  %v3459_v22 = vrot.slane %v6294_v1, 1 }
  0x92   : > { %4737 = vmatprep.mubr.msk.bf16.mxu1 %vm510_vm1, %v5979_v46  ;;  %v1631_v21 = vrot.slane %v1629_v27, 4  ;;  %v6297_v46 = vsel %vm3427_vm5, %v3453_v56, %v3455_v7  ;;  %v6302_v3 = vsel %vm1102_vm6, %v6172_v47, %v1623_v10  ;;  %v1646_v0 = vrot.slane %v1644_v55, 3  ;;  %v6323_v29 = vld [vmem:[%s5595_s25 + $0xa8] ss:$0 sps:$4 sm:$0x11]  }
  0x93   : > { %v1641_v27 = vor.u32 %v1640_v60, %v1637_v45  ;;  %v1653_v56 = vshrl.u32 %v5718_v34, 16  ;;  %v6316_v47 = vsel %vm3427_vm5, %v3455_v7, %v3457_v36  ;;  %v1662_v60 = vshrl.u32 %v5736_v53, 16 }
  0x94   : > { %v1632_v43 = vor.u32 %v1631_v21, %v1628_v9  ;;  %v1656_v9 = vshll.u32 %v5718_v34, 16  ;;  %v6329_v21 = vsel %vm3427_vm5, %v3457_v36, %v3459_v22  ;;  %v1665_v55 = vshll.u32 %v5736_v53, 16 }
  0x95   : > { %7164 = vst [vmem:[#allocation28_spill] sm:$0xff] %v6329_v21  ;;  %v1664_v34 = vrot.slane %v1662_v60, 3  ;;  %v3461_v45 = vrot.slane %v6310_v37, 1  ;;  %v1680_v53 = vshrl.u32 %v6176_v54, 16 }
  0x96   : > { %v6313_v33 = vsel %vm1102_vm6, %v1623_v10, %v1632_v43  ;;  %v6326_v12 = vsel %vm1102_vm6, %v1632_v43, %v1641_v27  ;;  %v1655_v10 = vrot.slane %v1653_v56, 3  ;;  %v1658_v7 = vrot.slane %v1656_v9, 4 }
  0x97   : > { %4912 = vmatmul.mubr.msk.bf16.gmra.mrb[8].mxu0 %vm510_vm1, %v6200_v25  ;;  %7163 = vst [vmem:[#allocation27_spill] sm:$0xff] %v6326_v12  ;;  %v1650_v25 = vor.u32 %v1649_v50, %v1646_v0  ;;  %v3463_v50 = vrot.slane %v6323_v29, 1  ;;  %v1671_v43 = vshrl.u32 %v5745_v62, 16  ;;  %v1674_v0 = vshll.u32 %v5745_v62, 16 }
  0x98   : > { %4915 = vmatprep.mubr.msk.bf16.mxu0 %vm510_vm1, %v6208_v13  ;;  %v1659_v36 = vor.u32 %v1658_v7, %v1655_v10  ;;  %v6344_v56 = vsel %vm3427_vm5, %v3459_v22, %v3461_v45  ;;  %v1682_v10 = vrot.slane %v1680_v53, 3  ;;  %v7167_v7 = vshll.u32 %v6180_v63, 16 }
  0x99   : > { %4738 = vmatmul.mubr.msk.bf16.gmra.mrb[24].mxu1 %vm510_vm1, %v5982_v58  ;;  %v6338_v13 = vsel %vm1102_vm6, %v1641_v27, %v1650_v25  ;;  %v1667_v58 = vrot.slane %v1665_v55, 4  ;;  %7166 = vst [vmem:[#allocation30_spill] sm:$0xff] %v6344_v56  ;;  %v6348_v9 = vsel %vm3427_vm5, %v3461_v45, %v3463_v50  ;;  %v1676_v60 = vrot.slane %v1674_v0, 4 }
  0x9a   : > { %4741 = vmatprep.mubr.msk.bf16.mxu1 %vm510_vm1, %v5990_v61  ;;  %7165 = vst [vmem:[#allocation29_spill] sm:$0xff] %v6338_v13  ;;  %v1673_v61 = vrot.slane %v1671_v43, 3  ;;  %v1683_v27 = vshll.u32 %v6176_v54, 16  ;;  %v3091_v13 = vshll.u32 %v6230_v32, 16  ;;  %v6353_v21 = vsel %vm1102_vm6, %v1650_v25, %v1659_v36 }
  0x9b   : > { %v1668_v62 = vor.u32 %v1667_v58, %v1664_v34  ;;  %v3085_v22 = vrot.slane %v7167_v7, 1  ;;  %v7168_v55 = vshrl.u32 %v5617_v19, 16  ;;  %v7169_v54 = vshrl.u32 %v5853_v44, 16 }
  0x9c   : > { %v1677_v12 = vor.u32 %v1676_v60, %v1673_v61  ;;  %v1685_v45 = vrot.slane %v1683_v27, 4  ;;  %v7170_v43 = vshll.u32 %v5853_v44, 16  ;;  %v7171_v34 = vshll.u32 %v5617_v19, 16 }
  0x9d   : > { %v1111_v56 = vrot.slane %v7168_v55, 3  ;;  %v1106_v50 = vrot.slane %v7169_v54, 3  ;;  %v6368_v58 = vsel %vm1102_vm6, %v1659_v36, %v1668_v62  ;;  %v7172_v53 = vshrl.u32 %v6129_v6, 16 }
  0x9e   : > { %v1109_v25 = vrot.slane %v7170_v43, 4  ;;  %v1112_v0 = vrot.slane %v7171_v34, 4  ;;  %v6378_v60 = vor.u32 %v1685_v45, %v1682_v10  ;;  %v7173_v19 = vshrl.u32 %v6180_v63, 16 }
  0x9f   : > { %4916 = vmatmul.mubr.msk.bf16.gmra.mrb[12].mxu0 %vm510_vm1, %v6226_v4  ;;  %v3081_v61 = vor.u32 %v7172_v53, %v6214_v39  ;;  %v6376_v4 = vsel %vm1102_vm6, %v1668_v62, %v1677_v12  ;;  %v3093_v36 = vrot.slane %v3091_v13, 1  ;;  %v3099_v62 = vshll.u32 %v6233_v11, 16 }
  0xa0   : > { %4919 = vmatprep.mubr.msk.bf16.mxu0 %vm510_vm1, %v6245_v14  ;;  %v3089_v44 = vor.u32 %v7173_v19, %v3085_v22  ;;  %v6390_v39 = vsel %vm1102_vm6, %v1677_v12, %v6378_v60  ;;  %v1110_v14 = vor.u32 %v1109_v25, %v1106_v50  ;;  %v1113_v27 = vor.u32 %v1112_v0, %v1111_v56 }
  0xa1   : > { %4742 = vmatmul.mubr.msk.bf16.gmra.mrb[28].mxu1 %vm510_vm1, %v5994_v2  ;;  %v3086_v10 = vsel %vm2452_vm3, %v3081_v61, %v3085_v22  ;;  %v3095_v2 = vshrl.u32 %v6230_v32, 16  ;;  %v3103_v55 = vshrl.u32 %v6233_v11, 16  ;;  %v3107_v45 = vshll.u32 %v6254_v23, 16 }
  0xa2   : > { %4745 = vmatprep.mubr.msk.bf16.mxu1 %vm510_vm1, %v6004_v35  ;;  %v3094_v7 = vsel %vm2452_vm3, %v3089_v44, %v3093_v36  ;;  %v1114_v35 = vsel %vm1102_vm6, %v1110_v14, %v1113_v27  ;;  %v3101_v12 = vrot.slane %v3099_v62, 1  ;;  %v7174_v56 = vshrl.u32 %v5645_v40, 16 }
  0xa3   : > { %v7175_v22 = vshll.u32 %v5645_v40, 16  ;;  %v3097_v43 = vor.u32 %v3095_v2, %v3093_v36  ;;  %v3109_v34 = vrot.slane %v3107_v45, 1  ;;  %v3115_v40 = vshll.u32 %v6268_v20, 16 }
  0xa4   : > { %v1119_v54 = vrot.slane %v7174_v56, 3  ;;  %v3105_v25 = vor.u32 %v3103_v55, %v3101_v12  ;;  %v3111_v61 = vshrl.u32 %v6254_v23, 16  ;;  %v3119_v44 = vshrl.u32 %v6268_v20, 16 }
  0xa5   : > { %v1120_v50 = vrot.slane %v7175_v22, 4  ;;  %v3102_v53 = vsel %vm2452_vm3, %v3097_v43, %v3101_v12  ;;  %v1118_v36 = vsel %vm1102_vm6, %v1113_v27, %v5753_v16  ;;  %v1815_v14 = vsel %vm565_vm0, %v6012_v52, 0 }
  0xa6   : > { %v3110_v19 = vsel %vm2452_vm3, %v3105_v25, %v3109_v34  ;;  %v7178_v22 = vshrl.u32 %v5659_v51, 16  ;;  %v3802_v23 = vrot.slane %v3119_v44, 1 }
  0xa7   : > { %4920 = vmatmul.mubr.msk.bf16.gmra.mrb[16].mxu0 %vm510_vm1, %v3086_v10  ;;  %v1121_v0 = vor.u32 %v1120_v50, %v1119_v54  ;;  %v7176_v10 = vshrl.u32 %v5648_v41, 16  ;;  %v3117_v54 = vrot.slane %v3115_v40, 1  ;;  %v7179_v50 = vshll.u32 %v5659_v51, 16 }
  0xa8   : > { %4923 = vmatprep.mubr.msk.bf16.mxu0 %vm510_vm1, %v3094_v7  ;;  %v1127_v27 = vrot.slane %v7178_v22, 3  ;;  %v7123_v51 = vshll.u32 %v6294_v1, 16  ;;  %v7181_v22 = vshll.u32 %v5674_v59, 16 }
  0xa9   : > { %4746 = vmatmul.mubr.msk.bf16.gmra.mrb[32].mxu1 %vm510_vm1, %v6007_v42  ;;  %v7122_v42 = vshll.u32 %v6287_v5, 16  ;;  %v1123_v7 = vrot.slane %v7176_v10, 3  ;;  %v1122_v56 = vsel %vm1102_vm6, %v5753_v16, %v1121_v0  ;;  %v1128_v52 = vrot.slane %v7179_v50, 4 }
  0xaa   : > { %4751 = vmatprep.mubr.msk.bf16.mxu1 %vm510_vm1, %v1114_v35  ;;  %v7177_v35 = vshll.u32 %v5648_v41, 16  ;;  %v3113_v41 = vor.u32 %v3111_v61, %v3109_v34  ;;  %v3121_v43 = vor.u32 %v3119_v44, %v3117_v54  ;;  %v3133_v50 = vrot.slane %v7123_v51, 1 }
  0xab   : > { %v3125_v16 = vrot.slane %v7122_v42, 1  ;;  %v7186_v51 = vshll.u32 %v5711_v31, 16 }
  0xac   : > { %v1124_v12 = vrot.slane %v7177_v35, 4  ;;  %v3118_v34 = vsel %vm2452_vm3, %v3113_v41, %v3117_v54  ;;  %v7124_v35 = vshll.u32 %v6310_v37, 16 }
  0xad   : > { %v3126_v10 = vsel %vm2452_vm3, %v3121_v43, %v3125_v16 }
  0xae   : > { %v1125_v25 = vor.u32 %v1124_v12, %v1123_v7  ;;  %v7180_v12 = vshrl.u32 %v5674_v59, 16 }
  0xaf   : > { %4924 = vmatmul.mubr.msk.bf16.gmra.mrb[20].mxu0 %vm510_vm1, %v3102_v53  ;;  %v1129_v53 = vor.u32 %v1128_v52, %v1127_v27  ;;  %v1132_v27 = vrot.slane %v7181_v22, 4  ;;  %v7182_v52 = vld [vmem:[#allocation3_spill] sm:$0xff] }
  0xb0   : > { %4927 = vmatprep.mubr.msk.bf16.mxu0 %vm510_vm1, %v3110_v19  ;;  %v5531_v19 = vld [vmem:[%s7048_s1 + $0x10] sm:$0xf]  ;;  %v1126_v7 = vsel %vm1102_vm6, %v1121_v0, %v1125_v25  ;;  %v7183_v41 = vshrl.u32 %v7182_v52, 16 }
  0xb1   : > { %4752 = vmatmul.mubr.msk.bf16.vlgmr.msra.gmra.mrb[0].mxu1 %vm510_vm1, %v1118_v36  ;;  %v3127_v36 = vshrl.u32 %v6287_v5, 16  ;;  %v1130_v54 = vsel %vm1102_vm6, %v1125_v25, %v1129_v53  ;;  %v3141_v25 = vrot.slane %v7124_v35, 1  ;;  %v1140_v35 = vrot.slane %v7186_v51, 4 }
  0xb2   : > { %4788 = vmatpush3.bf16.msra.mxu1 %v1815_v14  ;;  %4755 = vmatprep.mubr.msk.bf16.mxu1 %vm510_vm1, %v1122_v56  ;;  %v3135_v14 = vshrl.u32 %v6294_v1, 16  ;;  %v1131_v56 = vrot.slane %v7180_v12, 3  ;;  %v1135_v43 = vrot.slane %v7183_v41, 3  ;;  %v7185_v41 = vshrl.u32 %v5711_v31, 16 }
  0xb3   : > { %5346 = vmatprep.subr.msk.bf16.mxu1 %vm565_vm0, %v5531_v19  ;;  %v7184_v19 = vshll.u32 %v7182_v52, 16  ;;  %v3129_v0 = vor.u32 %v3127_v36, %v3125_v16  ;;  %v3143_v52 = vshrl.u32 %v6310_v37, 16 }
  0xb4   : > { %v3137_v59 = vor.u32 %v3135_v14, %v3133_v50 }
  0xb5   : > { %v1136_v42 = vrot.slane %v7184_v19, 4  ;;  %v3134_v22 = vsel %vm2452_vm3, %v3129_v0, %v3133_v50  ;;  %v1139_v19 = vrot.slane %v7185_v41, 3  ;;  %v7193_v41 = vld [vmem:[#allocation20_spill] sm:$0xff] }
  0xb6   : > { %v3142_v16 = vsel %vm2452_vm3, %v3137_v59, %v3141_v25  ;;  %v7189_v59 = vshrl.u32 %v5751_v15, 16 }
  0xb7   : > { %4928 = vmatmul.mubr.msk.bf16.gmra.mrb[24].mxu0 %vm510_vm1, %v3118_v34  ;;  %v1133_v34 = vor.u32 %v1132_v27, %v1131_v56  ;;  %v1137_v12 = vor.u32 %v1136_v42, %v1135_v43  ;;  %v7187_v56 = vshrl.u32 %v5724_v38, 16  ;;  %v1141_v31 = vor.u32 %v1140_v35, %v1139_v19 }
  0xb8   : > { %4931 = vmatprep.mubr.msk.bf16.mxu0 %vm510_vm1, %v3126_v10  ;;  %v3147_v10 = vshll.u32 %v6323_v29, 16  ;;  %v7192_v35 = vshll.u32 %v5773_v30, 16  ;;  %v3882_v19 = vsel %vm565_vm0, %v6167_v57, 0 }
  0xb9   : > { %4756 = vmatmul.mubr.msk.bf16.gmra.mrb[4].mxu1 %vm510_vm1, %v1126_v7  ;;  %v1134_v7 = vsel %vm1102_vm6, %v1129_v53, %v1133_v34  ;;  %v1138_v42 = vsel %vm1102_vm6, %v1133_v34, %v1137_v12  ;;  %v1143_v27 = vrot.slane %v7187_v56, 3  ;;  %v3145_v53 = vor.u32 %v3143_v52, %v3141_v25  ;;  %v7194_v56 = vld [vmem:[#allocation4_spill] sm:$0xff] }
  0xba   : > { %4759 = vmatprep.mubr.msk.bf16.mxu1 %vm510_vm1, %v1130_v54  ;;  %v7188_v54 = vshll.u32 %v5724_v38, 16  ;;  %v3149_v50 = vrot.slane %v3147_v10, 1  ;;  %v1142_v0 = vsel %vm1102_vm6, %v1137_v12, %v1141_v31  ;;  %v1147_v38 = vrot.slane %v7189_v59, 3 }
  0xbb   : > { %v7190_v34 = vshll.u32 %v5751_v15, 16  ;;  %v7191_v10 = vshrl.u32 %v5773_v30, 16  ;;  %v7196_v30 = vshll.u32 %v7194_v56, 16 }
  0xbc   : > { %v1144_v29 = vrot.slane %v7188_v54, 4  ;;  %v3150_v43 = vsel %vm2452_vm3, %v3145_v53, %v3149_v50  ;;  %v7197_v53 = vld [vmem:[#allocation19_spill] sm:$0xff] }
  0xbe   : > { %v1145_v51 = vor.u32 %v1144_v29, %v1143_v27  ;;  %v7195_v27 = vshrl.u32 %v7194_v56, 16  ;;  %v1156_v29 = vrot.slane %v7196_v30, 4 }
  0xbf   : > { %4932 = vmatmul.mubr.msk.bf16.gmra.mrb[28].mxu0 %vm510_vm1, %v3134_v22  ;;  %v1148_v22 = vrot.slane %v7190_v34, 4 }
  0xc0   : > { %4935 = vmatprep.mubr.msk.bf16.mxu0 %vm510_vm1, %v3142_v16  ;;  %v1146_v25 = vsel %vm1102_vm6, %v1141_v31, %v1145_v51  ;;  %v1151_v16 = vrot.slane %v7191_v10, 3  ;;  %v1155_v54 = vrot.slane %v7195_v27, 3  ;;  %v7198_v31 = vld [vmem:[#allocation5_spill] sm:$0xff] }
  0xc1   : > { %4760 = vmatmul.mubr.msk.bf16.gmra.mrb[8].mxu1 %vm510_vm1, %v1134_v7  ;;  %v1152_v7 = vrot.slane %v7192_v35, 4  ;;  %v1149_v12 = vor.u32 %v1148_v22, %v1147_v38  ;;  %v7200_v59 = vshll.u32 %v7198_v31, 16  ;;  %v7201_v22 = vld [vmem:[#allocation6_spill] sm:$0xff] }
  0xc2   : > { %4763 = vmatprep.mubr.msk.bf16.mxu1 %vm510_vm1, %v1138_v42  ;;  %v1157_v57 = vor.u32 %v1156_v29, %v1155_v54 }
  0xc3   : > { %v1153_v15 = vor.u32 %v1152_v7, %v1151_v16  ;;  %v1150_v42 = vsel %vm1102_vm6, %v1145_v51, %v1149_v12  ;;  %v1160_v38 = vrot.slane %v7200_v59, 4  ;;  %v7203_v16 = vshll.u32 %v7201_v22, 16  ;;  %v7204_v7 = vld [vmem:[#allocation7_spill] sm:$0xff] }
  0xc5   : > { %v1154_v50 = vsel %vm1102_vm6, %v1149_v12, %v1153_v15  ;;  %v1158_v34 = vsel %vm1102_vm6, %v1153_v15, %v1157_v57  ;;  %v1164_v35 = vrot.slane %v7203_v16, 4 }
  0xc7   : > { %4936 = vmatmul.mubr.msk.bf16.gmra.mrb[32].mxu0 %vm510_vm1, %v3150_v43  ;;  %v7199_v43 = vshrl.u32 %v7198_v31, 16  ;;  %v7210_v31 = vld [vmem:[#allocation9_spill] sm:$0xff] }
  0xc8   : > { %4941 = vmatprep.mubr.msk.bf16.mxu0 %vm510_vm1, %v7193_v41  ;;  %v7205_v41 = vshrl.u32 %v7204_v7, 16  ;;  %v7212_v59 = vshll.u32 %v7210_v31, 16 }
  0xc9   : > { %4764 = vmatmul.mubr.msk.bf16.gmra.mrb[12].mxu1 %vm510_vm1, %v1142_v0  ;;  %v1159_v0 = vrot.slane %v7199_v43, 3  ;;  %v7211_v43 = vshrl.u32 %v7210_v31, 16 }
  0xca   : > { %4767 = vmatprep.mubr.msk.bf16.mxu1 %vm510_vm1, %v1146_v25  ;;  %v7202_v25 = vshrl.u32 %v7201_v22, 16  ;;  %v1167_v12 = vrot.slane %v7205_v41, 3  ;;  %v7217_v41 = vld [vmem:[#allocation23_spill] sm:$0xff] }
  0xcb   : > { %v1161_v51 = vor.u32 %v1160_v38, %v1159_v0  ;;  %v1175_v0 = vrot.slane %v7211_v43, 3  ;;  %v1176_v38 = vrot.slane %v7212_v59, 4 }
  0xcc   : > { %v1163_v10 = vrot.slane %v7202_v25, 3 }
  0xcd   : > { %v1177_v22 = vor.u32 %v1176_v38, %v1175_v0  ;;  %v6623_v38 = vld [vmem:[%s5595_s25 + $0x6c] sm:$0xf] }
  0xce   : > { %v1165_v15 = vor.u32 %v1164_v35, %v1163_v10 }
  0xcf   : > { %4942 = vmatmul.mubr.msk.bf16.vlgmr.msra.gmra.mrb[0].mxu0 %vm510_vm1, %v7197_v53 }
  0xd0   : > { %4978 = vmatpush3.bf16.msra.mxu0 %v3882_v19  ;;  %4945 = vmatprep.mubr.msk.bf16.mxu0 %vm510_vm1, %v6150_v48  ;;  %v1162_v48 = vsel %vm1102_vm6, %v1157_v57, %v1161_v51  ;;  %v7206_v19 = vshll.u32 %v7204_v7, 16  ;;  %v1166_v27 = vsel %vm1102_vm6, %v1161_v51, %v1165_v15  ;;  %v7216_v7 = vld [vmem:[#allocation26_spill] sm:$0xff] }
  0xd1   : > { %4768 = vmatmul.mubr.msk.bf16.gmra.mrb[16].mxu1 %vm510_vm1, %v1150_v42 }
  0xd2   : > { %4771 = vmatprep.mubr.msk.bf16.mxu1 %vm510_vm1, %v1154_v50  ;;  %v1168_v42 = vrot.slane %v7206_v19, 4  ;;  %v5441_v50 = vld [vmem:[%s5595_s25 + $0x94] ss:$0 sps:$4 sm:$0xff]  }
  0xd3   : > { %v1180_v51 = vshrl.u32 %v5441_v50, 16 }
  0xd4   : > { %v1169_v56 = vor.u32 %v1168_v42, %v1167_v12  ;;  %v7218_v12 = vld [vmem:[#allocation2_spill] sm:$0xff] }
  0xd5   : > { %v1182_v25 = vrot.slane %v1180_v51, 3  ;;  %v7227_v51 = vld [vmem:[#allocation11_spill] sm:$0xff] }
  0xd7   : > { %4946 = vmatmul.mubr.msk.bf16.gmra.mrb[4].mxu0 %vm510_vm1, %v6157_v8  ;;  %v7207_v8 = vld [vmem:[#allocation8_spill] sm:$0xff] }
  0xd8   : > { %4949 = vmatprep.mubr.msk.bf16.mxu0 %vm510_vm1, %v6183_v24  ;;  %v7208_v54 = vshrl.u32 %v7207_v8, 16  ;;  %v7209_v29 = vshll.u32 %v7207_v8, 16  ;;  %v1170_v24 = vsel %vm1102_vm6, %v1165_v15, %v1169_v56  ;;  %v7220_v15 = vld [vmem:[#allocation27_spill] sm:$0xff]  ;;  %v7221_v8 = vld [vmem:[#allocation10_spill] sm:$0xff] }
  0xd9   : > { %4772 = vmatmul.mubr.msk.bf16.gmra.mrb[20].mxu1 %vm510_vm1, %v1158_v34  ;;  %v1183_v34 = vshll.u32 %v5441_v50, 16  ;;  %v7225_v50 = vld [vmem:[#allocation30_spill] sm:$0xff] }
  0xda   : > { %4775 = vmatprep.mubr.msk.bf16.mxu1 %vm510_vm1, %v1162_v48  ;;  %v1171_v30 = vrot.slane %v7208_v54, 3  ;;  %v1172_v53 = vrot.slane %v7209_v29, 4  ;;  %v7213_v48 = vld [vmem:[#allocation24_spill] sm:$0xff] }
  0xdb   : > { %v1185_v10 = vrot.slane %v1183_v34, 4  ;;  %v7224_v29 = vld [vmem:[#allocation28_spill] sm:$0xff]  ;;  %v7228_v34 = vshrl.u32 %v7227_v51, 16 }
  0xdc   : > { %v1173_v57 = vor.u32 %v1172_v53, %v1171_v30 }
  0xde   : > { %v1178_v16 = vsel %vm1102_vm6, %v1173_v57, %v1177_v22 }
  0xdf   : > { %4950 = vmatmul.mubr.msk.bf16.gmra.mrb[8].mxu0 %vm510_vm1, %v6192_v28  ;;  %v1174_v28 = vsel %vm1102_vm6, %v1169_v56, %v1173_v57  ;;  %v6603_v56 = vld [vmem:[%s5595_s25 + $0x64] sm:$0xf]  ;;  %v6626_v57 = vld [vmem:[%s5595_s25 + $0x70] sm:$0xf] }
  0xe0   : > { %4953 = vmatprep.mubr.msk.bf16.mxu0 %vm510_vm1, %v6217_v26  ;;  %v1186_v26 = vor.u32 %v1185_v10, %v1182_v25  ;;  %v6633_v10 = vld [vmem:[%s5595_s25 + $0x74] sm:$0xf] }
  0xe1   : > { %4776 = vmatmul.mubr.msk.bf16.gmra.mrb[24].mxu1 %vm510_vm1, %v1166_v27 }
  0xe2   : > { %4779 = vmatprep.mubr.msk.bf16.mxu1 %vm510_vm1, %v1170_v24  ;;  %v1187_v35 = vsel %vm1102_vm6, %v1177_v22, %v1186_v26  ;;  %v7226_v24 = vld [vmem:[#allocation29_spill] sm:$0xff]  ;;  %v3754_v22 = vrot.slane %v7228_v34, 1 }
  0xe7   : > { %4954 = vmatmul.mubr.msk.bf16.gmra.mrb[12].mxu0 %vm510_vm1, %v6222_v18  ;;  %v7214_v18 = vld [vmem:[#allocation22_spill] sm:$0xff] }
  0xe8   : > { %4957 = vmatprep.mubr.msk.bf16.mxu0 %vm510_vm1, %v6238_v17  ;;  %v7215_v17 = vld [vmem:[#allocation25_spill] sm:$0xff] }
  0xe9   : > { %4780 = vmatmul.mubr.msk.bf16.gmra.mrb[28].mxu1 %vm510_vm1, %v1174_v28  ;;  %v7229_v28 = vshll.u32 %v7227_v51, 16 }
  0xea   : > { %4783 = vmatprep.mubr.msk.bf16.mxu1 %vm510_vm1, %v1178_v16  ;;  %v6636_v16 = vld [vmem:[%s5595_s25 + $0x78] sm:$0xf] }
  0xeb   : > { %v3755_v25 = vrot.slane %v7229_v28, 2 }
  0xef   : > { %4958 = vmatmul.mubr.msk.bf16.gmra.mrb[16].mxu0 %vm510_vm1, %v6248_v49  ;;  %v7219_v49 = vld [vmem:[#allocation17_spill] sm:$0xff] }
  0xf0   : > { %4961 = vmatprep.mubr.msk.bf16.mxu0 %vm510_vm1, %v7213_v48  ;;  %v3743_v19 = vshrl.u32 %v7219_v49, 16  ;;  %v3746_v42 = vshll.u32 %v7219_v49, 16  ;;  %v4323_v49 = vcombine.low %v6633_v10, %v6636_v16 }
  0xf1   : > { %4784 = vmatmul.mubr.msk.bf16.gmra.mrb[32].mxu1 %vm510_vm1, %v1187_v35 }
  0xf2   : > { %4789 = vmatprep.mubr.msk.bf16.mxu1 %vm510_vm1, %v7214_v18  ;;  %v3748_v27 = vrot.slane %v3746_v42, 2 }
  0xf7   : > { %4962 = vmatmul.mubr.msk.bf16.gmra.mrb[20].mxu0 %vm510_vm1, %v7215_v17 }
  0xf8   : > { %4965 = vmatprep.mubr.msk.bf16.mxu0 %vm510_vm1, %v7216_v7  ;;  %v4322_v7 = vcombine.low %v6623_v38, %v6626_v57 }
  0xf9   : > { %4790 = vmatmul.mubr.msk.bf16.vlgmr.msra.gmra.mrb[0].mxu1 %vm510_vm1, %v7217_v41 }
  0xfa   : > { %5016 = vmatpush3.bf16.msra.mxu1 %v7218_v12  ;;  %4793 = vmatprep.mubr.msk.bf16.mxu1 %vm510_vm1, %v6302_v3  ;;  %v6606_v3 = vld [vmem:[%s5595_s25 + $0x68] sm:$0xf] }
  0xfb   : > { %v4321_v53 = vcombine.low %v6603_v56, %v6606_v3 }
  0xfd   : > { %v1689_v0 = vshrl.u32 %v4321_v53, 16  ;;  %v1692_v59 = vshll.u32 %v4321_v53, 16 }
  0xff   : > { %4966 = vmatmul.mubr.msk.bf16.gmra.mrb[24].mxu0 %vm510_vm1, %v6297_v46  ;;  %v3745_v46 = vrot.slane %v3743_v19, 1  ;;  %v1691_v41 = vrot.slane %v1689_v0, 3  ;;  %v1694_v12 = vrot.slane %v1692_v59, 4  ;;  %v3756_v19 = vor.u32 %v3755_v25, %v3754_v22  ;;  %v7236_v0 = vld [vmem:[#allocation13_spill] sm:$0xff] }
 0x100   : > { %4969 = vmatprep.mubr.msk.bf16.mxu0 %vm510_vm1, %v6316_v47  ;;  %v7222_v47 = vshrl.u32 %v7221_v8, 16  ;;  %v7237_v59 = vshrl.u32 %v7236_v0, 16  ;;  %v7238_v34 = vshll.u32 %v7236_v0, 16 }
 0x101   : > { %4794 = vmatmul.mubr.msk.bf16.gmra.mrb[4].mxu1 %vm510_vm1, %v6313_v33  ;;  %v7223_v33 = vshll.u32 %v7221_v8, 16  ;;  %v3749_v31 = vor.u32 %v3748_v27, %v3745_v46  ;;  %v1701_v46 = vshll.u32 %v4322_v7, 16  ;;  %v1707_v27 = vshrl.u32 %v4323_v49, 16 }
 0x102   : > { %4797 = vmatprep.mubr.msk.bf16.mxu1 %vm510_vm1, %v7220_v15  ;;  %v3750_v54 = vrot.slane %v7222_v47, 1  ;;  %v1698_v15 = vshrl.u32 %v4322_v7, 16  ;;  %v1710_v8 = vshll.u32 %v4323_v49, 16  ;;  %v6655_v47 = vld [vmem:[%s5595_s25 + $0x7c] sm:$0xf]  ;;  %v3766_v51 = vrot.slane %v7237_v59, 1 }
 0x103   : > { %v3751_v30 = vrot.slane %v7223_v33, 2  ;;  %v3767_v22 = vrot.slane %v7238_v34, 2 }
 0x104   : > { %v1700_v28 = vrot.slane %v1698_v15, 3  ;;  %v6688_v15 = vld [vmem:[%s5595_s25 + $0x8c] sm:$0xf] }
 0x105   : > { %v3752_v43 = vor.u32 %v3751_v30, %v3750_v54  ;;  %v6658_v54 = vld [vmem:[%s5595_s25 + $0x80] sm:$0xf] }
 0x106   : > { %v7233_v30 = vld [vmem:[#allocation14_spill] sm:$0xff]  ;;  %v4324_v25 = vcombine.low %v6655_v47, %v6658_v54 }
 0x107   : > { %4970 = vmatmul.mubr.msk.bf16.gmra.mrb[28].mxu0 %vm510_vm1, %v7224_v29  ;;  %v3753_v26 = vsel %vm3741_vm7, %v3749_v31, %v3752_v43  ;;  %v3757_v33 = vsel %vm3741_vm7, %v3752_v43, %v3756_v19  ;;  %v7234_v29 = vshrl.u32 %v7233_v30, 16  ;;  %v1703_v43 = vrot.slane %v1701_v46, 4  ;;  %v6691_v46 = vld [vmem:[%s5595_s25 + $0x90] sm:$0xf] }
 0x108   : > { %4973 = vmatprep.mubr.msk.bf16.mxu0 %vm510_vm1, %v7225_v50 }
 0x109   : > { %4798 = vmatmul.mubr.msk.bf16.gmra.mrb[8].mxu1 %vm510_vm1, %v7226_v24  ;;  %v3762_v53 = vrot.slane %v7234_v29, 1  ;;  %v6666_v24 = vld [vmem:[%s5595_s25 + $0x84] sm:$0xf]  ;;  %v1704_v7 = vor.u32 %v1703_v43, %v1700_v28  ;;  %v4326_v43 = vcombine.low %v6688_v15, %v6691_v46 }
 0x10a   : > { %4801 = vmatprep.mubr.msk.bf16.mxu1 %vm510_vm1, %v6353_v21  ;;  %v7230_v21 = vld [vmem:[#allocation12_spill] sm:$0xff] }
 0x10b   : > { %v7231_v35 = vshrl.u32 %v7230_v21, 16  ;;  %v7232_v18 = vshll.u32 %v7230_v21, 16  ;;  %v1709_v21 = vrot.slane %v1707_v27, 3 }
 0x10d   : > { %v3758_v48 = vrot.slane %v7231_v35, 1  ;;  %v3759_v17 = vrot.slane %v7232_v18, 2  ;;  %v1712_v35 = vrot.slane %v1710_v8, 4  ;;  %v7239_v8 = vld [vmem:[#allocation15_spill] sm:$0xff] }
 0x10f   : > { %4974 = vmatmul.mubr.msk.bf16.gmra.mrb[32].mxu0 %vm510_vm1, %v6348_v9  ;;  %v3760_v42 = vor.u32 %v3759_v17, %v3758_v48  ;;  %v1695_v9 = vor.u32 %v1694_v12, %v1691_v41  ;;  %v3768_v17 = vor.u32 %v3767_v22, %v3766_v51  ;;  %v1716_v41 = vshrl.u32 %v4324_v25, 16 }
 0x110   : > { %4979 = vmatprep.mubr.msk.bf16.mxu0 %vm510_vm1, %v3753_v26  ;;  %v1713_v12 = vor.u32 %v1712_v35, %v1709_v21 }
 0x111   : > { %4802 = vmatmul.mubr.msk.bf16.gmra.mrb[12].mxu1 %vm510_vm1, %v6368_v58  ;;  %v7235_v58 = vshll.u32 %v7233_v30, 16  ;;  %v3761_v31 = vsel %vm3741_vm7, %v3756_v19, %v3760_v42  ;;  %v1696_v26 = vsel %vm1102_vm6, %v6378_v60, %v1695_v9  ;;  %v1719_v60 = vshll.u32 %v4324_v25, 16 }
 0x112   : > { %4805 = vmatprep.mubr.msk.bf16.mxu1 %vm510_vm1, %v6376_v4  ;;  %v6669_v4 = vld [vmem:[%s5595_s25 + $0x88] sm:$0xf]  ;;  %v1718_v22 = vrot.slane %v1716_v41, 3  ;;  %v1714_v25 = vsel %vm1102_vm6, %v1704_v7, %v1713_v12  ;;  %v1734_v41 = vshrl.u32 %v4326_v43, 16 }
 0x113   : > { %v3763_v50 = vrot.slane %v7235_v58, 2  ;;  %v4325_v48 = vcombine.low %v6666_v24, %v6669_v4  ;;  %v6702_v58 = vld [vmem:[%s5595_s25 + $0x98] sm:$0xf]  ;;  %v1721_v28 = vrot.slane %v1719_v60, 4  ;;  %v1737_v60 = vshll.u32 %v4326_v43, 16 }
 0x115   : > { %v3764_v18 = vor.u32 %v3763_v50, %v3762_v53  ;;  %v1725_v49 = vshrl.u32 %v4325_v48, 16  ;;  %v1728_v19 = vshll.u32 %v4325_v48, 16  ;;  %v6699_v53 = vld [vmem:[%s5595_s25 + $0x94] sm:$0xf] }
 0x116   : > { %v4327_v35 = vcombine.low %v6699_v53, %v6702_v58 }
 0x117   : > { %4980 = vmatmul.mubr.msk.bf16.vlgmr.msra.gmra.mrb[0].mxu0 %vm510_vm1, %v3757_v33  ;;  %v3765_v27 = vsel %vm3741_vm7, %v3760_v42, %v3764_v18  ;;  %v7240_v33 = vshrl.u32 %v7239_v8, 16  ;;  %v3769_v50 = vsel %vm3741_vm7, %v3764_v18, %v3768_v17  ;;  %v1705_v42 = vsel %vm1102_vm6, %v1695_v9, %v1704_v7  ;;  %v6720_v7 = vld [vmem:[%s5595_s25 + $0x9c] sm:$0xf] }
 0x118   : > { %4983 = vmatprep.mubr.msk.bf16.mxu0 %vm510_vm1, %v3761_v31  ;;  %v7242_v31 = vld [vmem:[#allocation16_spill] sm:$0xff]  ;;  %v1730_v21 = vrot.slane %v1728_v19, 4  ;;  %v1722_v18 = vor.u32 %v1721_v28, %v1718_v22  ;;  %v7245_v19 = vld [vmem:[#allocation18_spill] sm:$0xff]  ;;  %v1736_v22 = vrot.slane %v1734_v41, 3  ;;  %v1739_v28 = vrot.slane %v1737_v60, 4 }
 0x119   : > { %4806 = vmatmul.mubr.msk.bf16.gmra.mrb[16].mxu1 %vm510_vm1, %v6390_v39  ;;  %v3770_v30 = vrot.slane %v7240_v33, 1  ;;  %v7241_v39 = vshll.u32 %v7239_v8, 16  ;;  %v7243_v0 = vshrl.u32 %v7242_v31, 16  ;;  %v7244_v51 = vshll.u32 %v7242_v31, 16 }
 0x11a   : > { %4809 = vmatprep.mubr.msk.bf16.mxu1 %vm510_vm1, %v1696_v26  ;;  %v1727_v26 = vrot.slane %v1725_v49, 3  ;;  %v1743_v8 = vshrl.u32 %v4327_v35, 16  ;;  %v1746_v33 = vshll.u32 %v4327_v35, 16 }
 0x11b   : > { %v3771_v29 = vrot.slane %v7241_v39, 2  ;;  %v3774_v59 = vrot.slane %v7243_v0, 1  ;;  %v3775_v34 = vrot.slane %v7244_v51, 2  ;;  %v7246_v39 = vshrl.u32 %v7245_v19, 16 }
 0x11c   : > { %v7248_v0 = vshrl.u32 %v6129_v6, 16  ;;  %v7249_v51 = vshll.u32 %v6129_v6, 16 }
 0x11d   : > { %v3772_v48 = vor.u32 %v3771_v29, %v3770_v30  ;;  %v3776_v9 = vor.u32 %v3775_v34, %v3774_v59  ;;  %v3778_v31 = vrot.slane %v7246_v39, 1  ;;  %v7247_v30 = vshll.u32 %v7245_v19, 16 }
 0x11e   : > { %v3782_v59 = vrot.slane %v7248_v0, 1  ;;  %v3783_v34 = vrot.slane %v7249_v51, 2  ;;  %v3790_v39 = vrot.slane %v3095_v2, 1  ;;  %v3798_v51 = vrot.slane %v3111_v61, 1 }
 0x11f   : > { %4984 = vmatmul.mubr.msk.bf16.gmra.mrb[4].mxu0 %vm510_vm1, %v3765_v27  ;;  %v1731_v27 = vor.u32 %v1730_v21, %v1727_v26  ;;  %v3773_v49 = vsel %vm3741_vm7, %v3768_v17, %v3772_v48  ;;  %v3779_v29 = vrot.slane %v7247_v30, 2  ;;  %v4328_v17 = vcombine.low %v6720_v7, %v6720_v7 }
 0x120   : > { %4987 = vmatprep.mubr.msk.bf16.mxu0 %vm510_vm1, %v3769_v50  ;;  %v3777_v50 = vsel %vm3741_vm7, %v3772_v48, %v3776_v9  ;;  %v1748_v26 = vrot.slane %v1746_v33, 4  ;;  %v3784_v6 = vor.u32 %v3783_v34, %v3782_v59  ;;  %v3799_v34 = vrot.slane %v3107_v45, 2 }
 0x121   : > { %4810 = vmatmul.mubr.msk.bf16.gmra.mrb[20].mxu1 %vm510_vm1, %v1705_v42  ;;  %v1723_v42 = vsel %vm1102_vm6, %v1713_v12, %v1722_v18  ;;  %v1732_v43 = vsel %vm1102_vm6, %v1722_v18, %v1731_v27  ;;  %v3780_v21 = vor.u32 %v3779_v29, %v3778_v31  ;;  %v1740_v12 = vor.u32 %v1739_v28, %v1736_v22  ;;  %v7252_v22 = vld [vmem:[#allocation21_spill] sm:$0xff] }
 0x122   : > { %4813 = vmatprep.mubr.msk.bf16.mxu1 %vm510_vm1, %v1714_v25  ;;  %v1745_v25 = vrot.slane %v1743_v8, 3  ;;  %v1752_v35 = vshrl.u32 %v4328_v17, 16  ;;  %v1755_v48 = vshll.u32 %v4328_v17, 16  ;;  %v7251_v18 = vshll.u32 %v6180_v63, 16 }
 0x123   : > { %v3781_v60 = vsel %vm3741_vm7, %v3776_v9, %v3780_v21  ;;  %v3785_v33 = vsel %vm3741_vm7, %v3780_v21, %v3784_v6  ;;  %v3791_v31 = vrot.slane %v3091_v13, 2  ;;  %v1741_v30 = vsel %vm1102_vm6, %v1731_v27, %v1740_v12 }
 0x124   : > { %v1749_v41 = vor.u32 %v1748_v26, %v1745_v25  ;;  %v3787_v8 = vrot.slane %v7251_v18, 2  ;;  %v1754_v29 = vrot.slane %v1752_v35, 3  ;;  %v3794_v13 = vrot.slane %v3103_v55, 1 }
 0x125   : > { %v3792_v0 = vor.u32 %v3791_v31, %v3790_v39  ;;  %v3795_v27 = vrot.slane %v3099_v62, 2  ;;  %v4358_v28 = vcombine.low %v7252_v22, %v6603_v56  ;;  %v3800_v11 = vor.u32 %v3799_v34, %v3798_v51 }
 0x126   : > { %v1750_v9 = vsel %vm1102_vm6, %v1740_v12, %v1749_v41  ;;  %v3803_v45 = vrot.slane %v3115_v40, 2  ;;  %v4359_v61 = vcombine.low %v6606_v3, %v6623_v38  ;;  %v3806_v17 = vrot.slane %v3127_v36, 1  ;;  %v5458_v38 = vld [vmem:[%s5595_s25 + $0xa8] ss:$0 sps:$4 sm:$0x33]  }
 0x127   : > { %4988 = vmatmul.mubr.msk.bf16.gmra.mrb[8].mxu0 %vm510_vm1, %v3773_v49  ;;  %v7250_v49 = vshrl.u32 %v6180_v63, 16  ;;  %v3796_v55 = vor.u32 %v3795_v27, %v3794_v13  ;;  %v4360_v26 = vcombine.low %v6626_v57, %v6633_v10  ;;  %v3810_v36 = vrot.slane %v3135_v14, 1  ;;  %v173_v27 = vld [vmem:[%s7049_s2 + $0x8] sm:$0xff] }
 0x128   : > { %4991 = vmatprep.mubr.msk.bf16.mxu0 %vm510_vm1, %v3777_v50  ;;  %v1757_v50 = vrot.slane %v1755_v48, 4  ;;  %v3804_v20 = vor.u32 %v3803_v45, %v3802_v23  ;;  %v4361_v57 = vcombine.low %v6636_v16, %v6655_v47  ;;  %v3814_v21 = vrot.slane %v3143_v52, 1 }
 0x129   : > { %4814 = vmatmul.mubr.msk.bf16.gmra.mrb[24].mxu1 %vm510_vm1, %v1723_v42  ;;  %v3786_v19 = vrot.slane %v7250_v49, 1  ;;  %v3797_v62 = vsel %vm3741_vm7, %v3792_v0, %v3796_v55  ;;  %v3801_v56 = vsel %vm3741_vm7, %v3796_v55, %v3800_v11  ;;  %v4362_v35 = vcombine.low %v6658_v54, %v6666_v24 }
 0x12a   : > { %4817 = vmatprep.mubr.msk.bf16.mxu1 %vm510_vm1, %v1732_v43  ;;  %v1758_v2 = vor.u32 %v1757_v50, %v1754_v29  ;;  %v7253_v43 = vshll.u32 %v6287_v5, 16  ;;  %v3805_v44 = vsel %vm3741_vm7, %v3800_v11, %v3804_v20  ;;  %v7254_v5 = vshll.u32 %v6294_v1, 16 }
 0x12b   : > { %v3788_v63 = vor.u32 %v3787_v8, %v3786_v19  ;;  %v3819_v14 = vshrl.u32 %v5458_v38, 16  ;;  %v3822_v48 = vshll.u32 %v5458_v38, 16  ;;  %v4364_v24 = vcombine.low %v6691_v46, %v6699_v53 }
 0x12c   : > { %v1759_v42 = vsel %vm1102_vm6, %v1749_v41, %v1758_v2  ;;  %v3807_v25 = vrot.slane %v7253_v43, 2  ;;  %v3811_v3 = vrot.slane %v7254_v5, 2  ;;  %v4363_v41 = vcombine.low %v6669_v4, %v6688_v15 }
 0x12d   : > { %v3789_v32 = vsel %vm3741_vm7, %v3784_v6, %v3788_v63  ;;  %v3793_v59 = vsel %vm3741_vm7, %v3788_v63, %v3792_v0  ;;  %v7255_v6 = vshll.u32 %v6310_v37, 16  ;;  %v3821_v47 = vrot.slane %v3819_v14, 1  ;;  %v172_v0 = vld [vmem:[%s7049_s2] sm:$0xff] }
 0x12e   : > { %v3808_v40 = vor.u32 %v3807_v25, %v3806_v17  ;;  %v3812_v1 = vor.u32 %v3811_v3, %v3810_v36  ;;  %v3824_v37 = vrot.slane %v3822_v48, 2  ;;  %v4365_v19 = vcombine.low %v6702_v58, %v6720_v7  ;;  %v176_v25 = vld [vmem:[%s7049_s2 + $0x20] sm:$0xff] }
 0x12f   : > { %4992 = vmatmul.mubr.msk.bf16.gmra.mrb[12].mxu0 %vm510_vm1, %v3781_v60  ;;  %v3815_v12 = vrot.slane %v7255_v6, 2 }
 0x130   : > { %4995 = vmatprep.mubr.msk.bf16.mxu0 %vm510_vm1, %v3785_v33  ;;  %v3809_v10 = vsel %vm3741_vm7, %v3804_v20, %v3808_v40  ;;  %v3813_v52 = vsel %vm3741_vm7, %v3808_v40, %v3812_v1  ;;  %v3825_v60 = vor.u32 %v3824_v37, %v3821_v47  ;;  %v179_v20 = vld [vmem:[%s7049_s2 + $0x38] sm:$0xff] }
 0x131   : > { %4818 = vmatmul.mubr.msk.bf16.gmra.mrb[28].mxu1 %vm510_vm1, %v1741_v30  ;;  %v3816_v16 = vor.u32 %v3815_v12, %v3814_v21  ;;  %v183_v47 = vld [vmem:[%s7049_s2 + $0x58] sm:$0xff] }
 0x132   : > { %4821 = vmatprep.mubr.msk.bf16.mxu1 %vm510_vm1, %v1750_v9  ;;  %v174_v9 = vld [vmem:[%s7049_s2 + $0x10] sm:$0xff] }
 0x133   : > { %v3817_v54 = vsel %vm3741_vm7, %v3812_v1, %v3816_v16  ;;  %v3826_v49 = vsel %vm3741_vm7, %v3816_v16, %v3825_v60  ;;  %v182_v1 = vld [vmem:[%s7049_s2 + $0x50] sm:$0xff]  ;;  %v180_v16 = vld [vmem:[%s7049_s2 + $0x40] sm:$0xff] }
 0x137   : > { %4996 = vmatmul.mubr.msk.bf16.gmra.mrb[16].mxu0 %vm510_vm1, %v3789_v32  ;;  %v175_v32 = vld [vmem:[%s7049_s2 + $0x18] sm:$0xff] }
 0x138   : > { %4999 = vmatprep.mubr.msk.bf16.mxu0 %vm510_vm1, %v3793_v59 }
 0x139   : > { %4822 = vmatmul.mubr.msk.bf16.gmra.mrb[32].mxu1 %vm510_vm1, %v1759_v42 }
 0x13a   : > { %4847 = vmatprep.mubr.msk.bf16.mxu1 %vm510_vm1, %v4358_v28 }
 0x13f   : > { %5000 = vmatmul.mubr.msk.bf16.gmra.mrb[20].mxu0 %vm510_vm1, %v3797_v62 }
 0x140   : > { %5003 = vmatprep.mubr.msk.bf16.mxu0 %vm510_vm1, %v3801_v56  ;;  %v178_v56 = vld [vmem:[%s7049_s2 + $0x30] sm:$0xff] }
 0x141   : > { %4848 = vmatmul.mubr.msk.bf16.vlgmr.msra.gmra.mrb[20].mxu1 %vm510_vm1, %v4359_v61 }
 0x142   : > { %4851 = vmatprep.mubr.msk.bf16.mxu1 %vm510_vm1, %v4360_v26 }
 0x147   : > { %5004 = vmatmul.mubr.msk.bf16.gmra.mrb[24].mxu0 %vm510_vm1, %v3805_v44  ;;  %v177_v44 = vld [vmem:[%s7049_s2 + $0x28] sm:$0xff] }
 0x148   : > { %5007 = vmatprep.mubr.msk.bf16.mxu0 %vm510_vm1, %v3809_v10 }
 0x149   : > { %4852 = vmatmul.mubr.msk.bf16.gmra.mrb[24].mxu1 %vm510_vm1, %v4361_v57 }
 0x14a   : > { %4855 = vmatprep.mubr.msk.bf16.mxu1 %vm510_vm1, %v4362_v35 }
 0x14f   : > { %5008 = vmatmul.mubr.msk.bf16.gmra.mrb[28].mxu0 %vm510_vm1, %v3813_v52 }
 0x150   : > { %5011 = vmatprep.mubr.msk.bf16.mxu0 %vm510_vm1, %v3817_v54  ;;  %v181_v54 = vld [vmem:[%s7049_s2 + $0x48] sm:$0xff] }
 0x151   : > { %4856 = vmatmul.mubr.msk.bf16.gmra.mrb[28].mxu1 %vm510_vm1, %v4363_v41 }
 0x152   : > { %4859 = vmatprep.mubr.msk.bf16.mxu1 %vm510_vm1, %v4364_v24 }
 0x157   : > { %5012 = vmatmul.mubr.msk.bf16.gmra.mrb[32].mxu0 %vm510_vm1, %v3826_v49 }
 0x159   : > { %4860 = vmatmul.mubr.msk.bf16.gmra.mrb[32].mxu1 %vm510_vm1, %v4365_v19 }
 0x1cc   : > { %v4791_v4 = vpop.f32.mrb[0].mxu1 }
 0x1cd   : > { %v1851_v15 = vpop.f32.mrb[1].mxu1  ;;  %v5017_v13 = vadd.f32 %v4791_v4, %v174_v9  ;;  %v187_v9 = vld [vmem:[%s7049_s2 + $0x78] sm:$0xff] }
 0x1ce   : > { %v4792_v46 = vpop.f32.mrb[2].mxu1  ;;  %v5019_v59 = vadd.f32 %v1851_v15, %v172_v0 }
 0x1cf   : > { %v1854_v53 = vpop.f32.mrb[3].mxu1  ;;  %v5021_v34 = vadd.f32 %v4792_v46, %v175_v32 }
 0x1d0   : > { %v5023_v28 = vadd.f32 %v1854_v53, %v173_v27 }
 0x1d4   : > { %v4795_v18 = vpop.f32.mrb[4].mxu1 }
 0x1d5   : > { %v1867_v8 = vpop.f32.mrb[5].mxu1  ;;  %v5025_v40 = vadd.f32 %v4795_v18, %v178_v56  ;;  %v188_v56 = vld [vmem:[%s7049_s2 + $0x80] sm:$0xff] }
 0x1d6   : > { %v4796_v33 = vpop.f32.mrb[6].mxu1  ;;  %v5027_v36 = vadd.f32 %v1867_v8, %v176_v25 }
 0x1d7   : > { %v1870_v39 = vpop.f32.mrb[7].mxu1  ;;  %v5029_v3 = vadd.f32 %v4796_v33, %v179_v20 }
 0x1d8   : > { %v5031_v10 = vadd.f32 %v1870_v39, %v177_v44  ;;  %v186_v39 = vld [vmem:[%s7049_s2 + $0x70] sm:$0xff] }
 0x1dc   : > { %v4799_v31 = vpop.f32.mrb[8].mxu1 }
 0x1dd   : > { %v6825_v30 = vpop.f32.mrb[9].mxu1  ;;  %v5033_v41 = vadd.f32 %v4799_v31, %v182_v1 }
 0x1de   : > { %v6827_v29 = vpop.f32.mrb[10].mxu1  ;;  %v5035_v60 = vadd.f32 %v6825_v30, %v180_v16  ;;  %v192_v16 = vld [vmem:[%s7049_s2 + $0xa0] sm:$0xff] }
 0x1df   : > { %v6829_v50 = vpop.f32.mrb[11].mxu1  ;;  %v5037_v19 = vadd.f32 %v6827_v29, %v183_v47  ;;  %v184_v29 = vld [vmem:[%s7049_s2 + $0x60] sm:$0xff] }
 0x1e0   : > { %v5039_v46 = vadd.f32 %v6829_v50, %v181_v54 }
 0x1e4   : > { %v6831_v58 = vpop.f32.mrb[12].mxu1 }
 0x1e5   : > { %v6833_v7 = vpop.f32.mrb[13].mxu1  ;;  %v5041_v32 = vadd.f32 %v6831_v58, %v186_v39 }
 0x1e6   : > { %v6838_v63 = vpop.f32.mrb[14].mxu1 }
 0x1e7   : > { %v6843_v2 = vpop.f32.mrb[15].mxu1 }
 0x1ea   : > { %v4981_v51 = vpop.f32.mrb[0].mxu0 }
 0x1eb   : > { %v5018_v42 = vadd.f32 %v5017_v13, %v4981_v51  ;;  %v3918_v22 = vpop.f32.mrb[1].mxu0  ;;  %v185_v13 = vld [vmem:[%s7049_s2 + $0x68] sm:$0xff] }
 0x1ec   : > { %v6851_v55 = vpop.f32.mrb[16].mxu1  ;;  %v5020_v11 = vadd.f32 %v5019_v59, %v3918_v22  ;;  %v4982_v62 = vpop.f32.mrb[2].mxu0  ;;  %v5043_v59 = vadd.f32 %v6833_v7, %v184_v29  ;;  %v5047_v58 = vadd.f32 %v6843_v2, %v185_v13  ;;  %v190_v7 = vld [vmem:[%s7049_s2 + $0x90] sm:$0xff] }
 0x1ed   : > { %v6853_v23 = vpop.f32.mrb[17].mxu1  ;;  %5459 = vtanh.f32 %v5018_v42  ;;  %v5022_v45 = vadd.f32 %v5021_v34, %v4982_v62  ;;  %v3921_v61 = vpop.f32.mrb[3].mxu0  ;;  %v5045_v34 = vadd.f32 %v6838_v63, %v187_v9  ;;  %v5049_v20 = vadd.f32 %v6851_v55, %v190_v7  ;;  %v198_v9 = vld [vmem:[%s7049_s2 + $0xd0] sm:$0xff] }
 0x1ee   : > { %v6858_v17 = vpop.f32.mrb[18].mxu1  ;;  %5461 = vtanh.f32 %v5020_v11  ;;  %v5024_v43 = vadd.f32 %v5023_v28, %v3921_v61 }
 0x1ef   : > { %v6863_v26 = vpop.f32.mrb[19].mxu1  ;;  %5463 = vtanh.f32 %v5022_v45 }
 0x1f0   : > { %5465 = vtanh.f32 %v5024_v43  ;;  %v191_v43 = vld [vmem:[%s7049_s2 + $0x98] sm:$0xff] }
 0x1f2   : > { %v4985_v5 = vpop.f32.mrb[4].mxu0 }
 0x1f3   : > { %v5026_v38 = vadd.f32 %v5025_v40, %v4985_v5  ;;  %v3934_v57 = vpop.f32.mrb[5].mxu0  ;;  %v189_v40 = vld [vmem:[%s7049_s2 + $0x88] sm:$0xff] }
 0x1f4   : > { %v5028_v21 = vadd.f32 %v5027_v36, %v3934_v57  ;;  %v4986_v6 = vpop.f32.mrb[6].mxu0  ;;  %v5051_v36 = vadd.f32 %v6853_v23, %v188_v56  ;;  %v5055_v57 = vadd.f32 %v6863_v26, %v189_v40  ;;  %v194_v26 = vld [vmem:[%s7049_s2 + $0xb0] sm:$0xff]  ;;  %v200_v40 = vld [vmem:[%s7049_s2 + $0xe0] sm:$0xff] }
 0x1f5   : > { %5467 = vtanh.f32 %v5026_v38  ;;  %v5030_v12 = vadd.f32 %v5029_v3, %v4986_v6  ;;  %v3937_v35 = vpop.f32.mrb[7].mxu0  ;;  %v5053_v3 = vadd.f32 %v6858_v17, %v191_v43  ;;  %v202_v43 = vld [vmem:[%s7049_s2 + $0xf0] sm:$0xff] }
 0x1f6   : > { %5469 = vtanh.f32 %v5028_v21  ;;  %v5032_v14 = vadd.f32 %v5031_v10, %v3937_v35 }
 0x1f7   : > { %v5460_v48 = vpop.eup %5459  ;;  %5471 = vtanh.f32 %v5030_v12 }
 0x1f8   : > { %v5462_v52 = vpop.eup %5461  ;;  %4136 = vst.msk [vmem:[%s6875_s5 + $0x10] sm:$0xff] %vm4133_vm8, %v5460_v48  ;;  %5473 = vtanh.f32 %v5032_v14 }
 0x1f9   : > { %v5464_v37 = vpop.eup %5463  ;;  %4134 = vst.msk [vmem:[%s6875_s5] sm:$0xff] %vm4133_vm8, %v5462_v52 }
 0x1fa   : > { %v5466_v24 = vpop.eup %5465  ;;  %4137 = vst.msk [vmem:[%s6875_s5 + $0x18] sm:$0xff] %vm4133_vm8, %v5464_v37  ;;  %v4989_v49 = vpop.f32.mrb[8].mxu0  ;;  %v195_v37 = vld [vmem:[%s7049_s2 + $0xb8] sm:$0xff] }
 0x1fb   : > { %4135 = vst.msk [vmem:[%s6875_s5 + $0x8] sm:$0xff] %vm4133_vm8, %v5466_v24  ;;  %v5034_v4 = vadd.f32 %v5033_v41, %v4989_v49  ;;  %v3950_v15 = vpop.f32.mrb[9].mxu0 }
 0x1fc   : > { %v5036_v53 = vadd.f32 %v5035_v60, %v3950_v15  ;;  %v4990_v18 = vpop.f32.mrb[10].mxu0  ;;  %v193_v60 = vld [vmem:[%s7049_s2 + $0xa8] sm:$0xff] }
 0x1fd   : > { %5475 = vtanh.f32 %v5034_v4  ;;  %v5038_v8 = vadd.f32 %v5037_v19, %v4990_v18  ;;  %v3953_v33 = vpop.f32.mrb[11].mxu0 }
 0x1fe   : > { %5477 = vtanh.f32 %v5036_v53  ;;  %v5040_v31 = vadd.f32 %v5039_v46, %v3953_v33 }
 0x1ff   : > { %v5468_v30 = vpop.eup %5467  ;;  %5479 = vtanh.f32 %v5038_v8 }
 0x200   : > { %v5470_v50 = vpop.eup %5469  ;;  %4140 = vst.msk [vmem:[%s6875_s5 + $0x30] sm:$0xff] %vm4133_vm8, %v5468_v30  ;;  %5481 = vtanh.f32 %v5040_v31 }
 0x201   : > { %v5472_v0 = vpop.eup %5471  ;;  %4138 = vst.msk [vmem:[%s6875_s5 + $0x20] sm:$0xff] %vm4133_vm8, %v5470_v50 }
 0x202   : > { %v5474_v27 = vpop.eup %5473  ;;  %4141 = vst.msk [vmem:[%s6875_s5 + $0x38] sm:$0xff] %vm4133_vm8, %v5472_v0  ;;  %v4993_v51 = vpop.f32.mrb[12].mxu0 }
 0x203   : > { %4139 = vst.msk [vmem:[%s6875_s5 + $0x28] sm:$0xff] %vm4133_vm8, %v5474_v27  ;;  %v5042_v42 = vadd.f32 %v5041_v32, %v4993_v51  ;;  %v3966_v22 = vpop.f32.mrb[13].mxu0  ;;  %v196_v32 = vld [vmem:[%s7049_s2 + $0xc0] sm:$0xff] }
 0x204   : > { %v5044_v28 = vadd.f32 %v5043_v59, %v3966_v22  ;;  %v4994_v11 = vpop.f32.mrb[14].mxu0  ;;  %v199_v59 = vld [vmem:[%s7049_s2 + $0xd8] sm:$0xff]  ;;  %v197_v22 = vld [vmem:[%s7049_s2 + $0xc8] sm:$0xff] }
 0x205   : > { %5483 = vtanh.f32 %v5042_v42  ;;  %v5046_v62 = vadd.f32 %v5045_v34, %v4994_v11  ;;  %v3969_v45 = vpop.f32.mrb[15].mxu0 }
 0x206   : > { %5485 = vtanh.f32 %v5044_v28  ;;  %v5048_v63 = vadd.f32 %v5047_v58, %v3969_v45 }
 0x207   : > { %v5476_v61 = vpop.eup %5475  ;;  %5487 = vtanh.f32 %v5046_v62 }
 0x208   : > { %v5478_v2 = vpop.eup %5477  ;;  %4144 = vst.msk [vmem:[%s6875_s5 + $0x50] sm:$0xff] %vm4133_vm8, %v5476_v61  ;;  %5489 = vtanh.f32 %v5048_v63 }
 0x209   : > { %v5480_v25 = vpop.eup %5479  ;;  %4142 = vst.msk [vmem:[%s6875_s5 + $0x40] sm:$0xff] %vm4133_vm8, %v5478_v2 }
 0x20a   : > { %v5482_v44 = vpop.eup %5481  ;;  %4145 = vst.msk [vmem:[%s6875_s5 + $0x58] sm:$0xff] %vm4133_vm8, %v5480_v25  ;;  %v4997_v5 = vpop.f32.mrb[16].mxu0 }
 0x20b   : > { %4143 = vst.msk [vmem:[%s6875_s5 + $0x48] sm:$0xff] %vm4133_vm8, %v5482_v44  ;;  %v5050_v38 = vadd.f32 %v5049_v20, %v4997_v5  ;;  %v3982_v55 = vpop.f32.mrb[17].mxu0 }
 0x20c   : > { %v5052_v10 = vadd.f32 %v5051_v36, %v3982_v55  ;;  %v4998_v21 = vpop.f32.mrb[18].mxu0 }
 0x20d   : > { %5491 = vtanh.f32 %v5050_v38  ;;  %v5054_v6 = vadd.f32 %v5053_v3, %v4998_v21  ;;  %v3985_v23 = vpop.f32.mrb[19].mxu0  ;;  %v203_v3 = vld [vmem:[%s7049_s2 + $0xf8] sm:$0xff]  ;;  %v201_v21 = vld [vmem:[%s7049_s2 + $0xe8] sm:$0xff] }
 0x20e   : > { %5493 = vtanh.f32 %v5052_v10  ;;  %v5056_v12 = vadd.f32 %v5055_v57, %v3985_v23 }
 0x20f   : > { %v5484_v35 = vpop.eup %5483  ;;  %5495 = vtanh.f32 %v5054_v6 }
 0x210   : > { %v5486_v1 = vpop.eup %5485  ;;  %4148 = vst.msk [vmem:[%s6875_s5 + $0x70] sm:$0xff] %vm4133_vm8, %v5484_v35  ;;  %5497 = vtanh.f32 %v5056_v12 }
 0x211   : > { %v5488_v17 = vpop.eup %5487  ;;  %4146 = vst.msk [vmem:[%s6875_s5 + $0x60] sm:$0xff] %vm4133_vm8, %v5486_v1 }
 0x212   : > { %v5490_v14 = vpop.eup %5489  ;;  %4149 = vst.msk [vmem:[%s6875_s5 + $0x78] sm:$0xff] %vm4133_vm8, %v5488_v17  ;;  %v5001_v48 = vpop.f32.mrb[20].mxu0 }
 0x213   : > { %4147 = vst.msk [vmem:[%s6875_s5 + $0x68] sm:$0xff] %vm4133_vm8, %v5490_v14  ;;  %v3998_v52 = vpop.f32.mrb[21].mxu0 }
 0x214   : > { %v4849_v47 = vpop.f32.mrb[20].mxu1  ;;  %v5002_v41 = vpop.f32.mrb[22].mxu0 }
 0x215   : > { %v5057_v54 = vadd.f32 %v4849_v47, %v194_v26  ;;  %v2221_v24 = vpop.f32.mrb[21].mxu1  ;;  %v4001_v49 = vpop.f32.mrb[23].mxu0  ;;  %v206_v47 = vld [vmem:[%s7049_s2 + $0x110] sm:$0xff] }
 0x216   : > { %v5059_v19 = vadd.f32 %v2221_v24, %v192_v16  ;;  %v4850_v4 = vpop.f32.mrb[22].mxu1 }
 0x217   : > { %v5492_v15 = vpop.eup %5491  ;;  %v5058_v46 = vadd.f32 %v5057_v54, %v5001_v48  ;;  %v5061_v53 = vadd.f32 %v4850_v4, %v195_v37  ;;  %v2224_v18 = vpop.f32.mrb[23].mxu1  ;;  %v204_v54 = vld [vmem:[%s7049_s2 + $0x100] sm:$0xff] }
 0x218   : > { %v5494_v8 = vpop.eup %5493  ;;  %4152 = vst.msk [vmem:[%s6875_s5 + $0x90] sm:$0xff] %vm4133_vm8, %v5492_v15  ;;  %v5060_v33 = vadd.f32 %v5059_v19, %v3998_v52  ;;  %v5063_v39 = vadd.f32 %v2224_v18, %v193_v60  ;;  %v207_v19 = vld [vmem:[%s7049_s2 + $0x118] sm:$0xff]  ;;  %v205_v18 = vld [vmem:[%s7049_s2 + $0x108] sm:$0xff] }
 0x219   : > { %v5496_v31 = vpop.eup %5495  ;;  %4150 = vst.msk [vmem:[%s6875_s5 + $0x80] sm:$0xff] %vm4133_vm8, %v5494_v8  ;;  %5499 = vtanh.f32 %v5058_v46  ;;  %v5062_v30 = vadd.f32 %v5061_v53, %v5002_v41 }
 0x21a   : > { %v5498_v29 = vpop.eup %5497  ;;  %4153 = vst.msk [vmem:[%s6875_s5 + $0x98] sm:$0xff] %vm4133_vm8, %v5496_v31  ;;  %5501 = vtanh.f32 %v5060_v33  ;;  %v5064_v50 = vadd.f32 %v5063_v39, %v4001_v49  ;;  %v5005_v0 = vpop.f32.mrb[24].mxu0 }
 0x21b   : > { %4151 = vst.msk [vmem:[%s6875_s5 + $0x88] sm:$0xff] %vm4133_vm8, %v5498_v29  ;;  %5503 = vtanh.f32 %v5062_v30  ;;  %v4014_v13 = vpop.f32.mrb[25].mxu0 }
 0x21c   : > { %5505 = vtanh.f32 %v5064_v50  ;;  %v4853_v27 = vpop.f32.mrb[24].mxu1  ;;  %v5006_v51 = vpop.f32.mrb[26].mxu0 }
 0x21d   : > { %v5065_v34 = vadd.f32 %v4853_v27, %v198_v9  ;;  %v2237_v42 = vpop.f32.mrb[25].mxu1  ;;  %v4017_v58 = vpop.f32.mrb[27].mxu0 }
 0x21e   : > { %v5067_v28 = vadd.f32 %v2237_v42, %v196_v32  ;;  %v4854_v11 = vpop.f32.mrb[26].mxu1 }
 0x21f   : > { %v5066_v62 = vadd.f32 %v5065_v34, %v5005_v0  ;;  %v5069_v45 = vadd.f32 %v4854_v11, %v199_v59  ;;  %v2240_v7 = vpop.f32.mrb[27].mxu1 }
 0x220   : > { %v5068_v63 = vadd.f32 %v5067_v28, %v4014_v13  ;;  %v5071_v61 = vadd.f32 %v2240_v7, %v197_v22 }
 0x221   : > { %5507 = vtanh.f32 %v5066_v62  ;;  %v5070_v56 = vadd.f32 %v5069_v45, %v5006_v51 }
 0x222   : > { %5509 = vtanh.f32 %v5068_v63  ;;  %v5072_v2 = vadd.f32 %v5071_v61, %v4017_v58  ;;  %v5009_v25 = vpop.f32.mrb[28].mxu0 }
 0x223   : > { %v5500_v20 = vpop.eup %5499  ;;  %5511 = vtanh.f32 %v5070_v56  ;;  %v4030_v44 = vpop.f32.mrb[29].mxu0 }
 0x224   : > { %v5502_v36 = vpop.eup %5501  ;;  %4156 = vst.msk [vmem:[%s6875_s5 + $0xb0] sm:$0xff] %vm4133_vm8, %v5500_v20  ;;  %5513 = vtanh.f32 %v5072_v2  ;;  %v4857_v5 = vpop.f32.mrb[28].mxu1 }
 0x225   : > { %v5010_v38 = vpop.f32.mrb[30].mxu0  ;;  %v5504_v55 = vpop.eup %5503  ;;  %4154 = vst.msk [vmem:[%s6875_s5 + $0xa0] sm:$0xff] %vm4133_vm8, %v5502_v36  ;;  %v5073_v57 = vadd.f32 %v4857_v5, %v202_v43 }
 0x226   : > { %v2253_v10 = vpop.f32.mrb[29].mxu1  ;;  %v4033_v6 = vpop.f32.mrb[31].mxu0  ;;  %4157 = vst.msk [vmem:[%s6875_s5 + $0xb8] sm:$0xff] %vm4133_vm8, %v5504_v55 }
 0x227   : > { %v5506_v23 = vpop.eup %5505  ;;  %v5075_v12 = vadd.f32 %v2253_v10, %v200_v40  ;;  %v4858_v35 = vpop.f32.mrb[30].mxu1  ;;  %v5074_v1 = vadd.f32 %v5073_v57, %v5009_v25 }
 0x228   : > { %4155 = vst.msk [vmem:[%s6875_s5 + $0xa8] sm:$0xff] %vm4133_vm8, %v5506_v23  ;;  %v5077_v17 = vadd.f32 %v4858_v35, %v203_v3  ;;  %v2256_v14 = vpop.f32.mrb[31].mxu1 }
 0x229   : > { %v5076_v26 = vadd.f32 %v5075_v12, %v4030_v44  ;;  %v5079_v48 = vadd.f32 %v2256_v14, %v201_v21  ;;  %5515 = vtanh.f32 %v5074_v1 }
 0x22a   : > { %v5078_v16 = vadd.f32 %v5077_v17, %v5010_v38  ;;  %v5013_v37 = vpop.f32.mrb[32].mxu0 }
 0x22b   : > { %5517 = vtanh.f32 %v5076_v26  ;;  %v5080_v52 = vadd.f32 %v5079_v48, %v4033_v6  ;;  %v5508_v41 = vpop.eup %5507  ;;  %v4046_v24 = vpop.f32.mrb[33].mxu0 }
 0x22c   : > { %5519 = vtanh.f32 %v5078_v16  ;;  %v5510_v60 = vpop.eup %5509  ;;  %4160 = vst.msk [vmem:[%s6875_s5 + $0xd0] sm:$0xff] %vm4133_vm8, %v5508_v41  ;;  %v4861_v49 = vpop.f32.mrb[32].mxu1 }
 0x22d   : > { %5521 = vtanh.f32 %v5080_v52  ;;  %v5014_v4 = vpop.f32.mrb[34].mxu0  ;;  %v5512_v15 = vpop.eup %5511  ;;  %4158 = vst.msk [vmem:[%s6875_s5 + $0xc0] sm:$0xff] %vm4133_vm8, %v5510_v60  ;;  %v5081_v46 = vadd.f32 %v4861_v49, %v206_v47 }
 0x22e   : > { %v2269_v53 = vpop.f32.mrb[33].mxu1  ;;  %v4049_v8 = vpop.f32.mrb[35].mxu0  ;;  %4161 = vst.msk [vmem:[%s6875_s5 + $0xd8] sm:$0xff] %vm4133_vm8, %v5512_v15 }
 0x22f   : > { %v5514_v33 = vpop.eup %5513  ;;  %v5083_v39 = vadd.f32 %v2269_v53, %v204_v54  ;;  %v4862_v31 = vpop.f32.mrb[34].mxu1  ;;  %v5082_v30 = vadd.f32 %v5081_v46, %v5013_v37 }
 0x230   : > { %4159 = vst.msk [vmem:[%s6875_s5 + $0xc8] sm:$0xff] %vm4133_vm8, %v5514_v33  ;;  %v5085_v29 = vadd.f32 %v4862_v31, %v207_v19  ;;  %v2272_v50 = vpop.f32.mrb[35].mxu1 }
 0x231   : > { %v5084_v9 = vadd.f32 %v5083_v39, %v4046_v24  ;;  %v5087_v0 = vadd.f32 %v2272_v50, %v205_v18  ;;  %5523 = vtanh.f32 %v5082_v30 }
 0x232   : > { %v5086_v32 = vadd.f32 %v5085_v29, %v5014_v4 }
 0x233   : > { %5525 = vtanh.f32 %v5084_v9  ;;  %v5088_v13 = vadd.f32 %v5087_v0, %v4049_v8  ;;  %v5516_v27 = vpop.eup %5515 }
 0x234   : > { %5527 = vtanh.f32 %v5086_v32  ;;  %4164 = vst.msk [vmem:[%s6875_s5 + $0xf0] sm:$0xff] %vm4133_vm8, %v5516_v27 }
 0x235   : > { %v5518_v59 = vpop.eup %5517  ;;  %5529 = vtanh.f32 %v5088_v13 }
 0x236   : > { %v5520_v51 = vpop.eup %5519  ;;  %4162 = vst.msk [vmem:[%s6875_s5 + $0xe0] sm:$0xff] %vm4133_vm8, %v5518_v59 }
 0x237   : > { %v5522_v34 = vpop.eup %5521  ;;  %4165 = vst.msk [vmem:[%s6875_s5 + $0xf8] sm:$0xff] %vm4133_vm8, %v5520_v51 }
 0x238   : > { %4163 = vst.msk [vmem:[%s6875_s5 + $0xe8] sm:$0xff] %vm4133_vm8, %v5522_v34 }
 0x23b   : > { %v5524_v42 = vpop.eup %5523 }
 0x23c   : > { %4168 = vst.msk [vmem:[%s6875_s5 + $0x110] sm:$0xff] %vm4133_vm8, %v5524_v42 }
 0x23d   : > { %v5526_v22 = vpop.eup %5525 }
 0x23e   : > { %v5528_v58 = vpop.eup %5527  ;;  %4166 = vst.msk [vmem:[%s6875_s5 + $0x100] sm:$0xff] %vm4133_vm8, %v5526_v22 }
 0x23f   : > { %v5530_v28 = vpop.eup %5529  ;;  %4169 = vst.msk [vmem:[%s6875_s5 + $0x118] sm:$0xff] %vm4133_vm8, %v5528_v58 }
 0x240   : > { %4167 = vst.msk [vmem:[%s6875_s5 + $0x108] sm:$0xff] %vm4133_vm8, %v5530_v28 }
 0x241 PF: > { %s13_s12 = sadd.s32 1, %s5538_s12  }
 0x242   : > { %p10_p4 = scmp.ge.s32.totalorder %s13_s12, 4  }
 0x244   :  { %12 = sbr.rel (!%p10_p4) target bundleno = 1 (0x1), region = 70 }

// kernel: location_head_forward.2
= control target key start
LH: loop header
LB: loop body
LE: loop exit
PB: predicated region body
PF: predicated region fallthrough
CT: control target
= control target key end

     0   :  { %11 = vsyncpa [#allocation3], 0  ;;  %s6186_s18 = smov 0   ;;  %s7931_s0 = inlined_call_operand.vmem [shape: bf16[2,352,4], index: 0, kind: input, shape index: {}]   ;;  %s7932_s1 = inlined_call_operand.vmem [shape: bf16[9,4,8], index: 1, kind: input, shape index: {}]   ;;  %s7933_s2 = inlined_call_operand.hbm [shape: f32[288,1], index: 2, kind: input, shape index: {}]   ;;  %s7934_s3 = inlined_call_operand.vmem [shape: bf16[2,352,8], index: 3, kind: output, shape index: {0}]   ;;  %s7935_s4 = inlined_call_operand.vmem [shape: f32[2,1,8], index: 4, kind: output, shape index: {1}]   ;;  %s7936_s5 = inlined_call_operand.vmem [shape: f32[2,1,8], index: 5, kind: output, shape index: {2}]  }
   0x1 LB: > { %s6192_s19 = sadd.s32 4294967295, %s6150_s18   ;;  %p4829_p0 = scmp.ge.s32.totalorder %s6150_s18, 1  ;;  %s6150_s18 = sphi %s6186_s18, %s17_s18  }
   0x2   : > { %p168_p1 = scmp.lt.s32.totalorder %s6150_s18, 3  ;;  %s6152_s20 = smov [#allocation2]  }
   0x3   : > { %s183_s21 = sshll.u32 %s6152_s20, 4  ;;  %p7937_p3 = scmp.eq.s32.totalorder %s6192_s19, 0  ;;  %s184_s21 = int_to_ptr.vmem [resolvable:$true] %s183_s21 }
   0x4   : > { %p6196_p2 = pnand %p4829_p0, %p168_p1  ;;  %s6112_s26 = scalar_lea.hbm %s7933_s2, 4608 }
   0x5   : > { %p6113_p6 = scmp.ne.s32.totalorder %s7933_s2, %s6112_s26  ;;  %p6119_p10 = scmp.lt.u32.totalorder %s6112_s26, %s7933_s2 }
   0x6   : > { %s8022_s22 = scalar_select %p6196_p2, 1, 0 }
   0x7   : > { %p5996_p4 = pneg %p6196_p2 }
   0x9   : > { %p6205_p5 = pnand %p7937_p3, %p5996_p4 }
   0xb   : > { %p6114_p7 = pneg %p6205_p5 }
   0xd   : > { %p6115_p8 = pnand %p6114_p7, %p6113_p6 }
   0xf   : > { %p6116_p9 = pneg %p6115_p8 }
  0x11   : > { %p6121_p11 = pnand %p6119_p10, %p6116_p9 }
  0x13   : > { %6124 = shalt.err (!%p6121_p11)
}
  0x14   : > { %s6125_s6 = scalar_lea.vmem %s184_s21, 4608  ;;  %p6133_p1 = scmp.lt.s32.totalorder %s184_s21, %s184_s21 }
  0x15   : > { %p6126_p12 = scmp.ne.s32.totalorder %s184_s21, %s6125_s6  ;;  %p6134_p4 = scmp.lt.s32.totalorder %s6125_s6, %s6125_s6 }
  0x17   : > { %p6128_p13 = pnand %p6126_p12, %p6114_p7  ;;  %p6135_p3 = por %p6134_p4, %p6133_p1 }
  0x19   : > { %p6129_p0 = pneg %p6128_p13 }
  0x1b   : > { %p6136_p2 = pnand %p6135_p3, %p6129_p0 }
  0x1d   : > { %6139 = shalt.err (!%p6136_p2)
}
  0x1e   : > { %s6153_s7 = smov 128   ;;  %s6154_s8 = smov 8  }
  0x1f   : > { %5999 = dma.hbm_to_vmem [thread:$0]  (!%p6205_p5), %s7933_s2, 4608, %s184_s21, [#allocation3], %s6153_s7, %s6153_s7, %s6154_s8  }
  0x20   : > { %p8024_p6 = scmp.ne.s32.totalorder %s8022_s22, 0 }
  0x22   : > { %207 = sbr.rel (%p8024_p6) target bundleno = 617 (0x269), region = 32 }
  0x29   : > { %p8025_p8 = scmp.eq.s32.totalorder %s6192_s19, 0 }
  0x2b   : > { %6145 = dma.done.wait (%p8025_p8), [#allocation3], 4608   ;;  %p8026_p7 = pmov %p8025_p8 }
  0x2c   : > { %p241_p2 = scmp.lt.s32.totalorder %s6192_s19, 1  ;;  %vm485_vm0 = vcmask 1041408   ;;  %v4951_v0 = vld [vmem:[%s7932_s1 + $0x8] sm:$0x3]  ;;  %v4836_v1 = vld [vmem:[%s7932_s1 + $0x2] sm:$0x3] }
  0x2d   : > { %6147 = vsyncadd (%p8026_p7), [#allocation3], 4294962688  ;;  %vm430_vm1 = vcmask 31744   ;;  %5985 = vmatprep.subr.msk.bf16.mxu0 %vm485_vm0, %v4951_v0  ;;  %v6251_v2 = vsel %vm485_vm0, %v4951_v0, 0  ;;  %5981 = vmatprep.subr.msk.bf16.mxu1 %vm485_vm0, %v4836_v1  ;;  %v487_v3 = vsel %vm485_vm0, %v4836_v1, 0  ;;  %vm392_vm2 = vcmask 1044480  }
  0x2e   : > { %s8183_s19 = smov (!%p241_p2, %s6192_s19), 1  ;;  %8027 = vst [vmem:[#allocation5_spill] sm:$0xff] %v6251_v2  ;;  %5502 = vmatpush3.bf16.msra.mxu0 %v6251_v2  ;;  %5350 = vmatpush3.bf16.msra.mxu1 %v487_v3  ;;  %v4988_v13 = vld [vmem:[%s7932_s1 + $0xa] sm:$0x3]  ;;  %v295_v25 = vld [vmem:[%s7932_s1] sm:$0x3] }
  0x2f   : > { %s5991_s11 = smul.u32 176, %s8183_s19  ;;  %5987 = vmatprep.subr.msk.bf16.mxu0 %vm485_vm0, %v4988_v13  ;;  %v2634_v18 = vsel %vm485_vm0, %v4988_v13, 0  ;;  %5982 = vmatprep.subr.msk.bf16.mxu1 %vm485_vm0, %v295_v25  ;;  %v895_v34 = vsel %vm485_vm0, %v295_v25, 0  ;;  %vm2430_vm3 = vsmask.f32 7424  ;;  %vm3405_vm6 = vcmask 1046528   ;;  %s253_s17 = scalar_lea.vmem %s7935_s4, %s8183_s19 }
  0x30   : > { %vm669_vm4 = vsmask.f32 5376  ;;  %vm1080_vm5 = vsmask.f32 4352  ;;  %vm4521_vm7 = vcmask 60416   ;;  %vm4327_vm9 = vcmask 64512   ;;  %s256_s22 = scalar_lea.vmem %s7936_s5, %s8183_s19 }
  0x31   : > { %s6241_s14 = scalar_lea.vmem %s7931_s0, %s5991_s11  ;;  %s7325_s16 = scalar_lea.vmem %s7934_s3, %s5991_s11  ;;  %vm3719_vm8 = vsmask.f32 6400  ;;  %vm4405_vm10 = vcmask 57344  }
  0x32   : > { %v6256_v4 = vld [vmem:[%s6241_s14 + $0x10] sm:$0xf]  ;;  %v1438_v5 = vld [vmem:[%s6241_s14 + $0x14] sm:$0xf]  ;;  %v1439_v6 = vld [vmem:[%s6241_s14 + $0x18] sm:$0xf] }
  0x33   : > { %v1440_v7 = vld [vmem:[%s6241_s14 + $0x1c] sm:$0xf]  ;;  %v1441_v8 = vld [vmem:[%s6241_s14 + $0x20] sm:$0xf]  ;;  %v4952_v9 = vcombine.low %v6256_v4, %v1438_v5  ;;  %v6264_v10 = vcombine.low %v1438_v5, %v1439_v6  ;;  %v6272_v14 = vld [vmem:[%s6241_s14 + $0x8] sm:$0xf] }
  0x34   : > { %v6266_v11 = vcombine.low %v1440_v7, %v1441_v8  ;;  %v4953_v12 = vcombine.low %v1439_v6, %v1440_v7  ;;  %v296_v15 = vld [vmem:[%s6241_s14 + $0x4] sm:$0x8]  ;;  %v6282_v17 = vld [vmem:[%s6241_s14 + $0xc] sm:$0xff]   ;;  %v6288_v21 = vld [vmem:[%s6241_s14 + $0x14] sm:$0xff]  }
  0x35   : > { %5503 = vmatprep.mubr.msk.bf16.mxu0 %vm430_vm1, %v4952_v9  ;;  %v6279_v16 = vcombine.low %v296_v15, %v6272_v14  ;;  %v394_v20 = vrot.slane %v6282_v17, 3  ;;  %v1442_v22 = vld [vmem:[%s6241_s14 + $0x24] sm:$0xf]  ;;  %v6292_v23 = vld [vmem:[%s6241_s14 + $0x1c] sm:$0xff]   ;;  %v1443_v26 = vld [vmem:[%s6241_s14 + $0x28] sm:$0xf] }
  0x36   : > { %5504 = vmatmul.mubr.msk.bf16.vlgmr.msra.gmra.mrb[0].mxu0 %vm430_vm1, %v4953_v12  ;;  %v4954_v24 = vcombine.low %v1441_v8, %v1442_v22  ;;  %v1444_v27 = vld [vmem:[%s6241_s14 + $0x2c] sm:$0xf]  ;;  %v396_v29 = vrot.slane %v6288_v21, 3  ;;  %v6302_v30 = vcombine.low %v1442_v22, %v1443_v26  ;;  %v6305_v32 = vld [vmem:[%s6241_s14 + $0x24] sm:$0xff]   ;;  %v398_v33 = vrot.slane %v6292_v23, 3  ;;  %v6334_v50 = vld [vmem:[%s6241_s14 + $0x34] sm:$0xff]  }
  0x37   : > { %5540 = vmatpush3.bf16.msra.mxu0 %v2634_v18  ;;  %v393_v19 = vrot.slane %v6279_v16, 3  ;;  %v4955_v31 = vcombine.low %v1443_v26, %v1444_v27  ;;  %v1445_v36 = vld [vmem:[%s6241_s14 + $0x30] sm:$0xf]  ;;  %v1446_v37 = vld [vmem:[%s6241_s14 + $0x34] sm:$0xf]  ;;  %v400_v44 = vrot.slane %v6305_v32, 3 }
  0x38   : > { %8028 = vst [vmem:[#allocation6_spill] sm:$0xff] %v6302_v30  ;;  %5507 = vmatprep.mubr.msk.bf16.mxu0 %vm430_vm1, %v4954_v24  ;;  %v397_v35 = vsel %vm392_vm2, %v394_v20, %v396_v29  ;;  %v6315_v38 = vld [vmem:[%s6241_s14 + $0x2c] sm:$0xff]   ;;  %v399_v39 = vsel %vm392_vm2, %v396_v29, %v398_v33  ;;  %v6320_v40 = vcombine.low %v1444_v27, %v1445_v36  ;;  %v1447_v42 = vld [vmem:[%s6241_s14 + $0x38] sm:$0xf]  ;;  %v1448_v43 = vld [vmem:[%s6241_s14 + $0x3c] sm:$0xf] }
  0x39   : > { %v395_v28 = vsel %vm392_vm2, %v393_v19, %v394_v20  ;;  %v4956_v41 = vcombine.low %v1445_v36, %v1446_v37  ;;  %v6326_v45 = vcombine.low %v1446_v37, %v1447_v42  ;;  %v402_v46 = vrot.slane %v6315_v38, 3  ;;  %v1449_v47 = vld [vmem:[%s6241_s14 + $0x40] sm:$0xf]  ;;  %v1450_v48 = vld [vmem:[%s6241_s14 + $0x44] sm:$0xf]  ;;  %v6049_v6 = vld [vmem:[%s6241_s14 + $0x10] sm:$0xff]  }
  0x3a   : > { %5351 = vmatprep.mubr.msk.bf16.mxu1 %vm430_vm1, %v395_v28  ;;  %8029 = vst [vmem:[#allocation7_spill] sm:$0xff] %v6320_v40  ;;  %v1436_v49 = vld [vmem:[%s6241_s14 + $0xc] sm:$0x8]  ;;  %v6336_v51 = vcombine.low %v1448_v43, %v1449_v47  ;;  %v1451_v52 = vld [vmem:[%s6241_s14 + $0x48] sm:$0xf]  ;;  %v4957_v53 = vcombine.low %v1447_v42, %v1448_v43  ;;  %v401_v55 = vsel %vm392_vm2, %v398_v33, %v400_v44  ;;  %v6346_v60 = vld [vmem:[%s6241_s14 + $0x3c] sm:$0xff]  }
  0x3b   : > { %5352 = vmatmul.mubr.msk.bf16.vlgmr.msra.gmra.mrb[0].mxu1 %vm430_vm1, %v397_v35  ;;  %8030 = vst [vmem:[#allocation8_spill] sm:$0xff] %v6326_v45  ;;  %v6339_v54 = vcombine.low %v1450_v48, %v1451_v52  ;;  %v4958_v56 = vcombine.low %v1449_v47, %v1450_v48  ;;  %v1452_v57 = vld [vmem:[%s6241_s14 + $0x4c] sm:$0xf]  ;;  %v1453_v58 = vld [vmem:[%s6241_s14 + $0x50] sm:$0xf]  ;;  %v403_v59 = vsel %vm392_vm2, %v400_v44, %v402_v46  ;;  %v404_v3 = vrot.slane %v6334_v50, 3 }
  0x3c   : > { %5355 = vmatprep.mubr.msk.bf16.mxu1 %vm430_vm1, %v399_v39  ;;  %5388 = vmatpush3.bf16.msra.mxu1 %v895_v34  ;;  %8031 = vst [vmem:[#allocation9_spill] sm:$0xff] %v6336_v51  ;;  %v1454_v61 = vld [vmem:[%s6241_s14 + $0x54] sm:$0xf]  ;;  %v6349_v62 = vcombine.low %v1452_v57, %v1453_v58  ;;  %v6352_v63 = vld [vmem:[%s6241_s14 + $0x58] sm:$0xf]  ;;  %v4914_v1 = vcombine.low %v1436_v49, %v6256_v4  ;;  %v406_v5 = vrot.slane %v6346_v60, 3 }
  0x3d   : > { %8032 = vst [vmem:[#allocation10_spill] sm:$0xff] %v6339_v54  ;;  %v6355_v0 = vcombine.low %v1454_v61, %v6352_v63  ;;  %v6050_v7 = vld [vmem:[%s6241_s14 + $0x18] sm:$0xff]   ;;  %v4959_v12 = vcombine.low %v1451_v52, %v1452_v57  ;;  %v6367_v4 = vld [vmem:[%s6241_s14 + $0x44] sm:$0xff]   ;;  %v2434_v13 = vshll.u32 %v6049_v6, 16  ;;  %v6372_v15 = vld [vmem:[%s7932_s1 + $0xc] sm:$0x3]  ;;  %v405_v19 = vsel %vm392_vm2, %v402_v46, %v404_v3 }
  0x3e   : > { %5508 = vmatmul.mubr.msk.bf16.gmra.mrb[4].mxu0 %vm430_vm1, %v4955_v31  ;;  %8033 = vst [vmem:[#allocation11_spill] sm:$0xff] %v6349_v62  ;;  %v1569_v8 = vshrl.u32 %v4914_v1, 16  ;;  %v1572_v9 = vshll.u32 %v4914_v1, 16  ;;  %v1577_v18 = vshrl.u32 %v6264_v10, 16  ;;  %v4960_v20 = vcombine.low %v1453_v58, %v1454_v61  ;;  %v6377_v22 = vld [vmem:[%s6241_s14 + $0x4c] sm:$0xff]   ;;  %5988 = vmatprep.subr.msk.bf16.mxu0 %vm485_vm0, %v6372_v15  ;;  %v6051_v35 = vld [vmem:[%s6241_s14 + $0x20] sm:$0xff]  }
  0x3f   : > { %5511 = vmatprep.mubr.msk.bf16.mxu0 %vm430_vm1, %v4956_v41  ;;  %8034 = vst [vmem:[#allocation12_spill] sm:$0xff] %v6355_v0  ;;  %v407_v24 = vsel %vm392_vm2, %v404_v3, %v406_v5  ;;  %v2432_v25 = vshrl.u32 %v6049_v6, 16  ;;  %v2436_v26 = vrot.slane %v2434_v13, 1  ;;  %v2439_v27 = vshll.u32 %v6050_v7, 16  ;;  %v6389_v34 = vld [vmem:[%s6241_s14 + $0x5c] sm:$0xf] }
  0x40   : > { %v1580_v28 = vshll.u32 %v6264_v10, 16  ;;  %v1586_v29 = vshrl.u32 %v6266_v11, 16  ;;  %v1589_v31 = vshll.u32 %v6266_v11, 16  ;;  %v408_v33 = vrot.slane %v6367_v4, 3  ;;  %v6054_v11 = vld [vmem:[%s6241_s14 + $0x28] sm:$0xff]   ;;  %v6400_v42 = vld [vmem:[%s6241_s14 + $0x54] sm:$0xff]  }
  0x41   : > { %v410_v10 = vrot.slane %v6377_v22, 3  ;;  %v2437_v36 = vor.u32 %v2436_v26, %v2432_v25  ;;  %v2441_v37 = vrot.slane %v2439_v27, 1  ;;  %v6396_v39 = vrot.slane %v1569_v8, 3  ;;  %v258_v41 = vld [vmem:[%s6241_s14 + $0x4] sm:$0xc]  ;;  %v6407_v46 = vld [vmem:[%s6241_s14 + $0x5c] sm:$0xff]  }
  0x42   : > { %v6402_v43 = vrot.slane %v1572_v9, 4  ;;  %v4961_v44 = vcombine.low %v6352_v63, %v6389_v34  ;;  %v6409_v47 = vrot.slane %v1577_v18, 3  ;;  %v409_v48 = vsel %vm392_vm2, %v406_v5, %v408_v33  ;;  %v6421_v63 = vld [vmem:[%s6241_s14 + $0x64] sm:$0xff]   ;;  %v6058_v6 = vld [vmem:[%s6241_s14 + $0x38] sm:$0xff]  }
  0x43   : > { %5356 = vmatmul.mubr.msk.bf16.gmra.mrb[4].mxu1 %vm430_vm1, %v401_v55  ;;  %v2443_v49 = vshrl.u32 %v6050_v7, 16  ;;  %v2447_v52 = vshll.u32 %v6051_v35, 16  ;;  %v6413_v55 = vrot.slane %v1580_v28, 4  ;;  %v2442_v57 = vsel %vm2430_vm3, %v2437_v36, %v2441_v37  ;;  %v6059_v18 = vld [vmem:[%s6241_s14 + $0x40] sm:$0xff]   ;;  %v6062_v36 = vld [vmem:[%s6241_s14 + $0x48] sm:$0xff]  }
  0x44   : > { %5359 = vmatprep.mubr.msk.bf16.mxu1 %vm430_vm1, %v403_v59  ;;  %8035 = vst [vmem:[#allocation13_spill] sm:$0xff] %v6402_v43  ;;  %8036 = vst [vmem:[#allocation14_spill] sm:$0xff] %v6409_v47  ;;  %v2455_v58 = vshll.u32 %v6054_v11, 16  ;;  %v6417_v59 = vrot.slane %v1586_v29, 3  ;;  %v412_v61 = vrot.slane %v6400_v42, 3  ;;  %v2451_v1 = vshrl.u32 %v6051_v35, 16 }
  0x45   : > { %8037 = vst [vmem:[#allocation15_spill] sm:$0xff] %v6413_v55  ;;  %v6424_v3 = vcombine.low %v258_v41, %v6272_v14  ;;  %v414_v5 = vrot.slane %v6407_v46, 3  ;;  %v2445_v7 = vor.u32 %v2443_v49, %v2441_v37  ;;  %v2449_v8 = vrot.slane %v2447_v52, 1  ;;  %v6433_v14 = vld [vmem:[%s6241_s14 + $0x6c] sm:$0xff]   ;;  %v6448_v35 = vld [vmem:[%s6241_s14 + $0x7c] sm:$0xff]  }
  0x46   : > { %5512 = vmatmul.mubr.msk.bf16.gmra.mrb[8].mxu0 %vm430_vm1, %v4957_v53  ;;  %v6055_v53 = vld [vmem:[%s6241_s14 + $0x30] sm:$0xff]   ;;  %v2459_v9 = vshrl.u32 %v6054_v11, 16  ;;  %v2457_v13 = vrot.slane %v2455_v58, 1  ;;  %v2471_v25 = vshll.u32 %v6058_v6, 16  ;;  %v413_v27 = vsel %vm392_vm2, %v410_v10, %v412_v61  ;;  %v6462_v58 = vld [vmem:[%s7932_s1 + $0x4] sm:$0x3] }
  0x47   : > { %5515 = vmatprep.mubr.msk.bf16.mxu0 %vm430_vm1, %v4958_v56  ;;  %v411_v56 = vsel %vm392_vm2, %v408_v33, %v410_v10  ;;  %v2450_v28 = vsel %vm2430_vm3, %v2445_v7, %v2449_v8  ;;  %v3184_v29 = vsel %vm485_vm0, %v6372_v15, 0  ;;  %v416_v33 = vrot.slane %v6421_v63, 3  ;;  %5983 = vmatprep.subr.msk.bf16.mxu1 %vm485_vm0, %v6462_v58  ;;  %v6604_v30 = vld [vmem:[%s6241_s14 + $0x80] sm:$0xff]  }
  0x48   : > { %v418_v37 = vrot.slane %v6433_v14, 3  ;;  %v2467_v11 = vshrl.u32 %v6055_v53, 16  ;;  %v2473_v15 = vrot.slane %v2471_v25, 1  ;;  %v2475_v49 = vshrl.u32 %v6058_v6, 16  ;;  %v6477_v25 = vld [vmem:[%s6241_s14 + $0x84] sm:$0xff]  }
  0x49   : > { %v7939_v6 = vshrl.u32 %v6282_v17, 16  ;;  %v7940_v7 = vshll.u32 %v6282_v17, 16  ;;  %v7950_v26 = vshrl.u32 %v6315_v38, 16  ;;  %v8042_v54 = vshrl.u32 %v6367_v4, 16 }
  0x4b   : > { %5360 = vmatmul.mubr.msk.bf16.gmra.mrb[8].mxu1 %vm430_vm1, %v405_v19  ;;  %v2453_v19 = vor.u32 %v2451_v1, %v2449_v8  ;;  %v6466_v1 = vld [vmem:[%s6241_s14 + $0x50] sm:$0xff]   ;;  %v7941_v8 = vshrl.u32 %v6288_v21, 16  ;;  %v717_v2 = vrot.slane %v7950_v26, 2  ;;  %v8040_v26 = vshll.u32 %v6334_v50, 16 }
  0x4c   : > { %5363 = vmatprep.mubr.msk.bf16.mxu1 %vm430_vm1, %v407_v24  ;;  %v6439_v24 = vld [vmem:[%s6241_s14 + $0x74] sm:$0xff]   ;;  %v744_v51 = vrot.slane %v8042_v54, 2 }
  0x4d   : > { %v2458_v41 = vsel %vm2430_vm3, %v2453_v19, %v2457_v13  ;;  %v420_v52 = vrot.slane %v6439_v24, 3  ;;  %v2477_v19 = vor.u32 %v2475_v49, %v2473_v15  ;;  %v6491_v49 = vld [vmem:[%s6241_s14 + $0x94] ss:$0 sps:$4 sm:$0x77]  }
  0x4e   : > { %5516 = vmatmul.mubr.msk.bf16.gmra.mrb[12].mxu0 %vm430_vm1, %v4959_v12  ;;  %v2463_v12 = vshll.u32 %v6055_v53, 16  ;;  %v7945_v53 = vrot.slane %v6448_v35, 3 }
  0x4f   : > { %5519 = vmatprep.mubr.msk.bf16.mxu0 %vm430_vm1, %v4960_v20  ;;  %v6436_v20 = vrot.slane %v1589_v31, 4  ;;  %v415_v31 = vsel %vm392_vm2, %v412_v61, %v414_v5 }
  0x50   : > { %v2465_v10 = vrot.slane %v2463_v12, 1 }
  0x52   : > { %v2469_v61 = vor.u32 %v2467_v11, %v2465_v10  ;;  %v2491_v11 = vshrl.u32 %v6062_v36, 16 }
  0x53   : > { %5364 = vmatmul.mubr.msk.bf16.gmra.mrb[12].mxu1 %vm430_vm1, %v409_v48  ;;  %v2479_v48 = vshll.u32 %v6059_v18, 16 }
  0x54   : > { %5367 = vmatprep.mubr.msk.bf16.mxu1 %vm430_vm1, %v411_v56  ;;  %v2483_v56 = vshrl.u32 %v6059_v18, 16  ;;  %v7942_v18 = vshll.u32 %v6288_v21, 16 }
  0x56   : > { %5520 = vmatmul.mubr.msk.bf16.gmra.mrb[16].mxu0 %vm430_vm1, %v4961_v44  ;;  %v2461_v44 = vor.u32 %v2459_v9, %v2457_v13  ;;  %v417_v9 = vsel %vm392_vm2, %v414_v5, %v416_v33  ;;  %v2481_v13 = vrot.slane %v2479_v48, 1  ;;  %v2495_v48 = vshll.u32 %v6466_v1, 16 }
  0x57   : > { %5541 = vmatprep.mubr.msk.bf16.mxu0 %vm430_vm1, %v2442_v57  ;;  %v2487_v57 = vshll.u32 %v6062_v36, 16  ;;  %v421_v36 = vsel %vm392_vm2, %v418_v37, %v420_v52 }
  0x58   : > { %v2466_v12 = vsel %vm2430_vm3, %v2461_v44, %v2465_v10  ;;  %v2485_v5 = vor.u32 %v2483_v56, %v2481_v13  ;;  %v419_v44 = vsel %vm392_vm2, %v416_v33, %v418_v37  ;;  %v2474_v10 = vsel %vm2430_vm3, %v2469_v61, %v2473_v15 }
  0x59   : > { %v7944_v56 = vshrl.u32 %v6292_v23, 16  ;;  %v423_v33 = vsel %vm392_vm2, %v420_v52, %v7945_v53  ;;  %v7951_v15 = vrot.slane %v6477_v25, 3  ;;  %v7943_v61 = vshll.u32 %v6292_v23, 16 }
  0x5a   : > { %v7952_v53 = vshll.u32 %v6315_v38, 16 }
  0x5b   : > { %5368 = vmatmul.mubr.msk.bf16.gmra.mrb[16].mxu1 %vm430_vm1, %v413_v27  ;;  %v681_v27 = vrot.slane %v7939_v6, 2  ;;  %v699_v52 = vrot.slane %v7944_v56, 2 }
  0x5c   : > { %5371 = vmatprep.mubr.msk.bf16.mxu1 %vm430_vm1, %v415_v31  ;;  %v2489_v31 = vrot.slane %v2487_v57, 1  ;;  %v6507_v57 = vld [vmem:[%s6241_s14 + $0x58] sm:$0xff]   ;;  %v720_v0 = vrot.slane %v7952_v53, 3 }
  0x5d   : > { %v2507_v56 = vshrl.u32 %v6507_v57, 16 }
  0x5e   : > { %5542 = vmatmul.mubr.msk.bf16.vlgmr.msra.gmra.mrb[0].mxu0 %vm430_vm1, %v2450_v28  ;;  %v684_v28 = vrot.slane %v7940_v7, 3  ;;  %v6496_v7 = vld [vmem:[%s6241_s14 + $0x8c] sm:$0xff]  }
  0x5f   : > { %5578 = vmatpush3.bf16.msra.mxu0 %v3184_v29  ;;  %5545 = vmatprep.mubr.msk.bf16.mxu0 %vm430_vm1, %v2458_v41  ;;  %v690_v29 = vrot.slane %v7941_v8, 2  ;;  %v693_v41 = vrot.slane %v7942_v18, 3 }
  0x60   : > { %v6493_v6 = vor.u32 %v684_v28, %v681_v27  ;;  %v2493_v27 = vor.u32 %v2491_v11, %v2489_v31  ;;  %v702_v28 = vrot.slane %v7943_v61, 3  ;;  %v6067_v61 = vld [vmem:[%s6241_s14 + $0x60] sm:$0xff]  }
  0x61   : > { %v694_v8 = vor.u32 %v693_v41, %v690_v29  ;;  %v7946_v29 = vshrl.u32 %v6305_v32, 16  ;;  %v7947_v41 = vshll.u32 %v6305_v32, 16 }
  0x62   : > { %v703_v18 = vor.u32 %v702_v28, %v699_v52  ;;  %v7953_v28 = vshrl.u32 %v6334_v50, 16 }
  0x63   : > { %5372 = vmatmul.mubr.msk.bf16.gmra.mrb[20].mxu1 %vm430_vm1, %v417_v9  ;;  %v2482_v9 = vsel %vm2430_vm3, %v2477_v19, %v2481_v13  ;;  %v6516_v37 = vsel %vm669_vm4, %v6493_v6, %v694_v8  ;;  %v426_v13 = vrot.slane %v6496_v7, 3  ;;  %v428_v19 = vrot.slane %v6491_v49, 3 }
  0x64   : > { %5375 = vmatprep.mubr.msk.bf16.mxu1 %vm430_vm1, %v419_v44  ;;  %v2497_v44 = vrot.slane %v2495_v48, 1  ;;  %v711_v11 = vrot.slane %v7947_v41, 3  ;;  %v674_v48 = vshll.u32 %v6424_v3, 16  ;;  %v8038_v41 = vrot.slane %v6448_v35, 3 }
  0x66   : > { %5546 = vmatmul.mubr.msk.bf16.gmra.mrb[4].mxu0 %vm430_vm1, %v2466_v12  ;;  %v2490_v12 = vsel %vm2430_vm3, %v2485_v5, %v2489_v31  ;;  %v2499_v5 = vshrl.u32 %v6466_v1, 16  ;;  %v708_v31 = vrot.slane %v7946_v29, 2  ;;  %v6538_v1 = vsel %vm669_vm4, %v694_v8, %v703_v18 }
  0x67   : > { %5549 = vmatprep.mubr.msk.bf16.mxu0 %vm430_vm1, %v2474_v10  ;;  %v2503_v10 = vshll.u32 %v6507_v57, 16  ;;  %v425_v57 = vsel %vm392_vm2, %v8038_v41, %v7951_v15  ;;  %v8039_v8 = vshrl.u32 %v6424_v3, 16  ;;  %v726_v41 = vrot.slane %v7953_v28, 2 }
  0x68   : > { %v712_v52 = vor.u32 %v711_v11, %v708_v31  ;;  %v6556_v11 = vld [vmem:[%s6241_s14 + $0x68] sm:$0xff]   ;;  %v729_v15 = vrot.slane %v8040_v26, 3  ;;  %v2501_v53 = vor.u32 %v2499_v5, %v2497_v44  ;;  %v676_v28 = vrot.slane %v674_v48, 3  ;;  %v6586_v5 = vld [vmem:[%s6241_s14 + $0x78] sm:$0xff]  }
  0x69   : > { %v673_v31 = vrot.slane %v8039_v8, 2  ;;  %v2505_v3 = vrot.slane %v2503_v10, 1  ;;  %v721_v8 = vor.u32 %v720_v0, %v717_v2  ;;  %v7960_v26 = vshrl.u32 %v6346_v60, 16 }
  0x6a   : > { %v6559_v29 = vsel %vm669_vm4, %v703_v18, %v712_v52  ;;  %v6571_v18 = vld [vmem:[%s7932_s1 + $0xe] sm:$0x3]  ;;  %v730_v62 = vor.u32 %v729_v15, %v726_v41  ;;  %v7975_v2 = vshll.u32 %v6346_v60, 16  ;;  %v7973_v10 = vshll.u32 %v6367_v4, 16 }
  0x6b   : > { %5376 = vmatmul.mubr.msk.bf16.gmra.mrb[24].mxu1 %vm430_vm1, %v421_v36  ;;  %v2498_v36 = vsel %vm2430_vm3, %v2493_v27, %v2497_v44  ;;  %5989 = vmatprep.subr.msk.bf16.mxu0 %vm485_vm0, %v6571_v18  ;;  %v6580_v27 = vsel %vm669_vm4, %v712_v52, %v721_v8  ;;  %v2519_v44 = vshll.u32 %v6556_v11, 16  ;;  %v8041_v48 = vrot.slane %v6477_v25, 3 }
  0x6c   : > { %5379 = vmatprep.mubr.msk.bf16.mxu1 %vm430_vm1, %v423_v33  ;;  %v2515_v33 = vshrl.u32 %v6067_v61, 16  ;;  %v6589_v15 = vsel %vm669_vm4, %v721_v8, %v730_v62  ;;  %v429_v41 = vsel %vm392_vm2, %v426_v13, %v428_v19  ;;  %v738_v0 = vrot.slane %v7975_v2, 3 }
  0x6d   : > { %v427_v52 = vsel %vm392_vm2, %v8041_v48, %v426_v13  ;;  %v2506_v8 = vsel %vm2430_vm3, %v2501_v53, %v2505_v3  ;;  %v2509_v45 = vor.u32 %v2507_v56, %v2505_v3  ;;  %v677_v55 = vor.u32 %v676_v28, %v673_v31 }
  0x6e   : > { %5550 = vmatmul.mubr.msk.bf16.gmra.mrb[8].mxu0 %vm430_vm1, %v2482_v9  ;;  %v2511_v9 = vshll.u32 %v6067_v61, 16  ;;  %v735_v61 = vrot.slane %v7960_v26, 2  ;;  %v747_v26 = vrot.slane %v7973_v10, 3  ;;  %v7968_v13 = vshrl.u32 %v6377_v22, 16 }
  0x6f   : > { %5553 = vmatprep.mubr.msk.bf16.mxu0 %vm430_vm1, %v2490_v12  ;;  %v6577_v12 = vld [vmem:[%s6241_s14 + $0x70] sm:$0xff]   ;;  %v2521_v53 = vrot.slane %v2519_v44, 1  ;;  %v7961_v19 = vshll.u32 %v6377_v22, 16  ;;  %v2535_v28 = vshll.u32 %v6586_v5, 16 }
  0x70   : > { %v2513_v40 = vrot.slane %v2511_v9, 1  ;;  %v2527_v48 = vshll.u32 %v6577_v12, 16  ;;  %v739_v47 = vor.u32 %v738_v0, %v735_v61  ;;  %v748_v56 = vor.u32 %v747_v26, %v744_v51  ;;  %v6633_v0 = vld [vmem:[%s6241_s14 + $0x88] sm:$0xff]  }
  0x71   : > { %v2543_v51 = vshll.u32 %v6604_v30, 16  ;;  %v756_v26 = vrot.slane %v7961_v19, 3 }
  0x72   : > { %v2517_v54 = vor.u32 %v2515_v33, %v2513_v40  ;;  %v6617_v31 = vsel %vm669_vm4, %v730_v62, %v739_v47  ;;  %v2514_v3 = vsel %vm2430_vm3, %v2509_v45, %v2513_v40  ;;  %v6625_v9 = vsel %vm669_vm4, %v739_v47, %v748_v56 }
  0x73   : > { %5380 = vmatmul.mubr.msk.bf16.gmra.mrb[28].mxu1 %vm430_vm1, %v425_v57  ;;  %v753_v57 = vrot.slane %v7968_v13, 2  ;;  %v686_v33 = vsel %vm669_vm4, %v677_v55, %v6493_v6  ;;  %v2523_v62 = vshrl.u32 %v6556_v11, 16  ;;  %v7965_v40 = vshll.u32 %v6400_v42, 16 }
  0x74   : > { %5383 = vmatprep.mubr.msk.bf16.mxu1 %vm430_vm1, %v427_v52  ;;  %v2522_v45 = vsel %vm2430_vm3, %v2517_v54, %v2521_v53  ;;  %v2529_v61 = vrot.slane %v2527_v48, 1  ;;  %v1221_v47 = vsel %vm485_vm0, %v6462_v58, 0  ;;  %v2537_v55 = vrot.slane %v2535_v28, 1 }
  0x75   : > { %v757_v52 = vor.u32 %v756_v26, %v753_v57  ;;  %v2539_v6 = vshrl.u32 %v6586_v5, 16  ;;  %v765_v11 = vrot.slane %v7965_v40, 3  ;;  %v2545_v19 = vrot.slane %v2543_v51, 1  ;;  %v6655_v5 = vld [vmem:[%s6241_s14 + $0x90] sm:$0xff]   ;;  %v2849_v26 = vld [vmem:[%s6241_s14 + $0x18] sm:$0xf] }
  0x76   : > { %5554 = vmatmul.mubr.msk.bf16.gmra.mrb[12].mxu0 %vm430_vm1, %v2498_v36  ;;  %v7962_v36 = vshrl.u32 %v6400_v42, 16  ;;  %v7964_v54 = vshrl.u32 %v6407_v46, 16  ;;  %v7963_v48 = vshll.u32 %v6407_v46, 16  ;;  %v2525_v58 = vor.u32 %v2523_v62, %v2521_v53 }
  0x77   : > { %5557 = vmatprep.mubr.msk.bf16.mxu0 %vm430_vm1, %v2506_v8  ;;  %v2531_v8 = vshrl.u32 %v6577_v12, 16  ;;  %v2547_v57 = vshrl.u32 %v6604_v30, 16  ;;  %v2551_v12 = vshll.u32 %v6633_v0, 16  ;;  %v7966_v53 = vshrl.u32 %v6421_v63, 16 }
  0x78   : > { %v762_v44 = vrot.slane %v7962_v36, 2  ;;  %v6646_v36 = vsel %vm669_vm4, %v748_v56, %v757_v52  ;;  %v771_v56 = vrot.slane %v7964_v54, 2  ;;  %v774_v51 = vrot.slane %v7963_v48, 3 }
  0x79   : > { %v7967_v30 = vshll.u32 %v6421_v63, 16  ;;  %v2541_v62 = vor.u32 %v2539_v6, %v2537_v55  ;;  %v780_v48 = vrot.slane %v7966_v53, 2  ;;  %v6683_v6 = vld [vmem:[%s6241_s14 + $0x98] sm:$0xff]   ;;  %v2553_v40 = vrot.slane %v2551_v12, 1  ;;  %v6700_v12 = vld [vmem:[%s6241_s14 + $0x20] sm:$0xff]  }
  0x7a   : > { %v766_v28 = vor.u32 %v765_v11, %v762_v44  ;;  %v6670_v44 = vld [vmem:[%s6241_s14 + $0x1c] sm:$0xf]  ;;  %v775_v11 = vor.u32 %v774_v51, %v771_v56  ;;  %v2559_v56 = vshll.u32 %v6655_v5, 16  ;;  %v7972_v13 = vshrl.u32 %v6433_v14, 16  ;;  %8044 = vst [vmem:[#allocation17_spill] sm:$0xff] %v6700_v12 }
  0x7b   : > { %5384 = vmatmul.mubr.msk.bf16.gmra.mrb[32].mxu1 %vm430_vm1, %v429_v41  ;;  %v2533_v41 = vor.u32 %v2531_v8, %v2529_v61  ;;  %v783_v54 = vrot.slane %v7967_v30, 3  ;;  %v2555_v8 = vshrl.u32 %v6633_v0, 16  ;;  %v6075_v30 = vld [vmem:[%s6241_s14 + $0xa0] ss:$0 sps:$4 sm:$0x11]  }
  0x7c   : > { %5389 = vmatprep.mubr.msk.bf16.mxu1 %vm430_vm1, %v686_v33  ;;  %v6678_v33 = vor.u32 %v6436_v20, %v6417_v59  ;;  %v6687_v51 = vsel %vm669_vm4, %v766_v28, %v775_v11  ;;  %v7969_v59 = vshll.u32 %v6433_v14, 16  ;;  %v7971_v20 = vshrl.u32 %v6439_v24, 16 }
  0x7d   : > { %v784_v53 = vor.u32 %v783_v54, %v780_v48  ;;  %v2538_v0 = vsel %vm2430_vm3, %v2533_v41, %v2537_v55  ;;  %v789_v48 = vrot.slane %v7972_v13, 2  ;;  %v6716_v41 = vld [vmem:[%s7932_s1 + $0x6] sm:$0x3] }
  0x7e   : > { %5558 = vmatmul.mubr.msk.bf16.gmra.mrb[16].mxu0 %vm430_vm1, %v2514_v3  ;;  %v6666_v3 = vsel %vm669_vm4, %v757_v52, %v766_v28  ;;  %8043 = vst [vmem:[#allocation16_spill] sm:$0xff] %v6678_v33  ;;  %v2549_v52 = vor.u32 %v2547_v57, %v2545_v19  ;;  %v6697_v57 = vcombine.low %v2849_v26, %v6670_v44  ;;  %v792_v28 = vrot.slane %v7969_v59, 3  ;;  %v1457_v33 = vld [vmem:[%s6241_s14 + $0x60] sm:$0xf] }
  0x7f   : > { %5561 = vmatprep.mubr.msk.bf16.mxu0 %vm430_vm1, %v2522_v45  ;;  %v2530_v45 = vsel %vm2430_vm3, %v2525_v58, %v2529_v61  ;;  %v7970_v61 = vshll.u32 %v6439_v24, 16  ;;  %v2546_v58 = vsel %vm2430_vm3, %v2541_v62, %v2545_v19  ;;  %v6703_v54 = vsel %vm669_vm4, %v775_v11, %v784_v53  ;;  %8045 = vst [vmem:[#allocation18_spill] sm:$0xff] %v6716_v41 }
  0x80   : > { %v798_v55 = vrot.slane %v7971_v20, 2  ;;  %v2554_v26 = vsel %vm2430_vm3, %v2549_v52, %v2553_v40  ;;  %v2557_v62 = vor.u32 %v2555_v8, %v2553_v40  ;;  %v2561_v11 = vrot.slane %v2559_v56, 1  ;;  %v6727_v20 = vld [vmem:[%s6241_s14 + $0x28] sm:$0xff]  }
  0x81   : > { %v801_v19 = vrot.slane %v7970_v61, 3  ;;  %v2567_v59 = vshll.u32 %v6683_v6, 16  ;;  %v2563_v61 = vshrl.u32 %v6655_v5, 16  ;;  %8046 = vst [vmem:[#allocation19_spill] sm:$0xff] %v6727_v20  ;;  %v793_v13 = vor.u32 %v792_v28, %v789_v48 }
  0x82   : > { %v2984_v40 = vshll.u32 %v6697_v57, 16  ;;  %v7976_v52 = vshll.u32 %v6448_v35, 16  ;;  %v2571_v48 = vshrl.u32 %v6683_v6, 16  ;;  %v7980_v28 = vshrl.u32 %v6496_v7, 16 }
  0x83   : > { %5390 = vmatmul.mubr.msk.bf16.vlgmr.msra.gmra.mrb[0].mxu1 %vm430_vm1, %v6516_v37  ;;  %v802_v10 = vor.u32 %v801_v19, %v798_v55  ;;  %v7974_v37 = vshrl.u32 %v6448_v35, 16  ;;  %v6738_v5 = vsel %vm669_vm4, %v784_v53, %v793_v13  ;;  %v6752_v19 = vld [vmem:[%s6241_s14 + $0x30] sm:$0xff]   ;;  %v7986_v53 = vshll.u32 %v6496_v7, 16 }
  0x84   : > { %5393 = vmatprep.mubr.msk.bf16.mxu1 %vm430_vm1, %v6538_v1  ;;  %5426 = vmatpush3.bf16.msra.mxu1 %v1221_v47  ;;  %v7982_v1 = vshrl.u32 %v6477_v25, 16  ;;  %v2575_v47 = vshll.u32 %v6075_v30, 16  ;;  %v810_v55 = vrot.slane %v7976_v52, 3  ;;  %v2982_v30 = vshrl.u32 %v6697_v57, 16  ;;  %8047 = vst [vmem:[#allocation20_spill] sm:$0xff] %v6752_v19 }
  0x85   : > { %5984 = vmatprep.subr.msk.bf16.mxu1 %vm485_vm0, %v6716_v41  ;;  %v6741_v8 = vsel %vm669_vm4, %v793_v13, %v802_v10  ;;  %v807_v56 = vrot.slane %v7974_v37, 2  ;;  %v7981_v37 = vshll.u32 %v6477_v25, 16  ;;  %v2565_v52 = vor.u32 %v2563_v61, %v2561_v11 }
  0x86   : > { %5562 = vmatmul.mubr.msk.bf16.gmra.mrb[20].mxu0 %vm430_vm1, %v2530_v45  ;;  %v7979_v45 = vshll.u32 %v6700_v12, 16  ;;  %v816_v13 = vrot.slane %v7982_v1, 2  ;;  %v2577_v41 = vrot.slane %v2575_v47, 1  ;;  %v832_v61 = vshrl.u32 %v6491_v49, 16 }
  0x87   : > { %5565 = vmatprep.mubr.msk.bf16.mxu0 %vm430_vm1, %v2538_v0  ;;  %v2569_v0 = vrot.slane %v2567_v59, 1  ;;  %v2986_v59 = vrot.slane %v2984_v40, 1  ;;  %v811_v2 = vor.u32 %v810_v55, %v807_v56  ;;  %v819_v57 = vrot.slane %v7981_v37, 3 }
  0x88   : > { %v2991_v6 = vrot.slane %v7979_v45, 1  ;;  %v825_v56 = vrot.slane %v7980_v28, 2  ;;  %v8048_v47 = vshll.u32 %v6727_v20, 16  ;;  %v8050_v37 = vshrl.u32 %v6700_v12, 16 }
  0x89   : > { %v2573_v40 = vor.u32 %v2571_v48, %v2569_v0  ;;  %v6768_v45 = vsel %vm669_vm4, %v802_v10, %v811_v2  ;;  %v820_v10 = vor.u32 %v819_v57, %v816_v13  ;;  %v828_v48 = vrot.slane %v7986_v53, 3 }
  0x8a   : > { %v2999_v55 = vrot.slane %v8048_v47, 1  ;;  %v2987_v28 = vor.u32 %v2986_v59, %v2982_v30  ;;  %v2995_v1 = vor.u32 %v8050_v37, %v2991_v6  ;;  %v834_v43 = vrot.slane %v832_v61, 2  ;;  %v6798_v59 = vld [vmem:[%s6241_s14 + $0x40] sm:$0xff]  }
  0x8b   : > { %5394 = vmatmul.mubr.msk.bf16.gmra.mrb[4].mxu1 %vm430_vm1, %v6559_v29  ;;  %v7983_v47 = vshrl.u32 %v6727_v20, 16  ;;  %v6792_v29 = vsel %vm669_vm4, %v811_v2, %v820_v10  ;;  %v829_v13 = vor.u32 %v828_v48, %v825_v56  ;;  %v2562_v57 = vsel %vm2430_vm3, %v2557_v62, %v2561_v11  ;;  %8053 = vst [vmem:[#allocation24_spill] sm:$0xff] %v6798_v59 }
  0x8c   : > { %5397 = vmatprep.mubr.msk.bf16.mxu1 %vm430_vm1, %v6580_v27  ;;  %v835_v27 = vshll.u32 %v6491_v49, 16  ;;  %8052 = vst [vmem:[#allocation23_spill] sm:$0xff] %v6792_v29  ;;  %v2570_v30 = vsel %vm2430_vm3, %v2565_v52, %v2569_v0  ;;  %v2578_v37 = vsel %vm2430_vm3, %v2573_v40, %v2577_v41  ;;  %v7985_v61 = vshrl.u32 %v6752_v19, 16  ;;  %v6818_v52 = vld [vmem:[%s6241_s14 + $0x50] sm:$0xff]   ;;  %v6821_v40 = vld [vmem:[%s6241_s14 + $0x60] sm:$0xff]  }
  0x8d   : > { %v6807_v56 = vsel %vm669_vm4, %v820_v10, %v829_v13  ;;  %v2992_v62 = vsel %vm2430_vm3, %v2987_v28, %v2991_v6  ;;  %v6811_v11 = vsel %vm2430_vm3, %v2995_v1, %v2999_v55  ;;  %v6815_v41 = vsel %vm485_vm0, %v6571_v18, 0  ;;  %8056 = vst [vmem:[#allocation26_spill] sm:$0xff] %v6818_v52  ;;  %8057 = vst [vmem:[#allocation27_spill] sm:$0xff] %v6821_v40  ;;  %v6829_v28 = vld [vmem:[%s6241_s14 + $0x48] sm:$0xff]  }
  0x8e   : > { %5566 = vmatmul.mubr.msk.bf16.gmra.mrb[24].mxu0 %vm430_vm1, %v2546_v58  ;;  %v6780_v58 = vld [vmem:[%s6241_s14 + $0x38] sm:$0xff]   ;;  %v837_v49 = vrot.slane %v835_v27, 3  ;;  %8055 = vst [vmem:[#allocation25_spill] sm:$0xff] %v6807_v56  ;;  %v6825_v48 = vor.u32 %v7983_v47, %v2999_v55  ;;  %8058 = vst [vmem:[#allocation28_spill] sm:$0xff] %v6829_v28  ;;  %v8059_v1 = vshrl.u32 %v6282_v17, 16  ;;  %v8060_v18 = vshll.u32 %v6282_v17, 16 }
  0x8f   : > { %5569 = vmatprep.mubr.msk.bf16.mxu0 %vm430_vm1, %v2554_v26  ;;  %8049 = vst [vmem:[#allocation21_spill] sm:$0xff] %v6780_v58  ;;  %v6788_v26 = vcombine.low %v6389_v34, %v1457_v33  ;;  %v8054_v34 = vshll.u32 %v6752_v19, 16  ;;  %v7984_v2 = vshll.u32 %v6780_v58, 16  ;;  %v7987_v10 = vshrl.u32 %v6780_v58, 16 }
  0x90   : > { %v838_v0 = vor.u32 %v837_v49, %v834_v43  ;;  %v1089_v6 = vrot.slane %v8059_v1, 3  ;;  %v1090_v27 = vrot.slane %v8060_v18, 4  ;;  %v7988_v43 = vshll.u32 %v6798_v59, 16 }
  0x91   : > { %8051 = vst [vmem:[#allocation22_spill] sm:$0xff] %v6788_v26  ;;  %v6802_v33 = vrot.slane %v8054_v34, 1  ;;  %v8062_v49 = vshrl.u32 %v6288_v21, 16  ;;  %v8063_v47 = vshll.u32 %v6288_v21, 16  ;;  %v7990_v21 = vshll.u32 %v6818_v52, 16 }
  0x92   : > { %v6840_v55 = vsel %vm669_vm4, %v829_v13, %v838_v0  ;;  %v6855_v13 = vld [vmem:[%s6241_s14 + $0x58] sm:$0xff]   ;;  %v3023_v53 = vrot.slane %v7988_v43, 1  ;;  %v8071_v26 = vshll.u32 %v6821_v40, 16 }
  0x93   : > { %5398 = vmatmul.mubr.msk.bf16.gmra.mrb[8].mxu1 %vm430_vm1, %v6589_v15  ;;  %8061 = vst [vmem:[#allocation29_spill] sm:$0xff] %v6840_v55  ;;  %v1093_v34 = vrot.slane %v8062_v49, 3  ;;  %v1094_v1 = vrot.slane %v8063_v47, 4  ;;  %v3011_v17 = vor.u32 %v7985_v61, %v6802_v33  ;;  %v3015_v15 = vrot.slane %v7984_v2, 1  ;;  %8064 = vst [vmem:[#allocation30_spill] sm:$0xff] %v6855_v13  ;;  %v6868_v61 = vld [vmem:[%s6241_s14 + $0x68] sm:$0xff]  }
  0x94   : > { %5401 = vmatprep.mubr.msk.bf16.mxu1 %vm430_vm1, %v6617_v31  ;;  %v8065_v31 = vshrl.u32 %v6292_v23, 16  ;;  %8066 = vst [vmem:[#allocation31_spill] sm:$0xff] %v6868_v61  ;;  %v3039_v43 = vrot.slane %v7990_v21, 1  ;;  %v3055_v55 = vrot.slane %v8071_v26, 1  ;;  %v1082_v26 = vshrl.u32 %v6279_v16, 16 }
  0x95   : > { %v1095_v0 = vor.u32 %v1094_v1, %v1093_v34  ;;  %v3019_v18 = vor.u32 %v7987_v10, %v3015_v15  ;;  %v1085_v21 = vshll.u32 %v6279_v16, 16  ;;  %v8079_v16 = vshll.u32 %v6334_v50, 16 }
  0x96   : > { %5570 = vmatmul.mubr.msk.bf16.gmra.mrb[28].mxu0 %vm430_vm1, %v2562_v57  ;;  %v6857_v57 = vor.u32 %v1090_v27, %v1089_v6  ;;  %v8067_v6 = vshll.u32 %v6292_v23, 16  ;;  %v8070_v23 = vshll.u32 %v6305_v32, 16  ;;  %v6930_v29 = vrot.slane %v1082_v26, 3 }
  0x97   : > { %5573 = vmatprep.mubr.msk.bf16.mxu0 %vm430_vm1, %v2570_v30  ;;  %v1097_v30 = vrot.slane %v8065_v31, 3  ;;  %v8069_v31 = vshrl.u32 %v6305_v32, 16  ;;  %v8089_v26 = vshll.u32 %v6346_v60, 16 }
  0x98   : > { %v1098_v27 = vrot.slane %v8067_v6, 4  ;;  %v6877_v1 = vsel %vm1080_vm5, %v6857_v57, %v1095_v0  ;;  %v1102_v6 = vrot.slane %v8070_v23, 4 }
  0x99   : > { %8068 = vst [vmem:[#allocation32_spill] sm:$0xff] %v6877_v1  ;;  %v1101_v10 = vrot.slane %v8069_v31, 3  ;;  %v8075_v31 = vshll.u32 %v6315_v38, 16 }
  0x9a   : > { %v1099_v47 = vor.u32 %v1098_v27, %v1097_v30  ;;  %v8073_v30 = vshrl.u32 %v6315_v38, 16  ;;  %v8074_v27 = vshll.u32 %v6829_v28, 16  ;;  %v8080_v38 = vshrl.u32 %v6798_v59, 16 }
  0x9b   : > { %v1103_v2 = vor.u32 %v1102_v6, %v1101_v10  ;;  %5402 = vmatmul.mubr.msk.bf16.gmra.mrb[12].mxu1 %vm430_vm1, %v6625_v9  ;;  %v8076_v10 = vshll.u32 %v6855_v13, 16  ;;  %v8078_v6 = vshrl.u32 %v6334_v50, 16 }
  0x9c   : > { %v6893_v49 = vsel %vm1080_vm5, %v1095_v0, %v1099_v47  ;;  %v1105_v32 = vrot.slane %v8073_v30, 3  ;;  %v3031_v23 = vrot.slane %v8074_v27, 1  ;;  %v1106_v0 = vrot.slane %v8075_v31, 4  ;;  %5405 = vmatprep.mubr.msk.bf16.mxu1 %vm430_vm1, %v6646_v36 }
  0x9d   : > { %8072 = vst [vmem:[#allocation33_spill] sm:$0xff] %v6893_v49  ;;  %v3047_v9 = vrot.slane %v8076_v10, 1  ;;  %v1109_v30 = vrot.slane %v8078_v6, 3  ;;  %v1110_v27 = vrot.slane %v8079_v16, 4  ;;  %v3027_v31 = vor.u32 %v8080_v38, %v3023_v53 }
  0x9e   : > { %5574 = vmatmul.mubr.msk.bf16.gmra.mrb[32].mxu0 %vm430_vm1, %v2578_v37  ;;  %v6912_v37 = vsel %vm1080_vm5, %v1099_v47, %v1103_v2  ;;  %v8081_v36 = vshrl.u32 %v6829_v28, 16  ;;  %v1107_v10 = vor.u32 %v1106_v0, %v1105_v32  ;;  %v8083_v47 = vshrl.u32 %v6855_v13, 16 }
  0x9f   : > { %5579 = vmatprep.mubr.msk.bf16.mxu0 %vm430_vm1, %v2992_v62  ;;  %8077 = vst [vmem:[#allocation34_spill] sm:$0xff] %v6912_v37  ;;  %v8082_v62 = vshrl.u32 %v6818_v52, 16  ;;  %v8084_v49 = vshrl.u32 %v6821_v40, 16  ;;  %v8085_v6 = vshll.u32 %v6868_v61, 16  ;;  %v1111_v16 = vor.u32 %v1110_v27, %v1109_v30 }
  0xa0   : > { %v3035_v1 = vor.u32 %v8081_v36, %v3031_v23  ;;  %v3051_v37 = vor.u32 %v8083_v47, %v3047_v9  ;;  %v6932_v38 = vrot.slane %v1085_v21, 4  ;;  %v6935_v36 = vsel %vm1080_vm5, %v1103_v2, %v1107_v10 }
  0xa1   : > { %v3043_v34 = vor.u32 %v8082_v62, %v3039_v43  ;;  %v3059_v56 = vor.u32 %v8084_v49, %v3055_v55  ;;  %v3063_v50 = vrot.slane %v8085_v6, 1  ;;  %8086 = vst [vmem:[#allocation35_spill] sm:$0xff] %v6935_v36  ;;  %v8087_v32 = vshrl.u32 %v6346_v60, 16  ;;  %v6943_v62 = vld [vmem:[%s6241_s14 + $0x70] sm:$0xff]  }
  0xa2   : > { %v3008_v49 = vsel %vm2430_vm3, %v6825_v48, %v6802_v33  ;;  %8088 = vst [vmem:[#allocation36_spill] sm:$0xff] %v6943_v62  ;;  %v6946_v30 = vsel %vm1080_vm5, %v1107_v10, %v1111_v16  ;;  %v1114_v21 = vrot.slane %v8089_v26, 4  ;;  %v8090_v27 = vshrl.u32 %v6367_v4, 16  ;;  %v6969_v26 = vld [vmem:[%s6241_s14 + $0x78] sm:$0xff]  }
  0xa3   : > { %v1113_v0 = vrot.slane %v8087_v32, 3  ;;  %v3016_v47 = vsel %vm2430_vm3, %v3011_v17, %v3015_v15  ;;  %v3024_v6 = vsel %vm2430_vm3, %v3019_v18, %v3023_v53  ;;  %v6955_v32 = vsel %vm2430_vm3, %v3027_v31, %v3031_v23  ;;  %v3399_v15 = vld [vmem:[%s6241_s14 + $0x18] sm:$0xe]  ;;  %v6975_v53 = vld [vmem:[%s7932_s1 + $0x10] sm:$0x3]  ;;  %5406 = vmatmul.mubr.msk.bf16.gmra.mrb[16].mxu1 %vm430_vm1, %v6666_v3 }
  0xa4   : > { %v1117_v2 = vrot.slane %v8090_v27, 3  ;;  %v8091_v33 = vshll.u32 %v6367_v4, 16  ;;  %v6960_v36 = vsel %vm2430_vm3, %v3035_v1, %v3039_v43  ;;  %v6963_v10 = vsel %vm2430_vm3, %v3043_v34, %v3047_v9  ;;  %5409 = vmatprep.mubr.msk.bf16.mxu1 %vm430_vm1, %v6687_v51 }
  0xa5   : > { %v6966_v60 = vsel %vm2430_vm3, %v3051_v37, %v3055_v55  ;;  %v1115_v17 = vor.u32 %v1114_v21, %v1113_v0  ;;  %v6982_v4 = vsel %vm2430_vm3, %v3059_v56, %v3063_v50  ;;  %v1088_v43 = vor.u32 %v6932_v38, %v6930_v29 }
  0xa6   : > { %v1118_v48 = vrot.slane %v8091_v33, 4  ;;  %5580 = vmatmul.mubr.msk.bf16.vlgmr.msra.gmra.mrb[0].mxu0 %vm430_vm1, %v6811_v11  ;;  %v8092_v18 = vshrl.u32 %v6377_v22, 16  ;;  %v7994_v3 = vshrl.u32 %v6868_v61, 16  ;;  %v7992_v1 = vshll.u32 %v6943_v62, 16 }
  0xa7   : > { %5616 = vmatpush3.bf16.msra.mxu0 %v6815_v41  ;;  %v6994_v11 = vsel %vm1080_vm5, %v1111_v16, %v1115_v17  ;;  %v8093_v56 = vshll.u32 %v6377_v22, 16  ;;  %5583 = vmatprep.mubr.msk.bf16.mxu0 %vm430_vm1, %v3008_v49  ;;  %v8094_v37 = vshrl.u32 %v6400_v42, 16  ;;  %v8095_v41 = vshll.u32 %v6400_v42, 16 }
  0xa8   : > { %v1119_v55 = vor.u32 %v1118_v48, %v1117_v2  ;;  %v1121_v34 = vrot.slane %v8092_v18, 3  ;;  %v7007_v0 = vcombine.low %v3399_v15, %v6670_v44  ;;  %5990 = vmatprep.subr.msk.bf16.mxu0 %vm485_vm0, %v6975_v53  ;;  %v7993_v22 = vshrl.u32 %v6943_v62, 16 }
  0xa9   : > { %v1122_v23 = vrot.slane %v8093_v56, 4  ;;  %v1125_v51 = vrot.slane %v8094_v37, 3  ;;  %v1126_v31 = vrot.slane %v8095_v41, 4  ;;  %v7991_v16 = vshll.u32 %v6969_v26, 16 }
  0xaa   : > { %v7000_v9 = vsel %vm1080_vm5, %v1115_v17, %v1119_v55  ;;  %8096 = vst [vmem:[#allocation37_spill] sm:$0xff] %v7007_v0  ;;  %v3406_v27 = vrot.slane %v7007_v0, 1  ;;  %v3407_v2 = vrot.slane %v6700_v12, 1  ;;  %v3409_v42 = vrot.slane %v6727_v20, 1 }
  0xab   : > { %v1123_v49 = vor.u32 %v1122_v23, %v1121_v34  ;;  %v1127_v21 = vor.u32 %v1126_v31, %v1125_v51  ;;  %v3067_v44 = vor.u32 %v7994_v3, %v3063_v50  ;;  %v8097_v48 = vshrl.u32 %v6407_v46, 16  ;;  %5410 = vmatmul.mubr.msk.bf16.gmra.mrb[20].mxu1 %vm430_vm1, %v6703_v54 }
  0xac   : > { %v8098_v15 = vshll.u32 %v6407_v46, 16  ;;  %v3071_v34 = vrot.slane %v7992_v1, 1  ;;  %v7031_v23 = vsel %vm3405_vm6, %v3406_v27, %v3407_v2  ;;  %v7034_v50 = vsel %vm3405_vm6, %v3407_v2, %v3409_v42  ;;  %5413 = vmatprep.mubr.msk.bf16.mxu1 %vm430_vm1, %v6738_v5 }
  0xad   : > { %v7019_v33 = vsel %vm1080_vm5, %v1119_v55, %v1123_v49  ;;  %v1129_v17 = vrot.slane %v8097_v48, 3  ;;  %v7028_v56 = vsel %vm1080_vm5, %v1123_v49, %v1127_v21  ;;  %v8099_v37 = vshrl.u32 %v6421_v63, 16 }
  0xae   : > { %v1130_v18 = vrot.slane %v8098_v15, 4  ;;  %v8100_v41 = vshll.u32 %v6421_v63, 16  ;;  %v3411_v31 = vrot.slane %v6752_v19, 1  ;;  %5584 = vmatmul.mubr.msk.bf16.gmra.mrb[4].mxu0 %vm430_vm1, %v3016_v47  ;;  %v3413_v49 = vrot.slane %v6780_v58, 1 }
  0xaf   : > { %v1133_v51 = vrot.slane %v8099_v37, 3  ;;  %v8101_v27 = vshrl.u32 %v6433_v14, 16  ;;  %v8102_v48 = vshll.u32 %v6433_v14, 16  ;;  %v8103_v15 = vshrl.u32 %v6439_v24, 16  ;;  %5587 = vmatprep.mubr.msk.bf16.mxu0 %vm430_vm1, %v3024_v6 }
  0xb0   : > { %v1131_v55 = vor.u32 %v1130_v18, %v1129_v17  ;;  %v1134_v46 = vrot.slane %v8100_v41, 4  ;;  %v7058_v47 = vsel %vm3405_vm6, %v3409_v42, %v3411_v31  ;;  %v8104_v37 = vshll.u32 %v6439_v24, 16 }
  0xb1   : > { %v1137_v2 = vrot.slane %v8101_v27, 3  ;;  %v1138_v17 = vrot.slane %v8102_v48, 4  ;;  %v1141_v18 = vrot.slane %v8103_v15, 3  ;;  %v7063_v14 = vsel %vm3405_vm6, %v3411_v31, %v3413_v49 }
  0xb2   : > { %v7055_v63 = vsel %vm1080_vm5, %v1127_v21, %v1131_v55  ;;  %v1135_v54 = vor.u32 %v1134_v46, %v1133_v51  ;;  %v1142_v41 = vrot.slane %v8104_v37, 4  ;;  %v3415_v48 = vrot.slane %v6798_v59, 1 }
  0xb3   : > { %v1139_v27 = vor.u32 %v1138_v17, %v1137_v2  ;;  %v3417_v5 = vrot.slane %v6829_v28, 1  ;;  %v8105_v51 = vshrl.u32 %v6448_v35, 16  ;;  %v8106_v42 = vshll.u32 %v6448_v35, 16  ;;  %5414 = vmatmul.mubr.msk.bf16.gmra.mrb[24].mxu1 %vm430_vm1, %v6741_v8  ;;  %v8121_v28 = vld [vmem:[#allocation25_spill] sm:$0xff] }
  0xb4   : > { %v7068_v6 = vsel %vm1080_vm5, %v1131_v55, %v1135_v54  ;;  %v1143_v21 = vor.u32 %v1142_v41, %v1141_v18  ;;  %v7078_v31 = vsel %vm3405_vm6, %v3413_v49, %v3415_v48  ;;  %v8107_v17 = vshrl.u32 %v6477_v25, 16  ;;  %5417 = vmatprep.mubr.msk.bf16.mxu1 %vm430_vm1, %v6768_v45 }
  0xb5   : > { %v1145_v46 = vrot.slane %v8105_v51, 3  ;;  %v1146_v15 = vrot.slane %v8106_v42, 4  ;;  %v7075_v24 = vsel %vm1080_vm5, %v1135_v54, %v1139_v27  ;;  %v7081_v2 = vsel %vm3405_vm6, %v3415_v48, %v3417_v5 }
  0xb6   : > { %v1149_v55 = vrot.slane %v8107_v17, 3  ;;  %v7086_v18 = vsel %vm1080_vm5, %v1139_v27, %v1143_v21  ;;  %v8108_v41 = vshll.u32 %v6477_v25, 16  ;;  %v3419_v51 = vrot.slane %v6818_v52, 1  ;;  %5588 = vmatmul.mubr.msk.bf16.gmra.mrb[8].mxu0 %vm430_vm1, %v6955_v32  ;;  %v7135_v32 = vld [vmem:[%s6241_s14 + $0x80] sm:$0xff]   ;;  %v8119_v52 = vld [vmem:[#allocation23_spill] sm:$0xff] }
  0xb7   : > { %v1147_v37 = vor.u32 %v1146_v15, %v1145_v46  ;;  %v7096_v49 = vsel %vm1080_vm5, %v1088_v43, %v6857_v57  ;;  %v3421_v54 = vrot.slane %v6855_v13, 1  ;;  %v8109_v48 = vshrl.u32 %v6496_v7, 16  ;;  %5591 = vmatprep.mubr.msk.bf16.mxu0 %vm430_vm1, %v6960_v36  ;;  %v8111_v17 = vld [vmem:[#allocation13_spill] sm:$0xff] }
  0xb8   : > { %v1150_v35 = vrot.slane %v8108_v41, 4  ;;  %v8110_v46 = vshll.u32 %v6496_v7, 16  ;;  %v7105_v25 = vrot.slane %v7991_v16, 1  ;;  %v7111_v57 = vsel %vm3405_vm6, %v3417_v5, %v3419_v51  ;;  %v8112_v41 = vld [vmem:[#allocation14_spill] sm:$0xff]  ;;  %v8118_v13 = vld [vmem:[#allocation9_spill] sm:$0xff] }
  0xb9   : > { %v1153_v27 = vrot.slane %v8109_v48, 3  ;;  %v7108_v15 = vsel %vm1080_vm5, %v1143_v21, %v1147_v37  ;;  %v7118_v7 = vsel %vm2430_vm3, %v3067_v44, %v3071_v34  ;;  %v7121_v38 = vsel %vm3405_vm6, %v3419_v51, %v3421_v54 }
  0xba   : > { %v1154_v42 = vrot.slane %v8110_v46, 4  ;;  %v1151_v29 = vor.u32 %v1150_v35, %v1149_v55  ;;  %v3423_v21 = vrot.slane %v6821_v40, 1  ;;  %v7132_v8 = vor.u32 %v7993_v22, %v3071_v34  ;;  %v8113_v34 = vld [vmem:[#allocation15_spill] sm:$0xff] }
  0xbb   : > { %v3425_v5 = vrot.slane %v6868_v61, 1  ;;  %v1575_v55 = vor.u32 %v8111_v17, %v6396_v39  ;;  %v1583_v35 = vor.u32 %v8113_v34, %v8112_v41  ;;  %v3427_v51 = vrot.slane %v6943_v62, 1  ;;  %v8114_v39 = vld [vmem:[#allocation6_spill] sm:$0xff]  ;;  %v8116_v22 = vld [vmem:[#allocation7_spill] sm:$0xff]  ;;  %v8117_v61 = vld [vmem:[#allocation8_spill] sm:$0xff]  ;;  %5418 = vmatmul.mubr.msk.bf16.gmra.mrb[28].mxu1 %vm430_vm1, %v8119_v52 }
  0xbc   : > { %v7123_v43 = vor.u32 %v1154_v42, %v1153_v27  ;;  %v7138_v44 = vsel %vm1080_vm5, %v1147_v37, %v1151_v29  ;;  %v7148_v36 = vsel %vm3405_vm6, %v3421_v54, %v3423_v21  ;;  %v3429_v27 = vrot.slane %v6969_v26, 1  ;;  %v7160_v42 = vld [vmem:[%s6241_s14 + $0x88] sm:$0xff]   ;;  %v8115_v54 = vld [vmem:[#allocation16_spill] sm:$0xff]  ;;  %5421 = vmatprep.mubr.msk.bf16.mxu1 %vm430_vm1, %v8121_v28 }
  0xbd   : > { %v7155_v48 = vsel %vm3405_vm6, %v3423_v21, %v3425_v5  ;;  %v1595_v46 = vshrl.u32 %v8114_v39, 16  ;;  %v7167_v17 = vsel %vm1080_vm5, %v1583_v35, %v8115_v54  ;;  %v7170_v41 = vsel %vm3405_vm6, %v3425_v5, %v3427_v51  ;;  %v8122_v28 = vld [vmem:[#allocation10_spill] sm:$0xff] }
  0xbe   : > { %v7145_v45 = vsel %vm1080_vm5, %v1151_v29, %v7123_v43  ;;  %v7163_v29 = vsel %vm1080_vm5, %v1575_v55, %v1583_v35  ;;  %v1598_v21 = vshll.u32 %v8114_v39, 16  ;;  %v7175_v16 = vsel %vm3405_vm6, %v3427_v51, %v3429_v27  ;;  %5592 = vmatmul.mubr.msk.bf16.gmra.mrb[12].mxu0 %vm430_vm1, %v6963_v10  ;;  %v7189_v51 = vld [vmem:[%s6241_s14 + $0x90] sm:$0xff]  }
  0xbf   : > { %v1597_v1 = vrot.slane %v1595_v46, 3  ;;  %v1604_v55 = vshrl.u32 %v8116_v22, 16  ;;  %v1607_v37 = vshll.u32 %v8116_v22, 16  ;;  %v3431_v35 = vrot.slane %v7135_v32, 1  ;;  %v7192_v22 = vld [vmem:[%s6241_s14 + $0x98] sm:$0xff]   ;;  %5595 = vmatprep.mubr.msk.bf16.mxu0 %vm430_vm1, %v6966_v60 }
  0xc0   : > { %v1600_v3 = vrot.slane %v1598_v21, 4  ;;  %v3433_v5 = vrot.slane %v7160_v42, 1  ;;  %v1613_v40 = vshrl.u32 %v8117_v61, 16  ;;  %v1616_v39 = vshll.u32 %v8117_v61, 16 }
  0xc1   : > { %v1606_v62 = vrot.slane %v1604_v55, 3  ;;  %v1622_v34 = vshrl.u32 %v8118_v13, 16  ;;  %v1609_v21 = vrot.slane %v1607_v37, 4  ;;  %v7195_v55 = vsel %vm3405_vm6, %v3429_v27, %v3431_v35 }
  0xc2   : > { %v1601_v46 = vor.u32 %v1600_v3, %v1597_v1  ;;  %v7198_v61 = vsel %vm3405_vm6, %v3431_v35, %v3433_v5  ;;  %v1615_v52 = vrot.slane %v1613_v40, 3  ;;  %v1618_v10 = vrot.slane %v1616_v39, 4  ;;  %v7214_v40 = vld [vmem:[%s6241_s14 + $0xa0] sm:$0xff]   ;;  %v8126_v39 = vld [vmem:[#allocation11_spill] sm:$0xff] }
  0xc3   : > { %8120 = vst [vmem:[#allocation13_spill] sm:$0xff] %v7198_v61  ;;  %v1624_v59 = vrot.slane %v1622_v34, 3  ;;  %v1625_v3 = vshll.u32 %v8118_v13, 16  ;;  %v1610_v37 = vor.u32 %v1609_v21, %v1606_v62  ;;  %v3435_v27 = vrot.slane %v7189_v51, 1 }
  0xc4   : > { %v7207_v1 = vsel %vm1080_vm5, %v8115_v54, %v1601_v46  ;;  %v3437_v35 = vrot.slane %v7192_v22, 1  ;;  %v1619_v58 = vor.u32 %v1618_v10, %v1615_v52  ;;  %v1631_v20 = vshrl.u32 %v8122_v28, 16  ;;  %v7217_v34 = vld [vmem:[%s6241_s14 + $0xa8] ss:$0 sps:$4 sm:$0x11]  }
  0xc5   : > { %v1627_v19 = vrot.slane %v1625_v3, 4  ;;  %v1634_v60 = vshll.u32 %v8122_v28, 16  ;;  %v7220_v13 = vsel %vm1080_vm5, %v1601_v46, %v1610_v37  ;;  %v7223_v54 = vsel %vm3405_vm6, %v3433_v5, %v3435_v27 }
  0xc6   : > { %8123 = vst [vmem:[#allocation14_spill] sm:$0xff] %v7220_v13  ;;  %8124 = vst [vmem:[#allocation15_spill] sm:$0xff] %v7223_v54  ;;  %v7226_v62 = vsel %vm3405_vm6, %v3435_v27, %v3437_v35  ;;  %v1640_v21 = vshrl.u32 %v8126_v39, 16  ;;  %v7230_v52 = vsel %vm1080_vm5, %v1610_v37, %v1619_v58  ;;  %v1633_v3 = vrot.slane %v1631_v20, 3  ;;  %v8128_v37 = vld [vmem:[#allocation29_spill] sm:$0xff]  ;;  %5596 = vmatmul.mubr.msk.bf16.gmra.mrb[16].mxu0 %vm430_vm1, %v6982_v4 }
  0xc7   : > { %8125 = vst [vmem:[#allocation6_spill] sm:$0xff] %v7226_v62  ;;  %v1628_v10 = vor.u32 %v1627_v19, %v1624_v59  ;;  %v1636_v28 = vrot.slane %v1634_v60, 4  ;;  %v1643_v0 = vshll.u32 %v8126_v39, 16  ;;  %v3439_v46 = vrot.slane %v7214_v40, 1  ;;  %v8127_v62 = vld [vmem:[#allocation12_spill] sm:$0xff]  ;;  %5422 = vmatmul.mubr.msk.bf16.gmra.mrb[32].mxu1 %vm430_vm1, %v8128_v37  ;;  %5599 = vmatprep.mubr.msk.bf16.mxu0 %vm430_vm1, %v7118_v7 }
  0xc8   : > { %v1642_v12 = vrot.slane %v1640_v21, 3  ;;  %v3441_v61 = vrot.slane %v7217_v34, 1  ;;  %v1649_v54 = vshrl.u32 %v8127_v62, 16  ;;  %v1652_v13 = vshll.u32 %v8127_v62, 16  ;;  %5427 = vmatprep.mubr.msk.bf16.mxu1 %vm430_vm1, %v7096_v49 }
  0xc9   : > { %v7236_v5 = vsel %vm1080_vm5, %v1619_v58, %v1628_v10  ;;  %v1637_v27 = vor.u32 %v1636_v28, %v1633_v3  ;;  %v1645_v20 = vrot.slane %v1643_v0, 4  ;;  %v7245_v19 = vsel %vm3405_vm6, %v3437_v35, %v3439_v46  ;;  %v8129_v58 = vld [vmem:[#allocation22_spill] sm:$0xff] }
  0xca   : > { %v7248_v59 = vsel %vm3405_vm6, %v3439_v46, %v3441_v61  ;;  %v1658_v60 = vshrl.u32 %v8129_v58, 16  ;;  %v1651_v39 = vrot.slane %v1649_v54, 3  ;;  %v1654_v4 = vrot.slane %v1652_v13, 4 }
  0xcb   : > { %v7256_v62 = vsel %vm1080_vm5, %v1628_v10, %v1637_v27  ;;  %v1661_v0 = vshll.u32 %v8129_v58, 16  ;;  %v1646_v35 = vor.u32 %v1645_v20, %v1642_v12  ;;  %v8130_v61 = vshrl.u32 %v6969_v26, 16  ;;  %v8132_v58 = vld [vmem:[#allocation18_spill] sm:$0xff] }
  0xcc   : > { %v1660_v21 = vrot.slane %v1658_v60, 3  ;;  %v8131_v28 = vshll.u32 %v7135_v32, 16  ;;  %v1655_v49 = vor.u32 %v1654_v4, %v1651_v39  ;;  %v3093_v7 = vshll.u32 %v7160_v42, 16 }
  0xcd   : > { %v3083_v3 = vor.u32 %v8130_v61, %v7105_v25  ;;  %v1663_v37 = vrot.slane %v1661_v0, 4  ;;  %v7266_v10 = vsel %vm1080_vm5, %v1637_v27, %v1646_v35  ;;  %v3080_v13 = vsel %vm2430_vm3, %v7132_v8, %v7105_v25  ;;  %v8133_v25 = vld [vmem:[#allocation32_spill] sm:$0xff] }
  0xce   : > { %v3087_v46 = vrot.slane %v8131_v28, 1  ;;  %v3089_v12 = vshrl.u32 %v7135_v32, 16  ;;  %v7273_v54 = vsel %vm1080_vm5, %v1646_v35, %v1655_v49  ;;  %v1793_v60 = vsel %vm485_vm0, %v8132_v58, 0  ;;  %5600 = vmatmul.mubr.msk.bf16.gmra.mrb[20].mxu0 %vm430_vm1, %v3080_v13  ;;  %v8134_v35 = vld [vmem:[#allocation33_spill] sm:$0xff]  ;;  %v6110_v28 = vld [vmem:[%s7932_s1 + $0x8] sm:$0x3] }
  0xcf   : > { %v7275_v20 = vor.u32 %v1663_v37, %v1660_v21  ;;  %v3097_v39 = vshrl.u32 %v7160_v42, 16  ;;  %v8019_v4 = vshll.u32 %v7189_v51, 16  ;;  %5428 = vmatmul.mubr.msk.bf16.vlgmr.msra.gmra.mrb[0].mxu1 %vm430_vm1, %v8133_v25  ;;  %v3095_v8 = vrot.slane %v3093_v7, 1 }
  0xd0   : > { %v3088_v27 = vsel %vm2430_vm3, %v3083_v3, %v3087_v46  ;;  %5431 = vmatprep.mubr.msk.bf16.mxu1 %vm430_vm1, %v8134_v35  ;;  %5464 = vmatpush3.bf16.msra.mxu1 %v1793_v60  ;;  %v3091_v21 = vor.u32 %v3089_v12, %v3087_v46  ;;  %v3105_v46 = vshrl.u32 %v7189_v51, 16  ;;  %v3113_v58 = vshrl.u32 %v7192_v22, 16  ;;  %v4075_v35 = vld [vmem:[#allocation2] sm:$0xff] }
  0xd1   : > { %v7284_v0 = vsel %vm1080_vm5, %v1655_v49, %v7275_v20  ;;  %5603 = vmatprep.mubr.msk.bf16.mxu0 %vm430_vm1, %v3088_v27  ;;  %v3099_v61 = vor.u32 %v3097_v39, %v3095_v8  ;;  %v3103_v3 = vrot.slane %v8019_v4, 1  ;;  %5986 = vmatprep.subr.msk.bf16.mxu1 %vm485_vm0, %v6110_v28  ;;  %v8021_v49 = vshll.u32 %v7192_v22, 16  ;;  %v8135_v27 = vld [vmem:[#allocation34_spill] sm:$0xff]  ;;  %v4077_v28 = vld [vmem:[#allocation2 + $0x10] sm:$0xff] }
  0xd2   : > { %v3096_v37 = vsel %vm2430_vm3, %v3091_v21, %v3095_v8  ;;  %v8020_v60 = vshll.u32 %v7214_v40, 16  ;;  %v8136_v4 = vld [vmem:[#allocation35_spill] sm:$0xff] }
  0xd3   : > { %v3104_v13 = vsel %vm2430_vm3, %v3099_v61, %v3103_v3  ;;  %v3111_v25 = vrot.slane %v8021_v49, 1  ;;  %v3107_v8 = vor.u32 %v3105_v46, %v3103_v3  ;;  %v6155_v61 = vmov 0   ;;  %v4076_v3 = vld [vmem:[#allocation2 + $0x8] sm:$0xff] }
  0xd4   : > { %v3119_v21 = vrot.slane %v8020_v60, 1  ;;  %6014 = vset.pattern.permute.xlu0 %v6155_v61  ;;  %4522 = vst.msk [vmem:[%s7325_s16] sm:$0xf] %vm4521_vm7, %v6155_v61  ;;  %4523 = vst.msk [vmem:[%s7325_s16 + $0x4] sm:$0xf] %vm4521_vm7, %v6155_v61  ;;  %6015 = vset.pattern.permute.xlu1 %v6155_v61  ;;  %v3125_v60 = vshll.u32 %v7217_v34, 16 }
  0xd5   : > { %4524 = vst.msk [vmem:[%s7325_s16 + $0x8] sm:$0xf] %vm4521_vm7, %v6155_v61  ;;  %4525 = vst.msk [vmem:[%s7325_s16 + $0xc] sm:$0xf] %vm4521_vm7, %v6155_v61  ;;  %4113 = vperm.xlu0 %6014, %v4075_v35   ;;  %4123 = vperm.xlu1 %6015, %v4077_v28   ;;  %v4080_v35 = vld [vmem:[#allocation2 + $0x28] sm:$0xff]  ;;  %v4081_v28 = vld [vmem:[#allocation2 + $0x30] sm:$0xff] }
  0xd6   : > { %5604 = vmatmul.mubr.msk.bf16.gmra.mrb[24].mxu0 %vm430_vm1, %v3096_v37  ;;  %4706 = vst.msk [vmem:[%s7325_s16 + $0xa0] sm:$0xf] %vm4521_vm7, %v6155_v61  ;;  %4707 = vst.msk [vmem:[%s7325_s16 + $0xa4] sm:$0xf] %vm4521_vm7, %v6155_v61  ;;  %v4078_v37 = vld [vmem:[#allocation2 + $0x18] sm:$0xff]  ;;  %v3127_v34 = vrot.slane %v3125_v60, 1 }
  0xd7   : > { %5432 = vmatmul.mubr.msk.bf16.gmra.mrb[4].mxu1 %vm430_vm1, %v8135_v27  ;;  %5607 = vmatprep.mubr.msk.bf16.mxu0 %vm430_vm1, %v3104_v13  ;;  %4708 = vst.msk [vmem:[%s7325_s16 + $0xa8] sm:$0xf] %vm4521_vm7, %v6155_v61  ;;  %4709 = vst.msk [vmem:[%s7325_s16 + $0xac] sm:$0xf] %vm4521_vm7, %v6155_v61  ;;  %v3112_v13 = vsel %vm2430_vm3, %v3107_v8, %v3111_v25  ;;  %v3121_v27 = vshrl.u32 %v7214_v40, 16  ;;  %v4079_v61 = vld [vmem:[#allocation2 + $0x20] sm:$0xff] }
  0xd8   : > { %5435 = vmatprep.mubr.msk.bf16.mxu1 %vm430_vm1, %v8136_v4  ;;  %v3115_v4 = vor.u32 %v3113_v58, %v3111_v25  ;;  %v4082_v8 = vld [vmem:[#allocation2 + $0x38] sm:$0xff] }
  0xd9   : > { %4118 = vperm.xlu0 %6014, %v4076_v3   ;;  %4128 = vperm.xlu1 %6015, %v4078_v37   ;;  %v3123_v25 = vor.u32 %v3121_v27, %v3119_v21  ;;  %v4086_v60 = vld [vmem:[#allocation2 + $0x58] sm:$0xff]  ;;  %v6096_v3 = vld [vmem:[%s6241_s14 + $0x94] ss:$0 sps:$4 sm:$0xff]  }
  0xda   : > { %v3120_v49 = vsel %vm2430_vm3, %v3115_v4, %v3119_v21  ;;  %v3860_v21 = vsel %vm485_vm0, %v6975_v53, 0  ;;  %v4089_v53 = vld [vmem:[#allocation2 + $0x70] sm:$0xff] }
  0xdb   : > { %v3128_v4 = vsel %vm2430_vm3, %v3123_v25, %v3127_v34  ;;  %v4097_v37 = vld [vmem:[#allocation2 + $0xb0] sm:$0xff]  ;;  %v4102_v25 = vld [vmem:[#allocation2 + $0xd8] sm:$0xff] }
  0xdd   : > { %4133 = vperm.xlu0 %6014, %v4079_v61   ;;  %4138 = vperm.xlu1 %6015, %v4080_v35  }
  0xde   : > { %5608 = vmatmul.mubr.msk.bf16.gmra.mrb[28].mxu0 %vm430_vm1, %v3112_v13  ;;  %v4098_v13 = vld [vmem:[#allocation2 + $0xb8] sm:$0xff] }
  0xdf   : > { %5436 = vmatmul.mubr.msk.bf16.gmra.mrb[8].mxu1 %vm430_vm1, %v6946_v30  ;;  %5611 = vmatprep.mubr.msk.bf16.mxu0 %vm430_vm1, %v3120_v49  ;;  %v4083_v30 = vld [vmem:[#allocation2 + $0x40] sm:$0xff]  ;;  %v4085_v49 = vld [vmem:[#allocation2 + $0x50] sm:$0xff] }
  0xe0   : > { %5439 = vmatprep.mubr.msk.bf16.mxu1 %vm430_vm1, %v6994_v11  ;;  %v4084_v11 = vld [vmem:[#allocation2 + $0x48] sm:$0xff] }
  0xe1   : > { %4143 = vperm.xlu0 %6014, %v4081_v28   ;;  %4148 = vperm.xlu1 %6015, %v4082_v8   ;;  %v4110_v28 = vld [vmem:[#allocation2 + $0x118] sm:$0xff]  ;;  %v8141_v8 = vld [vmem:[#allocation37_spill] sm:$0xff] }
  0xe5   : > { %4153 = vperm.xlu0 %6014, %v4083_v30   ;;  %4158 = vperm.xlu1 %6015, %v4084_v11   ;;  %v7431_v30 = vld [vmem:[%s6241_s14 + $0x64] sm:$0xf]  ;;  %v7434_v11 = vld [vmem:[%s6241_s14 + $0x68] sm:$0xf] }
  0xe6   : > { %5612 = vmatmul.mubr.msk.bf16.gmra.mrb[32].mxu0 %vm430_vm1, %v3128_v4  ;;  %v3724_v4 = vshll.u32 %v8141_v8, 16 }
  0xe7   : > { %5440 = vmatmul.mubr.msk.bf16.gmra.mrb[12].mxu1 %vm430_vm1, %v7000_v9  ;;  %5617 = vmatprep.mubr.msk.bf16.mxu0 %vm430_vm1, %v7031_v23  ;;  %v4087_v9 = vld [vmem:[#allocation2 + $0x60] sm:$0xff]  ;;  %v4090_v23 = vld [vmem:[#allocation2 + $0x78] sm:$0xff] }
  0xe8   : > { %5443 = vmatprep.mubr.msk.bf16.mxu1 %vm430_vm1, %v7019_v33  ;;  %v4088_v33 = vld [vmem:[#allocation2 + $0x68] sm:$0xff] }
  0xe9   : > { %4163 = vperm.xlu0 %6014, %v4085_v49   ;;  %4168 = vperm.xlu1 %6015, %v4086_v60   ;;  %v4925_v49 = vcombine.low %v7431_v30, %v7434_v11 }
  0xed   : > { %4173 = vperm.xlu0 %6014, %v4087_v9   ;;  %4178 = vperm.xlu1 %6015, %v4088_v33  }
  0xee   : > { %5618 = vmatmul.mubr.msk.bf16.vlgmr.msra.gmra.mrb[0].mxu0 %vm430_vm1, %v7034_v50  ;;  %v4092_v50 = vld [vmem:[#allocation2 + $0x88] sm:$0xff] }
  0xef   : > { %5444 = vmatmul.mubr.msk.bf16.gmra.mrb[16].mxu1 %vm430_vm1, %v7028_v56  ;;  %5654 = vmatpush3.bf16.msra.mxu0 %v3860_v21  ;;  %v4091_v56 = vld [vmem:[#allocation2 + $0x80] sm:$0xff] }
  0xf0   : > { %5447 = vmatprep.mubr.msk.bf16.mxu1 %vm430_vm1, %v7055_v63  ;;  %5621 = vmatprep.mubr.msk.bf16.mxu0 %vm430_vm1, %v7058_v47  ;;  %v4093_v63 = vld [vmem:[#allocation2 + $0x90] sm:$0xff]  ;;  %v4094_v47 = vld [vmem:[#allocation2 + $0x98] sm:$0xff]  ;;  %v8142_v21 = vld [vmem:[#allocation17_spill] sm:$0xff] }
  0xf1   : > { %4183 = vperm.xlu0 %6014, %v4089_v53   ;;  %4188 = vperm.xlu1 %6015, %v4090_v23   ;;  %v8143_v9 = vshrl.u32 %v8142_v21, 16  ;;  %v8144_v53 = vshll.u32 %v8142_v21, 16 }
  0xf3   : > { %v3728_v33 = vrot.slane %v8143_v9, 1  ;;  %v3729_v23 = vrot.slane %v8144_v53, 2 }
  0xf5   : > { %4193 = vperm.xlu0 %6014, %v4091_v56   ;;  %4198 = vperm.xlu1 %6015, %v4092_v50   ;;  %v8145_v56 = vld [vmem:[#allocation6_spill] sm:$0xff]  ;;  %v1667_v50 = vshrl.u32 %v4925_v49, 16 }
  0xf6   : > { %5622 = vmatmul.mubr.msk.bf16.gmra.mrb[4].mxu0 %vm430_vm1, %v7063_v14  ;;  %v4095_v14 = vld [vmem:[#allocation2 + $0xa0] sm:$0xff] }
  0xf7   : > { %5448 = vmatmul.mubr.msk.bf16.gmra.mrb[20].mxu1 %vm430_vm1, %v7068_v6  ;;  %5625 = vmatprep.mubr.msk.bf16.mxu0 %vm430_vm1, %v7078_v31  ;;  %v4096_v6 = vld [vmem:[#allocation2 + $0xa8] sm:$0xff]  ;;  %v1161_v31 = vshll.u32 %v6096_v3, 16 }
  0xf8   : > { %5451 = vmatprep.mubr.msk.bf16.mxu1 %vm430_vm1, %v7075_v24  ;;  %v1158_v24 = vshrl.u32 %v6096_v3, 16  ;;  %v7454_v3 = vld [vmem:[%s6241_s14 + $0x70] sm:$0xf] }
  0xf9   : > { %4203 = vperm.xlu0 %6014, %v4093_v63   ;;  %4208 = vperm.xlu1 %6015, %v4094_v47   ;;  %v1163_v35 = vrot.slane %v1161_v31, 4  ;;  %v1670_v63 = vshll.u32 %v4925_v49, 16  ;;  %v7451_v47 = vld [vmem:[%s6241_s14 + $0x6c] sm:$0xf]  ;;  %v8146_v31 = vld [vmem:[#allocation19_spill] sm:$0xff] }
  0xfa   : > { %v1160_v61 = vrot.slane %v1158_v24, 3  ;;  %v7460_v24 = vld [vmem:[%s6241_s14 + $0x78] sm:$0xf] }
  0xfd   : > { %4213 = vperm.xlu0 %6014, %v4095_v14   ;;  %4218 = vperm.xlu1 %6015, %v4096_v6   ;;  %v3730_v6 = vor.u32 %v3729_v23, %v3728_v33  ;;  %v8155_v33 = vld [vmem:[#allocation24_spill] sm:$0xff] }
  0xfe   : > { %5626 = vmatmul.mubr.msk.bf16.gmra.mrb[8].mxu0 %vm430_vm1, %v7081_v2  ;;  %v4099_v2 = vld [vmem:[#allocation2 + $0xc0] sm:$0xff]  ;;  %v8156_v53 = vshrl.u32 %v8155_v33, 16 }
  0xff   : > { %5452 = vmatmul.mubr.msk.bf16.gmra.mrb[24].mxu1 %vm430_vm1, %v7086_v18  ;;  %5629 = vmatprep.mubr.msk.bf16.mxu0 %vm430_vm1, %v7111_v57  ;;  %v4100_v18 = vld [vmem:[#allocation2 + $0xc8] sm:$0xff]  ;;  %v4101_v57 = vld [vmem:[#allocation2 + $0xd0] sm:$0xff] }
 0x100   : > { %5455 = vmatprep.mubr.msk.bf16.mxu1 %vm430_vm1, %v7108_v15  ;;  %v1164_v15 = vor.u32 %v1163_v35, %v1160_v61  ;;  %v1669_v35 = vrot.slane %v1667_v50, 3  ;;  %v3744_v23 = vrot.slane %v8156_v53, 1 }
 0x101   : > { %4223 = vperm.xlu0 %6014, %v4097_v37   ;;  %4228 = vperm.xlu1 %6015, %v4098_v13   ;;  %v8148_v13 = vshll.u32 %v8146_v31, 16 }
 0x102   : > { %v1165_v34 = vsel %vm1080_vm5, %v7123_v43, %v1164_v15  ;;  %v4107_v43 = vld [vmem:[#allocation2 + $0x100] sm:$0xff]  ;;  %v8149_v15 = vld [vmem:[#allocation20_spill] sm:$0xff] }
 0x103   : > { %v3733_v61 = vrot.slane %v8148_v13, 2 }
 0x105   : > { %4233 = vperm.xlu0 %6014, %v4099_v2   ;;  %4238 = vperm.xlu1 %6015, %v4100_v18   ;;  %v1672_v2 = vrot.slane %v1670_v63, 4 }
 0x106   : > { %5630 = vmatmul.mubr.msk.bf16.gmra.mrb[12].mxu0 %vm430_vm1, %v7121_v38  ;;  %v4103_v38 = vld [vmem:[#allocation2 + $0xe0] sm:$0xff] }
 0x107   : > { %5456 = vmatmul.mubr.msk.bf16.gmra.mrb[28].mxu1 %vm430_vm1, %v7138_v44  ;;  %5633 = vmatprep.mubr.msk.bf16.mxu0 %vm430_vm1, %v7148_v36  ;;  %v4104_v44 = vld [vmem:[#allocation2 + $0xe8] sm:$0xff]  ;;  %v4106_v36 = vld [vmem:[#allocation2 + $0xf8] sm:$0xff] }
 0x108   : > { %5459 = vmatprep.mubr.msk.bf16.mxu1 %vm430_vm1, %v7145_v45  ;;  %v4105_v45 = vld [vmem:[#allocation2 + $0xf0] sm:$0xff] }
 0x109   : > { %4243 = vperm.xlu0 %6014, %v4101_v57   ;;  %4248 = vperm.xlu1 %6015, %v4102_v25   ;;  %v8150_v57 = vshrl.u32 %v8149_v15, 16 }
 0x10b   : > { %v3736_v25 = vrot.slane %v8150_v57, 1 }
 0x10d   : > { %4253 = vperm.xlu0 %6014, %v4103_v38   ;;  %4258 = vperm.xlu1 %6015, %v4104_v44  }
 0x10e   : > { %5634 = vmatmul.mubr.msk.bf16.gmra.mrb[16].mxu0 %vm430_vm1, %v7155_v48  ;;  %v4108_v48 = vld [vmem:[#allocation2 + $0x108] sm:$0xff] }
 0x10f   : > { %5460 = vmatmul.mubr.msk.bf16.gmra.mrb[32].mxu1 %vm430_vm1, %v1165_v34  ;;  %5637 = vmatprep.mubr.msk.bf16.mxu0 %vm430_vm1, %v7170_v41  ;;  %v4109_v41 = vld [vmem:[#allocation2 + $0x110] sm:$0xff]  ;;  %v8151_v34 = vshll.u32 %v8149_v15, 16 }
 0x110   : > { %5465 = vmatprep.mubr.msk.bf16.mxu1 %vm430_vm1, %v7163_v29  ;;  %v8137_v29 = vld [vmem:[#allocation5_spill] sm:$0xff] }
 0x111   : > { %4263 = vperm.xlu0 %6014, %v4105_v45   ;;  %4268 = vperm.xlu1 %6015, %v4106_v36   ;;  %v3737_v38 = vrot.slane %v8151_v34, 2  ;;  %v7522_v34 = vld [vmem:[%s6241_s14 + $0x94] sm:$0xf] }
 0x115   : > { %4273 = vperm.xlu0 %6014, %v4107_v43   ;;  %4278 = vperm.xlu1 %6015, %v4108_v48   ;;  %v7480_v43 = vld [vmem:[%s6241_s14 + $0x7c] sm:$0xf]  ;;  %v7483_v48 = vld [vmem:[%s6241_s14 + $0x80] sm:$0xf] }
 0x116   : > { %5638 = vmatmul.mubr.msk.bf16.gmra.mrb[20].mxu0 %vm430_vm1, %v7175_v16  ;;  %v8139_v16 = vld [vmem:[#allocation13_spill] sm:$0xff] }
 0x117   : > { %5466 = vmatmul.mubr.msk.bf16.vlgmr.msra.gmra.mrb[0].mxu1 %vm430_vm1, %v7167_v17  ;;  %5641 = vmatprep.mubr.msk.bf16.mxu0 %vm430_vm1, %v7195_v55  ;;  %v8138_v17 = vld [vmem:[#allocation14_spill] sm:$0xff]  ;;  %v3721_v55 = vshrl.u32 %v8141_v8, 16 }
 0x118   : > { %5469 = vmatprep.mubr.msk.bf16.mxu1 %vm430_vm1, %v7207_v1  ;;  %5692 = vmatpush3.bf16.msra.mxu1 %v8137_v29  ;;  %v8140_v1 = vld [vmem:[#allocation15_spill] sm:$0xff] }
 0x119   : > { %4283 = vperm.xlu0 %6014, %v4109_v41   ;;  %4288 = vperm.xlu1 %6015, %v4110_v28   ;;  %v3723_v60 = vrot.slane %v3721_v55, 1  ;;  %v1673_v41 = vor.u32 %v1672_v2, %v1669_v35  ;;  %v3738_v28 = vor.u32 %v3737_v38, %v3736_v25  ;;  %v7519_v35 = vld [vmem:[%s6241_s14 + $0x90] sm:$0xf] }
 0x11b   : > { %v1674_v9 = vsel %vm1080_vm5, %v7275_v20, %v1673_v41 }
 0x11e   : > { %5642 = vmatmul.mubr.msk.bf16.gmra.mrb[24].mxu0 %vm430_vm1, %v8139_v16 }
 0x11f   : > { %5470 = vmatmul.mubr.msk.bf16.gmra.mrb[4].mxu1 %vm430_vm1, %v8138_v17  ;;  %5645 = vmatprep.mubr.msk.bf16.mxu0 %vm430_vm1, %v8140_v1  ;;  %v7494_v1 = vld [vmem:[%s6241_s14 + $0x88] sm:$0xf] }
 0x120   : > { %5473 = vmatprep.mubr.msk.bf16.mxu1 %vm430_vm1, %v7230_v52  ;;  %v3726_v52 = vrot.slane %v3724_v4, 2  ;;  %v8152_v4 = vld [vmem:[#allocation21_spill] sm:$0xff] }
 0x121   : > { %v8153_v49 = vshrl.u32 %v8152_v4, 16 }
 0x122   : > { %v3727_v14 = vor.u32 %v3726_v52, %v3723_v60 }
 0x123   : > { %v3740_v60 = vrot.slane %v8153_v49, 1 }
 0x124   : > { %v3731_v18 = vsel %vm3719_vm8, %v3727_v14, %v3730_v6 }
 0x126   : > { %5646 = vmatmul.mubr.msk.bf16.gmra.mrb[28].mxu0 %vm430_vm1, %v8145_v56  ;;  %v8157_v56 = vshll.u32 %v8155_v33, 16 }
 0x127   : > { %5474 = vmatmul.mubr.msk.bf16.gmra.mrb[8].mxu1 %vm430_vm1, %v7236_v5  ;;  %5649 = vmatprep.mubr.msk.bf16.mxu0 %vm430_vm1, %v7245_v19  ;;  %v7457_v5 = vld [vmem:[%s6241_s14 + $0x74] sm:$0xf]  ;;  %v8147_v19 = vshrl.u32 %v8146_v31, 16 }
 0x128   : > { %5477 = vmatprep.mubr.msk.bf16.mxu1 %vm430_vm1, %v7256_v62  ;;  %v4926_v62 = vcombine.low %v7451_v47, %v7454_v3  ;;  %v4927_v44 = vcombine.low %v7457_v5, %v7460_v24  ;;  %v3745_v50 = vrot.slane %v8157_v56, 2 }
 0x129   : > { %v3732_v37 = vrot.slane %v8147_v19, 1 }
 0x12a   : > { %v1676_v45 = vshrl.u32 %v4926_v62, 16  ;;  %v1679_v36 = vshll.u32 %v4926_v62, 16  ;;  %v1685_v17 = vshrl.u32 %v4927_v44, 16  ;;  %v1688_v16 = vshll.u32 %v4927_v44, 16 }
 0x12b   : > { %v3734_v29 = vor.u32 %v3733_v61, %v3732_v37  ;;  %v3746_v13 = vor.u32 %v3745_v50, %v3744_v23  ;;  %v7516_v61 = vld [vmem:[%s6241_s14 + $0x8c] sm:$0xf] }
 0x12c   : > { %v1678_v8 = vrot.slane %v1676_v45, 3  ;;  %v1681_v55 = vrot.slane %v1679_v36, 4  ;;  %v1687_v14 = vrot.slane %v1685_v17, 3  ;;  %v1690_v62 = vrot.slane %v1688_v16, 4  ;;  %v8158_v45 = vld [vmem:[#allocation28_spill] sm:$0xff] }
 0x12d   : > { %v3735_v21 = vsel %vm3719_vm8, %v3730_v6, %v3734_v29  ;;  %v3739_v63 = vsel %vm3719_vm8, %v3734_v29, %v3738_v28  ;;  %v8159_v36 = vshrl.u32 %v8158_v45, 16  ;;  %v4930_v17 = vcombine.low %v7516_v61, %v7519_v35 }
 0x12e   : > { %5650 = vmatmul.mubr.msk.bf16.gmra.mrb[32].mxu0 %vm430_vm1, %v7248_v59  ;;  %v7491_v59 = vld [vmem:[%s6241_s14 + $0x84] sm:$0xf]  ;;  %v1682_v20 = vor.u32 %v1681_v55, %v1678_v8  ;;  %v1691_v2 = vor.u32 %v1690_v62, %v1687_v14  ;;  %v8161_v55 = vld [vmem:[#allocation26_spill] sm:$0xff]  ;;  %v7548_v62 = vld [vmem:[%s6241_s14 + $0x9c] sm:$0xf] }
 0x12f   : > { %5478 = vmatmul.mubr.msk.bf16.gmra.mrb[12].mxu1 %vm430_vm1, %v7266_v10  ;;  %5655 = vmatprep.mubr.msk.bf16.mxu0 %vm430_vm1, %v3731_v18  ;;  %v4928_v10 = vcombine.low %v7480_v43, %v7483_v48  ;;  %v4929_v31 = vcombine.low %v7491_v59, %v7494_v1  ;;  %v3748_v29 = vrot.slane %v8159_v36, 1  ;;  %v1712_v33 = vshrl.u32 %v4930_v17, 16 }
 0x130   : > { %5481 = vmatprep.mubr.msk.bf16.mxu1 %vm430_vm1, %v7273_v54  ;;  %v8154_v54 = vshll.u32 %v8152_v4, 16  ;;  %v1683_v38 = vsel %vm1080_vm5, %v1673_v41, %v1682_v20  ;;  %v8162_v4 = vshrl.u32 %v8161_v55, 16  ;;  %v1692_v41 = vsel %vm1080_vm5, %v1682_v20, %v1691_v2  ;;  %v8164_v20 = vld [vmem:[#allocation30_spill] sm:$0xff] }
 0x131   : > { %v1694_v19 = vshrl.u32 %v4928_v10, 16  ;;  %v1697_v6 = vshll.u32 %v4928_v10, 16  ;;  %v1703_v18 = vshrl.u32 %v4929_v31, 16  ;;  %v1706_v15 = vshll.u32 %v4929_v31, 16 }
 0x132   : > { %v3741_v52 = vrot.slane %v8154_v54, 2  ;;  %v8160_v10 = vshll.u32 %v8158_v45, 16  ;;  %v3752_v49 = vrot.slane %v8162_v4, 1  ;;  %v1715_v53 = vshll.u32 %v4930_v17, 16  ;;  %v8167_v45 = vld [vmem:[#allocation27_spill] sm:$0xff] }
 0x133   : > { %v1696_v57 = vrot.slane %v1694_v19, 3  ;;  %v1699_v25 = vrot.slane %v1697_v6, 4  ;;  %v1714_v19 = vrot.slane %v1712_v33, 3  ;;  %v8168_v36 = vshrl.u32 %v8167_v45, 16 }
 0x134   : > { %v3742_v37 = vor.u32 %v3741_v52, %v3740_v60  ;;  %v3749_v8 = vrot.slane %v8160_v10, 2  ;;  %v8163_v60 = vshll.u32 %v8161_v55, 16  ;;  %v1708_v52 = vrot.slane %v1706_v15, 4 }
 0x135   : > { %v1717_v6 = vrot.slane %v1715_v53, 4  ;;  %v8166_v15 = vshll.u32 %v8164_v20, 16  ;;  %v8169_v10 = vshll.u32 %v8167_v45, 16  ;;  %v8176_v45 = vshrl.u32 %v6969_v26, 16 }
 0x136   : > { %5656 = vmatmul.mubr.msk.bf16.vlgmr.msra.gmra.mrb[0].mxu0 %vm430_vm1, %v3735_v21  ;;  %v3743_v44 = vsel %vm3719_vm8, %v3738_v28, %v3742_v37  ;;  %v3747_v16 = vsel %vm3719_vm8, %v3742_v37, %v3746_v13  ;;  %v3753_v54 = vrot.slane %v8163_v60, 2  ;;  %v1705_v28 = vrot.slane %v1703_v18, 3 }
 0x137   : > { %5482 = vmatmul.mubr.msk.bf16.gmra.mrb[16].mxu1 %vm430_vm1, %v7284_v0  ;;  %5659 = vmatprep.mubr.msk.bf16.mxu0 %vm430_vm1, %v3739_v63  ;;  %v7525_v0 = vld [vmem:[%s6241_s14 + $0x98] sm:$0xf]  ;;  %v3750_v23 = vor.u32 %v3749_v8, %v3748_v29  ;;  %v8165_v37 = vshrl.u32 %v8164_v20, 16  ;;  %v3760_v29 = vrot.slane %v8168_v36, 1  ;;  %v3761_v8 = vrot.slane %v8169_v10, 2 }
 0x138   : > { %5485 = vmatprep.mubr.msk.bf16.mxu1 %vm430_vm1, %v1674_v9  ;;  %v4931_v21 = vcombine.low %v7522_v34, %v7525_v0  ;;  %v1700_v9 = vor.u32 %v1699_v25, %v1696_v57  ;;  %v3754_v56 = vor.u32 %v3753_v54, %v3752_v49  ;;  %v1709_v50 = vor.u32 %v1708_v52, %v1705_v28 }
 0x139   : > { %v3756_v18 = vrot.slane %v8165_v37, 1  ;;  %v3757_v57 = vrot.slane %v8166_v15, 2  ;;  %v3751_v25 = vsel %vm3719_vm8, %v3746_v13, %v3750_v23  ;;  %v1718_v13 = vor.u32 %v1717_v6, %v1714_v19  ;;  %v8173_v19 = vld [vmem:[#allocation36_spill] sm:$0xff] }
 0x13a   : > { %v1721_v63 = vshrl.u32 %v4931_v21, 16  ;;  %v1724_v14 = vshll.u32 %v4931_v21, 16  ;;  %v1701_v31 = vsel %vm1080_vm5, %v1691_v2, %v1700_v9  ;;  %v1710_v2 = vsel %vm1080_vm5, %v1700_v9, %v1709_v50  ;;  %v8170_v9 = vld [vmem:[#allocation31_spill] sm:$0xff] }
 0x13b   : > { %v3758_v55 = vor.u32 %v3757_v57, %v3756_v18  ;;  %v3762_v54 = vor.u32 %v3761_v8, %v3760_v29  ;;  %v8171_v33 = vshrl.u32 %v8170_v9, 16  ;;  %v8174_v6 = vshrl.u32 %v8173_v19, 16  ;;  %v6111_v57 = vld [vmem:[%s6241_s14 + $0x60] sm:$0xf] }
 0x13c   : > { %v1723_v17 = vrot.slane %v1721_v63, 3  ;;  %v3772_v36 = vrot.slane %v8176_v45, 1  ;;  %v8177_v29 = vshll.u32 %v6969_v26, 16  ;;  %v8178_v10 = vshll.u32 %v7135_v32, 16 }
 0x13d   : > { %v3759_v28 = vsel %vm3719_vm8, %v3754_v56, %v3758_v55  ;;  %v3764_v53 = vrot.slane %v8171_v33, 1  ;;  %v3768_v20 = vrot.slane %v8174_v6, 1  ;;  %v4963_v26 = vcombine.low %v7434_v11, %v7451_v47 }
 0x13e   : > { %5660 = vmatmul.mubr.msk.bf16.gmra.mrb[4].mxu0 %vm430_vm1, %v3743_v44  ;;  %v4932_v44 = vcombine.low %v7548_v62, %v7548_v62  ;;  %v3777_v8 = vrot.slane %v8178_v10, 2  ;;  %v3780_v32 = vrot.slane %v3097_v39, 1 }
 0x13f   : > { %5486 = vmatmul.mubr.msk.bf16.gmra.mrb[20].mxu1 %vm430_vm1, %v1683_v38  ;;  %5663 = vmatprep.mubr.msk.bf16.mxu0 %vm430_vm1, %v3747_v16  ;;  %v3755_v38 = vsel %vm3719_vm8, %v3750_v23, %v3754_v56  ;;  %v1726_v16 = vrot.slane %v1724_v14, 4  ;;  %v8172_v23 = vshll.u32 %v8170_v9, 16 }
 0x140   : > { %5489 = vmatprep.mubr.msk.bf16.mxu1 %vm430_vm1, %v1692_v41  ;;  %v1730_v4 = vshrl.u32 %v4932_v44, 16  ;;  %v1733_v49 = vshll.u32 %v4932_v44, 16  ;;  %v1719_v41 = vsel %vm1080_vm5, %v1709_v50, %v1718_v13  ;;  %v8175_v50 = vshll.u32 %v8173_v19, 16 }
 0x141   : > { %v1727_v60 = vor.u32 %v1726_v16, %v1723_v17  ;;  %v3765_v63 = vrot.slane %v8172_v23, 2  ;;  %v3776_v16 = vrot.slane %v3089_v12, 1  ;;  %v4964_v12 = vcombine.low %v7454_v3, %v7457_v5 }
 0x142   : > { %v1732_v52 = vrot.slane %v1730_v4, 3  ;;  %v1735_v21 = vrot.slane %v1733_v49, 4  ;;  %v3769_v37 = vrot.slane %v8175_v50, 2  ;;  %v3781_v4 = vrot.slane %v3093_v7, 2 }
 0x143   : > { %v1728_v14 = vsel %vm1080_vm5, %v1718_v13, %v1727_v60  ;;  %v3766_v18 = vor.u32 %v3765_v63, %v3764_v53  ;;  %v3778_v13 = vor.u32 %v3777_v8, %v3776_v16  ;;  %v4965_v7 = vcombine.low %v7460_v24, %v7480_v43 }
 0x144   : > { %v1736_v56 = vor.u32 %v1735_v21, %v1732_v52  ;;  %v3770_v15 = vor.u32 %v3769_v37, %v3768_v20  ;;  %v3782_v39 = vor.u32 %v3781_v4, %v3780_v32  ;;  %v8180_v3 = vshll.u32 %v7192_v22, 16 }
 0x145   : > { %v3767_v44 = vsel %vm3719_vm8, %v3762_v54, %v3766_v18  ;;  %v3792_v52 = vrot.slane %v3121_v27, 1  ;;  %v8181_v21 = vshll.u32 %v7214_v40, 16  ;;  %v4968_v40 = vcombine.low %v7519_v35, %v7522_v34 }
 0x146   : > { %5664 = vmatmul.mubr.msk.bf16.gmra.mrb[8].mxu0 %vm430_vm1, %v3751_v25  ;;  %v4962_v25 = vcombine.low %v6111_v57, %v7431_v30  ;;  %v3771_v17 = vsel %vm3719_vm8, %v3766_v18, %v3770_v15  ;;  %v3783_v47 = vsel %vm3719_vm8, %v3778_v13, %v3782_v39  ;;  %v3789_v5 = vrot.slane %v8180_v3, 2 }
 0x147   : > { %5490 = vmatmul.mubr.msk.bf16.gmra.mrb[24].mxu1 %vm430_vm1, %v1701_v31  ;;  %5667 = vmatprep.mubr.msk.bf16.mxu0 %vm430_vm1, %v3755_v38  ;;  %v3763_v31 = vsel %vm3719_vm8, %v3758_v55, %v3762_v54  ;;  %v1737_v38 = vsel %vm1080_vm5, %v1727_v60, %v1736_v56  ;;  %v3784_v60 = vrot.slane %v3105_v46, 1  ;;  %v8179_v54 = vshll.u32 %v7189_v51, 16 }
 0x148   : > { %5493 = vmatprep.mubr.msk.bf16.mxu1 %vm430_vm1, %v1710_v2  ;;  %v3773_v2 = vrot.slane %v8177_v29, 2  ;;  %v4966_v46 = vcombine.low %v7483_v48, %v7491_v59  ;;  %v3788_v51 = vrot.slane %v3113_v58, 1  ;;  %v3793_v24 = vrot.slane %v8181_v21, 2 }
 0x149   : > { %v3785_v11 = vrot.slane %v8179_v54, 2  ;;  %v4967_v59 = vcombine.low %v7494_v1, %v7516_v61  ;;  %v4969_v1 = vcombine.low %v7525_v0, %v7548_v62 }
 0x14a   : > { %v3774_v30 = vor.u32 %v3773_v2, %v3772_v36  ;;  %v3790_v58 = vor.u32 %v3789_v5, %v3788_v51  ;;  %v3794_v48 = vor.u32 %v3793_v24, %v3792_v52 }
 0x14b   : > { %v3786_v42 = vor.u32 %v3785_v11, %v3784_v60 }
 0x14c   : > { %v3775_v55 = vsel %vm3719_vm8, %v3770_v15, %v3774_v30  ;;  %v3779_v49 = vsel %vm3719_vm8, %v3774_v30, %v3778_v13  ;;  %v3795_v53 = vsel %vm3719_vm8, %v3790_v58, %v3794_v48 }
 0x14d   : > { %v3791_v27 = vsel %vm3719_vm8, %v3786_v42, %v3790_v58 }
 0x14e   : > { %5668 = vmatmul.mubr.msk.bf16.gmra.mrb[12].mxu0 %vm430_vm1, %v3759_v28  ;;  %v3787_v28 = vsel %vm3719_vm8, %v3782_v39, %v3786_v42 }
 0x14f   : > { %5494 = vmatmul.mubr.msk.bf16.gmra.mrb[28].mxu1 %vm430_vm1, %v1719_v41  ;;  %5671 = vmatprep.mubr.msk.bf16.mxu0 %vm430_vm1, %v3763_v31  ;;  %v6109_v41 = vld [vmem:[%s6241_s14 + $0xa8] ss:$0 sps:$4 sm:$0x33]  }
 0x150   : > { %5497 = vmatprep.mubr.msk.bf16.mxu1 %vm430_vm1, %v1728_v14  ;;  %v3797_v22 = vshrl.u32 %v6109_v41, 16  ;;  %v3800_v43 = vshll.u32 %v6109_v41, 16 }
 0x152   : > { %v3799_v9 = vrot.slane %v3797_v22, 1  ;;  %v3802_v33 = vrot.slane %v3800_v43, 2 }
 0x154   : > { %v3803_v23 = vor.u32 %v3802_v33, %v3799_v9  ;;  %v4114_v35 = vpop.permute.xlu0 %4113  ;;  %v4124_v34 = vpop.permute.xlu1 %4123 }
 0x156   : > { %5672 = vmatmul.mubr.msk.bf16.gmra.mrb[16].mxu0 %vm430_vm1, %v3767_v44  ;;  %v3804_v61 = vsel %vm3719_vm8, %v3794_v48, %v3803_v23 }
 0x157   : > { %5498 = vmatmul.mubr.msk.bf16.gmra.mrb[32].mxu1 %vm430_vm1, %v1737_v38  ;;  %5675 = vmatprep.mubr.msk.bf16.mxu0 %vm430_vm1, %v3771_v17 }
 0x158   : > { %5523 = vmatprep.mubr.msk.bf16.mxu1 %vm430_vm1, %v4962_v25  ;;  %v4119_v63 = vpop.permute.xlu0 %4118  ;;  %v4129_v14 = vpop.permute.xlu1 %4128 }
 0x15c   : > { %v7653_v31 = vpop.permute.xlu0 %4133  ;;  %v7655_v6 = vpop.permute.xlu1 %4138 }
 0x15e   : > { %5676 = vmatmul.mubr.msk.bf16.gmra.mrb[20].mxu0 %vm430_vm1, %v3775_v55 }
 0x15f   : > { %5524 = vmatmul.mubr.msk.bf16.vlgmr.msra.gmra.mrb[20].mxu1 %vm430_vm1, %v4963_v26  ;;  %5679 = vmatprep.mubr.msk.bf16.mxu0 %vm430_vm1, %v3779_v49 }
 0x160   : > { %5527 = vmatprep.mubr.msk.bf16.mxu1 %vm430_vm1, %v4964_v12  ;;  %v7657_v56 = vpop.permute.xlu0 %4143  ;;  %v7659_v0 = vpop.permute.xlu1 %4148 }
 0x164   : > { %v7665_v25 = vpop.permute.xlu0 %4153  ;;  %v7667_v38 = vpop.permute.xlu1 %4158 }
 0x166   : > { %5680 = vmatmul.mubr.msk.bf16.gmra.mrb[24].mxu0 %vm430_vm1, %v3783_v47 }
 0x167   : > { %5528 = vmatmul.mubr.msk.bf16.gmra.mrb[24].mxu1 %vm430_vm1, %v4965_v7  ;;  %5683 = vmatprep.mubr.msk.bf16.mxu0 %vm430_vm1, %v3787_v28 }
 0x168   : > { %5531 = vmatprep.mubr.msk.bf16.mxu1 %vm430_vm1, %v4966_v46  ;;  %v7673_v36 = vpop.permute.xlu0 %4163  ;;  %v7677_v2 = vpop.permute.xlu1 %4168 }
 0x16c   : > { %v7681_v16 = vpop.permute.xlu0 %4173  ;;  %v7685_v8 = vpop.permute.xlu1 %4178 }
 0x16e   : > { %5684 = vmatmul.mubr.msk.bf16.gmra.mrb[28].mxu0 %vm430_vm1, %v3791_v27 }
 0x16f   : > { %5532 = vmatmul.mubr.msk.bf16.gmra.mrb[28].mxu1 %vm430_vm1, %v4967_v59  ;;  %5687 = vmatprep.mubr.msk.bf16.mxu0 %vm430_vm1, %v3795_v53 }
 0x170   : > { %5535 = vmatprep.mubr.msk.bf16.mxu1 %vm430_vm1, %v4968_v40  ;;  %v7693_v55 = vpop.permute.xlu0 %4183  ;;  %v7695_v12 = vpop.permute.xlu1 %4188 }
 0x174   : > { %v7707_v43 = vpop.permute.xlu0 %4193  ;;  %v7713_v33 = vpop.permute.xlu1 %4198 }
 0x176   : > { %5688 = vmatmul.mubr.msk.bf16.gmra.mrb[32].mxu0 %vm430_vm1, %v3804_v61 }
 0x177   : > { %5536 = vmatmul.mubr.msk.bf16.gmra.mrb[32].mxu1 %vm430_vm1, %v4969_v1 }
 0x1ea   : > { %v5467_v19 = vpop.f32.mrb[0].mxu1 }
 0x1eb   : > { %v1829_v20 = vpop.f32.mrb[1].mxu1 }
 0x1ec   : > { %v5468_v50 = vpop.f32.mrb[2].mxu1 }
 0x1ed   : > { %v1832_v37 = vpop.f32.mrb[3].mxu1 }
 0x1f2   : > { %v5471_v62 = vpop.f32.mrb[4].mxu1 }
 0x1f3   : > { %v1845_v18 = vpop.f32.mrb[5].mxu1 }
 0x1f4   : > { %v7661_v15 = vpop.f32.mrb[6].mxu1 }
 0x1f5   : > { %v7663_v57 = vpop.f32.mrb[7].mxu1 }
 0x1fa   : > { %v7669_v44 = vpop.f32.mrb[8].mxu1 }
 0x1fb   : > { %v7671_v45 = vpop.f32.mrb[9].mxu1 }
 0x1fc   : > { %v7675_v29 = vpop.f32.mrb[10].mxu1 }
 0x1fd   : > { %v7679_v17 = vpop.f32.mrb[11].mxu1 }
 0x202   : > { %v7683_v10 = vpop.f32.mrb[12].mxu1 }
 0x203   : > { %v7687_v30 = vpop.f32.mrb[13].mxu1 }
 0x204   : > { %v7689_v13 = vpop.f32.mrb[14].mxu1 }
 0x205   : > { %v7691_v26 = vpop.f32.mrb[15].mxu1 }
 0x209   : > { %v5657_v4 = vpop.f32.mrb[0].mxu0 }
 0x20a   : > { %v7697_v32 = vpop.f32.mrb[16].mxu1  ;;  %v5693_v60 = vadd.f32 %v5657_v4, %v5467_v19  ;;  %v3896_v54 = vpop.f32.mrb[1].mxu0 }
 0x20b   : > { %v7699_v49 = vpop.f32.mrb[17].mxu1  ;;  %v5694_v39 = vadd.f32 %v3896_v54, %v1829_v20  ;;  %v5658_v42 = vpop.f32.mrb[2].mxu0 }
 0x20c   : > { %v7701_v11 = vpop.f32.mrb[18].mxu1  ;;  %v4293_v47 = vmul.f32 %v5693_v60, %v4124_v34  ;;  %v5695_v46 = vadd.f32 %v5658_v42, %v5468_v50  ;;  %v3899_v51 = vpop.f32.mrb[3].mxu0 }
 0x20d   : > { %v7703_v7 = vpop.f32.mrb[19].mxu1  ;;  %v4291_v3 = vmul.f32 %v5694_v39, %v4114_v35  ;;  %v5696_v5 = vadd.f32 %v3899_v51, %v1832_v37  ;;  %v7729_v51 = vpop.permute.xlu0 %4203 }
 0x20e   : > { %v5144_v41 = vpack.c.bf16 %v4293_v47, %v4293_v47  ;;  %v4294_v28 = vmul.f32 %v5695_v46, %v4129_v14  ;;  %v4409_v58 = vmul.f32 %v4293_v47, %v4293_v47  ;;  %v4331_v35 = vsel %vm4327_vm9, %v4293_v47, 0.0 }
 0x20f   : > { %v4407_v52 = vmul.f32 %v4291_v3, %v4291_v3  ;;  %v5142_v21 = vpack.c.bf16 %v4291_v3, %v4291_v3  ;;  %v4292_v24 = vmul.f32 %v5696_v5, %v4119_v63  ;;  %v4328_v48 = vsel %vm4327_vm9, %v4291_v3, 0.0 }
 0x210   : > { %4672 = vst.msk [vmem:[%s7325_s16 + $0x18] sm:$0xf] %vm4521_vm7, %v5144_v41  ;;  %v5145_v22 = vpack.c.bf16 %v4294_v28, %v4294_v28  ;;  %v4410_v53 = vmul.f32 %v4294_v28, %v4294_v28  ;;  %v4333_v42 = vsel %vm4327_vm9, %v4294_v28, 0.0  ;;  %v7732_v41 = vpop.permute.xlu1 %4208 }
 0x211   : > { %4670 = vst.msk [vmem:[%s7325_s16 + $0x10] sm:$0xf] %vm4521_vm7, %v5142_v21  ;;  %v4329_v59 = vsel %vm4327_vm9, %v4292_v24, 0.0  ;;  %v4408_v27 = vmul.f32 %v4292_v24, %v4292_v24  ;;  %v5143_v40 = vpack.c.bf16 %v4292_v24, %v4292_v24  ;;  %v5661_v9 = vpop.f32.mrb[4].mxu0  ;;  %v4443_v34 = vsel %vm4327_vm9, %v4407_v52, 0.0 }
 0x212   : > { %4673 = vst.msk [vmem:[%s7325_s16 + $0x1c] sm:$0xf] %vm4521_vm7, %v5145_v22  ;;  %v4330_v23 = vadd.f32 %v4329_v59, %v4328_v48  ;;  %v5697_v1 = vadd.f32 %v5661_v9, %v5471_v62  ;;  %v3912_v61 = vpop.f32.mrb[5].mxu0  ;;  %v4446_v62 = vsel %vm4327_vm9, %v4409_v58, 0.0 }
 0x213   : > { %v4444_v63 = vsel %vm4327_vm9, %v4408_v27, 0.0  ;;  %4671 = vst.msk [vmem:[%s7325_s16 + $0x14] sm:$0xf] %vm4521_vm7, %v5143_v40  ;;  %v5698_v14 = vadd.f32 %v3912_v61, %v1845_v18  ;;  %v5662_v19 = vpop.f32.mrb[6].mxu0  ;;  %v4448_v18 = vsel %vm4327_vm9, %v4410_v53, 0.0 }
 0x214   : > { %v4332_v20 = vadd.f32 %v4331_v35, %v4330_v23  ;;  %v4445_v50 = vadd.f32 %v4444_v63, %v4443_v34  ;;  %v4297_v37 = vmul.f32 %v5697_v1, %v7657_v56  ;;  %v5699_v4 = vadd.f32 %v5662_v19, %v7661_v15  ;;  %v3915_v60 = vpop.f32.mrb[7].mxu0  ;;  %v7748_v34 = vpop.permute.xlu0 %4213 }
 0x215   : > { %v4295_v54 = vmul.f32 %v5698_v14, %v7653_v31  ;;  %v5700_v39 = vadd.f32 %v3915_v60, %v7663_v57 }
 0x216   : > { %v4447_v47 = vadd.f32 %v4446_v62, %v4445_v50  ;;  %v5148_v46 = vpack.c.bf16 %v4297_v37, %v4297_v37  ;;  %v4334_v56 = vadd.f32 %v4333_v42, %v4332_v20  ;;  %v4298_v57 = vmul.f32 %v5699_v4, %v7659_v0  ;;  %v7755_v20 = vpop.permute.xlu1 %4218 }
 0x217   : > { %v4335_v3 = vsel %vm4327_vm9, %v4295_v54, 0.0  ;;  %v4411_v15 = vmul.f32 %v4295_v54, %v4295_v54  ;;  %v5146_v5 = vpack.c.bf16 %v4295_v54, %v4295_v54  ;;  %v4296_v28 = vmul.f32 %v5700_v39, %v7655_v6 }
 0x218   : > { %4676 = vst.msk [vmem:[%s7325_s16 + $0x28] sm:$0xf] %vm4521_vm7, %v5148_v46  ;;  %v4449_v31 = vadd.f32 %v4448_v18, %v4447_v47  ;;  %v4336_v52 = vadd.f32 %v4335_v3, %v4334_v56  ;;  %v4413_v58 = vmul.f32 %v4297_v37, %v4297_v37  ;;  %v5149_v48 = vpack.c.bf16 %v4298_v57, %v4298_v57 }
 0x219   : > { %v4450_v21 = vsel %vm4327_vm9, %v4411_v15, 0.0  ;;  %4674 = vst.msk [vmem:[%s7325_s16 + $0x20] sm:$0xf] %vm4521_vm7, %v5146_v5  ;;  %v5665_v24 = vpop.f32.mrb[8].mxu0  ;;  %v4337_v27 = vsel %vm4327_vm9, %v4296_v28, 0.0  ;;  %v4412_v40 = vmul.f32 %v4296_v28, %v4296_v28  ;;  %v5147_v9 = vpack.c.bf16 %v4296_v28, %v4296_v28  ;;  %v7767_v5 = vpop.permute.xlu0 %4223 }
 0x21a   : > { %v4451_v22 = vadd.f32 %v4450_v21, %v4449_v31  ;;  %v3928_v59 = vpop.f32.mrb[9].mxu0  ;;  %v5701_v0 = vadd.f32 %v5665_v24, %v7669_v44  ;;  %v4339_v6 = vsel %vm4327_vm9, %v4297_v37, 0.0  ;;  %4677 = vst.msk [vmem:[%s7325_s16 + $0x2c] sm:$0xf] %vm4521_vm7, %v5149_v48  ;;  %v4338_v23 = vadd.f32 %v4337_v27, %v4336_v52  ;;  %v7772_v24 = vpop.permute.xlu1 %4228 }
 0x21b   : > { %v5666_v53 = vpop.f32.mrb[10].mxu0  ;;  %v5702_v1 = vadd.f32 %v3928_v59, %v7671_v45  ;;  %v4414_v63 = vmul.f32 %v4298_v57, %v4298_v57  ;;  %v4452_v14 = vsel %vm4327_vm9, %v4412_v40, 0.0  ;;  %4675 = vst.msk [vmem:[%s7325_s16 + $0x24] sm:$0xf] %vm4521_vm7, %v5147_v9  ;;  %v4454_v4 = vsel %vm4327_vm9, %v4413_v58, 0.0 }
 0x21c   : > { %v5703_v61 = vadd.f32 %v5666_v53, %v7675_v29  ;;  %v3931_v35 = vpop.f32.mrb[11].mxu0  ;;  %v4301_v44 = vmul.f32 %v5701_v0, %v7673_v36  ;;  %v4340_v50 = vadd.f32 %v4339_v6, %v4338_v23  ;;  %v4453_v37 = vadd.f32 %v4452_v14, %v4451_v22 }
 0x21d   : > { %v5704_v19 = vadd.f32 %v3931_v35, %v7679_v17  ;;  %v4299_v45 = vmul.f32 %v5702_v1, %v7665_v25  ;;  %v4341_v60 = vsel %vm4327_vm9, %v4298_v57, 0.0  ;;  %v4456_v18 = vsel %vm4327_vm9, %v4414_v63, 0.0 }
 0x21e   : > { %v4302_v29 = vmul.f32 %v5703_v61, %v7677_v2  ;;  %v5152_v62 = vpack.c.bf16 %v4301_v44, %v4301_v44  ;;  %v4455_v36 = vadd.f32 %v4454_v4, %v4453_v37  ;;  %v4342_v39 = vadd.f32 %v4341_v60, %v4340_v50 }
 0x21f   : > { %v4300_v54 = vmul.f32 %v5704_v19, %v7667_v38  ;;  %v4343_v17 = vsel %vm4327_vm9, %v4299_v45, 0.0  ;;  %v4415_v42 = vmul.f32 %v4299_v45, %v4299_v45  ;;  %v4417_v47 = vmul.f32 %v4301_v44, %v4301_v44 }
 0x220   : > { %4680 = vst.msk [vmem:[%s7325_s16 + $0x38] sm:$0xf] %vm4521_vm7, %v5152_v62  ;;  %v5150_v25 = vpack.c.bf16 %v4299_v45, %v4299_v45  ;;  %v4344_v46 = vadd.f32 %v4343_v17, %v4342_v39  ;;  %v4457_v56 = vadd.f32 %v4456_v18, %v4455_v36  ;;  %v5153_v15 = vpack.c.bf16 %v4302_v29, %v4302_v29  ;;  %v7794_v45 = vpop.permute.xlu1 %4238 }
 0x221   : > { %v5669_v2 = vpop.f32.mrb[12].mxu0  ;;  %v4458_v3 = vsel %vm4327_vm9, %v4415_v42, 0.0  ;;  %v4418_v31 = vmul.f32 %v4302_v29, %v4302_v29  ;;  %v4345_v57 = vsel %vm4327_vm9, %v4300_v54, 0.0  ;;  %v4416_v28 = vmul.f32 %v4300_v54, %v4300_v54 }
 0x222   : > { %v3944_v38 = vpop.f32.mrb[13].mxu0  ;;  %4678 = vst.msk [vmem:[%s7325_s16 + $0x30] sm:$0xf] %vm4521_vm7, %v5150_v25  ;;  %v5151_v52 = vpack.c.bf16 %v4300_v54, %v4300_v54  ;;  %v4459_v58 = vadd.f32 %v4458_v3, %v4457_v56  ;;  %4681 = vst.msk [vmem:[%s7325_s16 + $0x3c] sm:$0xf] %vm4521_vm7, %v5153_v15  ;;  %v4346_v22 = vadd.f32 %v4345_v57, %v4344_v46  ;;  %v4347_v40 = vsel %vm4327_vm9, %v4301_v44, 0.0  ;;  %v7791_v44 = vpop.permute.xlu0 %4233 }
 0x223   : > { %v5670_v21 = vpop.f32.mrb[14].mxu0  ;;  %v5705_v48 = vadd.f32 %v5669_v2, %v7683_v10  ;;  %v5706_v59 = vadd.f32 %v3944_v38, %v7687_v30  ;;  %v4460_v9 = vsel %vm4327_vm9, %v4416_v28, 0.0  ;;  %v4462_v10 = vsel %vm4327_vm9, %v4417_v47, 0.0 }
 0x224   : > { %v3947_v27 = vpop.f32.mrb[15].mxu0  ;;  %4679 = vst.msk [vmem:[%s7325_s16 + $0x34] sm:$0xf] %vm4521_vm7, %v5151_v52  ;;  %v5707_v0 = vadd.f32 %v5670_v21, %v7689_v13  ;;  %v4348_v6 = vadd.f32 %v4347_v40, %v4346_v22  ;;  %v4461_v23 = vadd.f32 %v4460_v9, %v4459_v58  ;;  %v4349_v63 = vsel %vm4327_vm9, %v4302_v29, 0.0 }
 0x225   : > { %v5708_v53 = vadd.f32 %v3947_v27, %v7691_v26  ;;  %v4305_v1 = vmul.f32 %v5705_v48, %v7693_v55  ;;  %v4303_v61 = vmul.f32 %v5706_v59, %v7681_v16  ;;  %v4464_v14 = vsel %vm4327_vm9, %v4418_v31, 0.0 }
 0x226   : > { %v4306_v30 = vmul.f32 %v5707_v0, %v7695_v12  ;;  %v4463_v13 = vadd.f32 %v4462_v10, %v4461_v23  ;;  %v4350_v19 = vadd.f32 %v4349_v63, %v4348_v6  ;;  %v7814_v21 = vpop.permute.xlu0 %4243 }
 0x227   : > { %v4304_v35 = vmul.f32 %v5708_v53, %v7685_v8  ;;  %v5156_v26 = vpack.c.bf16 %v4305_v1, %v4305_v1  ;;  %v4351_v55 = vsel %vm4327_vm9, %v4303_v61, 0.0  ;;  %v4419_v16 = vmul.f32 %v4303_v61, %v4303_v61 }
 0x228   : > { %v5154_v50 = vpack.c.bf16 %v4303_v61, %v4303_v61  ;;  %v4421_v12 = vmul.f32 %v4305_v1, %v4305_v1  ;;  %v4465_v8 = vadd.f32 %v4464_v14, %v4463_v13  ;;  %v4352_v4 = vadd.f32 %v4351_v55, %v4350_v19 }
 0x229   : > { %v5673_v37 = vpop.f32.mrb[16].mxu0  ;;  %4684 = vst.msk [vmem:[%s7325_s16 + $0x48] sm:$0xf] %vm4521_vm7, %v5156_v26  ;;  %v4466_v60 = vsel %vm4327_vm9, %v4419_v16, 0.0  ;;  %v5157_v62 = vpack.c.bf16 %v4306_v30, %v4306_v30  ;;  %v4353_v54 = vsel %vm4327_vm9, %v4304_v35, 0.0  ;;  %v4422_v17 = vmul.f32 %v4306_v30, %v4306_v30 }
 0x22a   : > { %v3960_v29 = vpop.f32.mrb[17].mxu0  ;;  %4682 = vst.msk [vmem:[%s7325_s16 + $0x40] sm:$0xf] %vm4521_vm7, %v5154_v50  ;;  %v4467_v39 = vadd.f32 %v4466_v60, %v4465_v8  ;;  %v4420_v42 = vmul.f32 %v4304_v35, %v4304_v35  ;;  %v5155_v18 = vpack.c.bf16 %v4304_v35, %v4304_v35  ;;  %v4354_v25 = vadd.f32 %v4353_v54, %v4352_v4  ;;  %v7836_v60 = vpop.permute.xlu0 %4253 }
 0x22b   : > { %v5674_v36 = vpop.f32.mrb[18].mxu0  ;;  %4685 = vst.msk [vmem:[%s7325_s16 + $0x4c] sm:$0xf] %vm4521_vm7, %v5157_v62  ;;  %v5709_v2 = vadd.f32 %v5673_v37, %v7697_v32  ;;  %v5710_v46 = vadd.f32 %v3960_v29, %v7699_v49  ;;  %v4355_v3 = vsel %vm4327_vm9, %v4305_v1, 0.0  ;;  %v7816_v32 = vpop.permute.xlu1 %4248  ;;  %v4470_v49 = vsel %vm4327_vm9, %v4421_v12, 0.0 }
 0x22c   : > { %v3963_v47 = vpop.f32.mrb[19].mxu0  ;;  %v5711_v56 = vadd.f32 %v5674_v36, %v7701_v11  ;;  %v4468_v15 = vsel %vm4327_vm9, %v4420_v42, 0.0  ;;  %4683 = vst.msk [vmem:[%s7325_s16 + $0x44] sm:$0xf] %vm4521_vm7, %v5155_v18  ;;  %v4356_v31 = vadd.f32 %v4355_v3, %v4354_v25  ;;  %v4357_v22 = vsel %vm4327_vm9, %v4306_v30, 0.0 }
 0x22d   : > { %v5712_v38 = vadd.f32 %v3963_v47, %v7703_v7  ;;  %v4469_v57 = vadd.f32 %v4468_v15, %v4467_v39  ;;  %v4309_v28 = vmul.f32 %v5709_v2, %v7729_v51  ;;  %v4307_v52 = vmul.f32 %v5710_v46, %v7707_v43 }
 0x22e   : > { %v4310_v11 = vmul.f32 %v5711_v56, %v7732_v41  ;;  %v4472_v7 = vsel %vm4327_vm9, %v4422_v17, 0.0  ;;  %v4358_v27 = vadd.f32 %v4357_v22, %v4356_v31 }
 0x22f   : > { %v4308_v58 = vmul.f32 %v5712_v38, %v7713_v33  ;;  %v4471_v48 = vadd.f32 %v4470_v49, %v4469_v57  ;;  %v5160_v59 = vpack.c.bf16 %v4309_v28, %v4309_v28  ;;  %v4359_v40 = vsel %vm4327_vm9, %v4307_v52, 0.0  ;;  %v7838_v62 = vpop.permute.xlu1 %4258 }
 0x230   : > { %v4423_v9 = vmul.f32 %v4307_v52, %v4307_v52  ;;  %v5158_v0 = vpack.c.bf16 %v4307_v52, %v4307_v52  ;;  %v4425_v23 = vmul.f32 %v4309_v28, %v4309_v28  ;;  %v4360_v61 = vadd.f32 %v4359_v40, %v4358_v27 }
 0x231   : > { %v5677_v43 = vpop.f32.mrb[20].mxu0  ;;  %4688 = vst.msk [vmem:[%s7325_s16 + $0x58] sm:$0xf] %vm4521_vm7, %v5160_v59  ;;  %v4473_v33 = vadd.f32 %v4472_v7, %v4471_v48  ;;  %v5161_v30 = vpack.c.bf16 %v4310_v11, %v4310_v11  ;;  %v4361_v35 = vsel %vm4327_vm9, %v4308_v58, 0.0  ;;  %v4426_v26 = vmul.f32 %v4310_v11, %v4310_v11 }
 0x232   : > { %v5525_v51 = vpop.f32.mrb[20].mxu1  ;;  %v3976_v6 = vpop.f32.mrb[21].mxu0  ;;  %v4474_v10 = vsel %vm4327_vm9, %v4423_v9, 0.0  ;;  %4686 = vst.msk [vmem:[%s7325_s16 + $0x50] sm:$0xf] %vm4521_vm7, %v5158_v0  ;;  %v4424_v19 = vmul.f32 %v4308_v58, %v4308_v58  ;;  %v5159_v55 = vpack.c.bf16 %v4308_v58, %v4308_v58  ;;  %v4362_v16 = vadd.f32 %v4361_v35, %v4360_v61 }
 0x233   : > { %v2199_v53 = vpop.f32.mrb[21].mxu1  ;;  %v5678_v1 = vpop.f32.mrb[22].mxu0  ;;  %v4475_v13 = vadd.f32 %v4474_v10, %v4473_v33  ;;  %4689 = vst.msk [vmem:[%s7325_s16 + $0x5c] sm:$0xf] %vm4521_vm7, %v5161_v30  ;;  %v5713_v50 = vadd.f32 %v5677_v43, %v5525_v51  ;;  %v4363_v8 = vsel %vm4327_vm9, %v4309_v28, 0.0  ;;  %v4478_v42 = vsel %vm4327_vm9, %v4425_v23, 0.0 }
 0x234   : > { %v5526_v41 = vpop.f32.mrb[22].mxu1  ;;  %v3979_v14 = vpop.f32.mrb[23].mxu0  ;;  %v5714_v37 = vadd.f32 %v3976_v6, %v2199_v53  ;;  %v4476_v29 = vsel %vm4327_vm9, %v4424_v19, 0.0  ;;  %4687 = vst.msk [vmem:[%s7325_s16 + $0x54] sm:$0xf] %vm4521_vm7, %v5159_v55  ;;  %v4364_v54 = vadd.f32 %v4363_v8, %v4362_v16  ;;  %v4365_v46 = vsel %vm4327_vm9, %v4310_v11, 0.0 }
 0x235   : > { %v2202_v63 = vpop.f32.mrb[23].mxu1  ;;  %v5715_v12 = vadd.f32 %v5678_v1, %v5526_v41  ;;  %v4477_v36 = vadd.f32 %v4476_v29, %v4475_v13  ;;  %v4313_v39 = vmul.f32 %v5713_v50, %v7767_v5  ;;  %v4480_v56 = vsel %vm4327_vm9, %v4426_v26, 0.0  ;;  %v4264_v23 = vpop.permute.xlu0 %4263 }
 0x236   : > { %v5716_v4 = vadd.f32 %v3979_v14, %v2202_v63  ;;  %v4311_v17 = vmul.f32 %v5714_v37, %v7748_v34  ;;  %v4366_v31 = vadd.f32 %v4365_v46, %v4364_v54  ;;  %v4269_v33 = vpop.permute.xlu1 %4268 }
 0x237   : > { %v4314_v47 = vmul.f32 %v5715_v12, %v7772_v24  ;;  %v4479_v3 = vadd.f32 %v4478_v42, %v4477_v36  ;;  %v5164_v15 = vpack.c.bf16 %v4313_v39, %v4313_v39  ;;  %v4429_v49 = vmul.f32 %v4313_v39, %v4313_v39 }
 0x238   : > { %v4312_v25 = vmul.f32 %v5716_v4, %v7755_v20  ;;  %v4367_v34 = vsel %vm4327_vm9, %v4311_v17, 0.0  ;;  %v4427_v57 = vmul.f32 %v4311_v17, %v4311_v17  ;;  %v5162_v28 = vpack.c.bf16 %v4311_v17, %v4311_v17 }
 0x239   : > { %v5681_v2 = vpop.f32.mrb[24].mxu0  ;;  %4692 = vst.msk [vmem:[%s7325_s16 + $0x68] sm:$0xf] %vm4521_vm7, %v5164_v15  ;;  %v4481_v20 = vadd.f32 %v4480_v56, %v4479_v3  ;;  %v4368_v22 = vadd.f32 %v4367_v34, %v4366_v31  ;;  %v5165_v48 = vpack.c.bf16 %v4314_v47, %v4314_v47  ;;  %v4430_v43 = vmul.f32 %v4314_v47, %v4314_v47 }
 0x23a   : > { %v5529_v18 = vpop.f32.mrb[24].mxu1  ;;  %v3992_v5 = vpop.f32.mrb[25].mxu0  ;;  %v4482_v7 = vsel %vm4327_vm9, %v4427_v57, 0.0  ;;  %4690 = vst.msk [vmem:[%s7325_s16 + $0x60] sm:$0xf] %vm4521_vm7, %v5162_v28  ;;  %v4369_v59 = vsel %vm4327_vm9, %v4312_v25, 0.0  ;;  %v4428_v27 = vmul.f32 %v4312_v25, %v4312_v25  ;;  %v5163_v40 = vpack.c.bf16 %v4312_v25, %v4312_v25 }
 0x23b   : > { %v2215_v38 = vpop.f32.mrb[25].mxu1  ;;  %v5682_v24 = vpop.f32.mrb[26].mxu0  ;;  %v4483_v51 = vadd.f32 %v4482_v7, %v4481_v20  ;;  %4693 = vst.msk [vmem:[%s7325_s16 + $0x6c] sm:$0xf] %vm4521_vm7, %v5165_v48  ;;  %v4370_v9 = vadd.f32 %v4369_v59, %v4368_v22  ;;  %v5717_v0 = vadd.f32 %v5681_v2, %v5529_v18  ;;  %v4371_v41 = vsel %vm4327_vm9, %v4313_v39, 0.0 }
 0x23c   : > { %v5530_v52 = vpop.f32.mrb[26].mxu1  ;;  %v3995_v58 = vpop.f32.mrb[27].mxu0  ;;  %v5718_v53 = vadd.f32 %v3992_v5, %v2215_v38  ;;  %v4484_v1 = vsel %vm4327_vm9, %v4428_v27, 0.0  ;;  %4691 = vst.msk [vmem:[%s7325_s16 + $0x64] sm:$0xf] %vm4521_vm7, %v5163_v40  ;;  %v4486_v26 = vsel %vm4327_vm9, %v4429_v49, 0.0 }
 0x23d   : > { %v2218_v11 = vpop.f32.mrb[27].mxu1  ;;  %v5719_v6 = vadd.f32 %v5682_v24, %v5530_v52  ;;  %v4372_v10 = vadd.f32 %v4371_v41, %v4370_v9  ;;  %v4485_v30 = vadd.f32 %v4484_v1, %v4483_v51  ;;  %v4317_v35 = vmul.f32 %v5717_v0, %v7814_v21  ;;  %v4274_v5 = vpop.permute.xlu0 %4273 }
 0x23e   : > { %v5720_v61 = vadd.f32 %v3995_v58, %v2218_v11  ;;  %v4315_v63 = vmul.f32 %v5718_v53, %v7791_v44  ;;  %v4373_v12 = vsel %vm4327_vm9, %v4314_v47, 0.0  ;;  %v4488_v8 = vsel %vm4327_vm9, %v4430_v43, 0.0  ;;  %v7874_v31 = vpop.permute.xlu1 %4278 }
 0x23f   : > { %v4318_v19 = vmul.f32 %v5719_v6, %v7816_v32  ;;  %v4487_v21 = vadd.f32 %v4486_v26, %v4485_v30  ;;  %v5168_v29 = vpack.c.bf16 %v4317_v35, %v4317_v35  ;;  %v4374_v54 = vadd.f32 %v4373_v12, %v4372_v10 }
 0x240   : > { %v4316_v16 = vmul.f32 %v5720_v61, %v7794_v45  ;;  %v4375_v36 = vsel %vm4327_vm9, %v4315_v63, 0.0  ;;  %v4431_v39 = vmul.f32 %v4315_v63, %v4315_v63  ;;  %v5166_v32 = vpack.c.bf16 %v4315_v63, %v4315_v63 }
 0x241   : > { %v5685_v13 = vpop.f32.mrb[28].mxu0  ;;  %v4433_v42 = vmul.f32 %v4317_v35, %v4317_v35  ;;  %4696 = vst.msk [vmem:[%s7325_s16 + $0x78] sm:$0xf] %vm4521_vm7, %v5168_v29  ;;  %v4489_v18 = vadd.f32 %v4488_v8, %v4487_v21  ;;  %v4376_v47 = vadd.f32 %v4375_v36, %v4374_v54  ;;  %v5169_v2 = vpack.c.bf16 %v4318_v19, %v4318_v19 }
 0x242   : > { %v5533_v14 = vpop.f32.mrb[28].mxu1  ;;  %v4008_v37 = vpop.f32.mrb[29].mxu0  ;;  %v4490_v25 = vsel %vm4327_vm9, %v4431_v39, 0.0  ;;  %4694 = vst.msk [vmem:[%s7325_s16 + $0x70] sm:$0xf] %vm4521_vm7, %v5166_v32  ;;  %v4377_v46 = vsel %vm4327_vm9, %v4316_v16, 0.0  ;;  %v4434_v3 = vmul.f32 %v4318_v19, %v4318_v19  ;;  %v4432_v15 = vmul.f32 %v4316_v16, %v4316_v16 }
 0x243   : > { %v2231_v55 = vpop.f32.mrb[29].mxu1  ;;  %v5721_v50 = vadd.f32 %v5685_v13, %v5533_v14  ;;  %v5686_v4 = vpop.f32.mrb[30].mxu0  ;;  %v4491_v56 = vadd.f32 %v4490_v25, %v4489_v18  ;;  %v5167_v38 = vpack.c.bf16 %v4316_v16, %v4316_v16  ;;  %4697 = vst.msk [vmem:[%s7325_s16 + $0x7c] sm:$0xf] %vm4521_vm7, %v5169_v2  ;;  %v4378_v34 = vadd.f32 %v4377_v46, %v4376_v47 }
 0x244   : > { %v5534_v44 = vpop.f32.mrb[30].mxu1  ;;  %v4011_v45 = vpop.f32.mrb[31].mxu0  ;;  %v5722_v28 = vadd.f32 %v4008_v37, %v2231_v55  ;;  %v4379_v24 = vsel %vm4327_vm9, %v4317_v35, 0.0  ;;  %v4492_v49 = vsel %vm4327_vm9, %v4432_v15, 0.0  ;;  %v4494_v22 = vsel %vm4327_vm9, %v4433_v42, 0.0 }
 0x245   : > { %v2234_v17 = vpop.f32.mrb[31].mxu1  ;;  %v4321_v57 = vmul.f32 %v5721_v50, %v4264_v23  ;;  %v5723_v52 = vadd.f32 %v5686_v4, %v5534_v44  ;;  %4695 = vst.msk [vmem:[%s7325_s16 + $0x74] sm:$0xf] %vm4521_vm7, %v5167_v38  ;;  %v4381_v7 = vsel %vm4327_vm9, %v4318_v19, 0.0  ;;  %v4380_v48 = vadd.f32 %v4379_v24, %v4378_v34  ;;  %v4284_v19 = vpop.permute.xlu0 %4283 }
 0x246   : > { %v5724_v11 = vadd.f32 %v4011_v45, %v2234_v17  ;;  %v4493_v59 = vadd.f32 %v4492_v49, %v4491_v56  ;;  %v4319_v40 = vmul.f32 %v5722_v28, %v7836_v60  ;;  %v4496_v23 = vsel %vm4327_vm9, %v4434_v3, 0.0  ;;  %v4289_v39 = vpop.permute.xlu1 %4288 }
 0x247   : > { %v5172_v27 = vpack.c.bf16 %v4321_v57, %v4321_v57  ;;  %v4322_v9 = vmul.f32 %v5723_v52, %v4269_v33  ;;  %v4382_v1 = vadd.f32 %v4381_v7, %v4380_v48  ;;  %v4387_v35 = vsel %vm4327_vm9, %v4321_v57, 0.0 }
 0x248   : > { %v4320_v0 = vmul.f32 %v5724_v11, %v7838_v62  ;;  %v4495_v41 = vadd.f32 %v4494_v22, %v4493_v59  ;;  %v4383_v60 = vsel %vm4327_vm9, %v4319_v40, 0.0  ;;  %v4435_v33 = vmul.f32 %v4319_v40, %v4319_v40 }
 0x249   : > { %v5689_v58 = vpop.f32.mrb[32].mxu0  ;;  %4700 = vst.msk [vmem:[%s7325_s16 + $0x88] sm:$0xf] %vm4521_vm7, %v5172_v27  ;;  %v5170_v63 = vpack.c.bf16 %v4319_v40, %v4319_v40  ;;  %v4437_v62 = vmul.f32 %v4321_v57, %v4321_v57  ;;  %v4384_v14 = vadd.f32 %v4383_v60, %v4382_v1  ;;  %v5173_v26 = vpack.c.bf16 %v4322_v9, %v4322_v9 }
 0x24a   : > { %v5537_v20 = vpop.f32.mrb[32].mxu1  ;;  %v4024_v43 = vpop.f32.mrb[33].mxu0  ;;  %v4497_v13 = vadd.f32 %v4496_v23, %v4495_v41  ;;  %v4498_v55 = vsel %vm4327_vm9, %v4435_v33, 0.0  ;;  %v4385_v16 = vsel %vm4327_vm9, %v4320_v0, 0.0  ;;  %v4436_v50 = vmul.f32 %v4320_v0, %v4320_v0 }
 0x24b   : > { %v2247_v51 = vpop.f32.mrb[33].mxu1  ;;  %v5690_v6 = vpop.f32.mrb[34].mxu0  ;;  %v5725_v10 = vadd.f32 %v5689_v58, %v5537_v20  ;;  %4698 = vst.msk [vmem:[%s7325_s16 + $0x80] sm:$0xf] %vm4521_vm7, %v5170_v63  ;;  %v5171_v37 = vpack.c.bf16 %v4320_v0, %v4320_v0  ;;  %v4438_v8 = vmul.f32 %v4322_v9, %v4322_v9  ;;  %4701 = vst.msk [vmem:[%s7325_s16 + $0x8c] sm:$0xf] %vm4521_vm7, %v5173_v26 }
 0x24c   : > { %v5538_v53 = vpop.f32.mrb[34].mxu1  ;;  %v4027_v30 = vpop.f32.mrb[35].mxu0  ;;  %v4499_v12 = vadd.f32 %v4498_v55, %v4497_v13  ;;  %v4386_v21 = vadd.f32 %v4385_v16, %v4384_v14  ;;  %v4500_v44 = vsel %vm4327_vm9, %v4436_v50, 0.0  ;;  %v5726_v4 = vadd.f32 %v4024_v43, %v2247_v51 }
 0x24d   : > { %v2250_v61 = vpop.f32.mrb[35].mxu1  ;;  %v4325_v29 = vmul.f32 %v5725_v10, %v4284_v19  ;;  %4699 = vst.msk [vmem:[%s7325_s16 + $0x84] sm:$0xf] %vm4521_vm7, %v5171_v37  ;;  %v5727_v54 = vadd.f32 %v5690_v6, %v5538_v53  ;;  %v4502_v32 = vsel %vm4327_vm9, %v4437_v62, 0.0  ;;  %v4389_v17 = vsel %vm4327_vm9, %v4322_v9, 0.0 }
 0x24e   : > { %v5728_v36 = vadd.f32 %v4027_v30, %v2250_v61  ;;  %v4388_v45 = vadd.f32 %v4387_v35, %v4386_v21  ;;  %v4501_v42 = vadd.f32 %v4500_v44, %v4499_v12  ;;  %v4323_v47 = vmul.f32 %v5726_v4, %v4274_v5 }
 0x24f   : > { %v5176_v18 = vpack.c.bf16 %v4325_v29, %v4325_v29  ;;  %v4326_v25 = vmul.f32 %v5727_v54, %v4289_v39  ;;  %v4504_v3 = vsel %vm4327_vm9, %v4438_v8, 0.0  ;;  %v4441_v57 = vmul.f32 %v4325_v29, %v4325_v29 }
 0x250   : > { %v4324_v2 = vmul.f32 %v5728_v36, %v7874_v31  ;;  %v4503_v46 = vadd.f32 %v4502_v32, %v4501_v42  ;;  %v4390_v56 = vadd.f32 %v4389_v17, %v4388_v45  ;;  %v4391_v15 = vsel %vm4327_vm9, %v4323_v47, 0.0 }
 0x251   : > { %4704 = vst.msk [vmem:[%s7325_s16 + $0x98] sm:$0xf] %vm4521_vm7, %v5176_v18  ;;  %v4439_v38 = vmul.f32 %v4323_v47, %v4323_v47  ;;  %v5174_v34 = vpack.c.bf16 %v4323_v47, %v4323_v47  ;;  %v5177_v24 = vpack.c.bf16 %v4326_v25, %v4326_v25  ;;  %v4395_v22 = vsel %vm4327_vm9, %v4325_v29, 0.0 }
 0x252   : > { %v4392_v28 = vadd.f32 %v4391_v15, %v4390_v56  ;;  %v4505_v52 = vadd.f32 %v4504_v3, %v4503_v46  ;;  %v4393_v31 = vsel %vm4327_vm9, %v4324_v2, 0.0  ;;  %v4440_v49 = vmul.f32 %v4324_v2, %v4324_v2 }
 0x253   : > { %v4506_v5 = vsel %vm4327_vm9, %v4439_v38, 0.0  ;;  %4702 = vst.msk [vmem:[%s7325_s16 + $0x90] sm:$0xf] %vm4521_vm7, %v5174_v34  ;;  %v5175_v20 = vpack.c.bf16 %v4324_v2, %v4324_v2  ;;  %4705 = vst.msk [vmem:[%s7325_s16 + $0x9c] sm:$0xf] %vm4521_vm7, %v5177_v24  ;;  %v4442_v7 = vmul.f32 %v4326_v25, %v4326_v25  ;;  %v4510_v43 = vsel %vm4327_vm9, %v4441_v57, 0.0 }
 0x254   : > { %v4507_v11 = vadd.f32 %v4506_v5, %v4505_v52  ;;  %v4394_v58 = vadd.f32 %v4393_v31, %v4392_v28  ;;  %v4508_v48 = vsel %vm4327_vm9, %v4440_v49, 0.0  ;;  %v4397_v27 = vsel %vm4327_vm9, %v4326_v25, 0.0 }
 0x255   : > { %4703 = vst.msk [vmem:[%s7325_s16 + $0x94] sm:$0xf] %vm4521_vm7, %v5175_v20  ;;  %v4512_v0 = vsel %vm4327_vm9, %v4442_v7, 0.0 }
 0x256   : > { %v4396_v59 = vadd.f32 %v4395_v22, %v4394_v58  ;;  %v4509_v51 = vadd.f32 %v4508_v48, %v4507_v11 }
 0x258   : > { %v4398_v40 = vadd.f32 %v4397_v27, %v4396_v59  ;;  %v4511_v9 = vadd.f32 %v4510_v43, %v4509_v51 }
 0x25a   : > { %v4399_v53 = vrot.slane %v4398_v40, 4  ;;  %v4513_v6 = vadd.f32 %v4512_v0, %v4511_v9 }
 0x25c   : > { %v4400_v23 = vadd.f32 %v4399_v53, %v4398_v40  ;;  %v4514_v41 = vrot.slane %v4513_v6, 4 }
 0x25e   : > { %v4401_v1 = vrot.slane %v4400_v23, 2  ;;  %v4515_v61 = vadd.f32 %v4514_v41, %v4513_v6 }
 0x260   : > { %v4402_v10 = vadd.f32 %v4401_v1, %v4400_v23  ;;  %v4516_v30 = vrot.slane %v4515_v61, 2 }
 0x262   : > { %v4403_v35 = vrot.slane %v4402_v10, 1  ;;  %v4517_v60 = vadd.f32 %v4516_v30, %v4515_v61 }
 0x264   : > { %v4404_v33 = vadd.f32 %v4403_v35, %v4402_v10  ;;  %v4518_v63 = vrot.slane %v4517_v60, 1 }
 0x266   : > { %4406 = vst.msk [vmem:[%s253_s17] sm:$0x1] %vm4405_vm10, %v4404_v33  ;;  %v4519_v62 = vadd.f32 %v4518_v63, %v4517_v60 }
 0x268   : > { %4520 = vst.msk [vmem:[%s256_s22] sm:$0x1] %vm4405_vm10, %v4519_v62 }
 0x269 PF: > { %s17_s18 = sadd.s32 1, %s6150_s18  }
 0x26a   : > { %p14_p3 = scmp.ge.s32.totalorder %s17_s18, 4  }
 0x26c   :  { %16 = sbr.rel (!%p14_p3) target bundleno = 1 (0x1), region = 99 }
 0x273   :  { %4755 = vsyncpa [#allocation3], 1 }
 0x274   :  { %4757 = vsyncpa [#allocation3 + $0x1], 1 }

</bundles_post_ra>
